<compile_context>
chip_gen: v7x
topology: tpu7x:2x2x1
jax: 0.10.0
libtpu: 0.0.40
codegen_flags: <defaults>
</compile_context>

<pallas_src>
import functools
import math

import numpy as np
import jax
import jax.numpy as jnp
from jax.experimental import pallas as pl
from jax.experimental.pallas import tpu as pltpu

# ----------------------------- configuration ---------------------------------
B = 2
ENC_IN = 4
DEC_IN = 4
C_OUT = 4
N_MARK = 4                      # embed='timeF', freq='h' -> 4 time features
D_MODEL = 32
N_HEADS = 4
D_HEAD = D_MODEL // N_HEADS
D_FF = 64
E_LAYERS = 2
D_LAYERS = 1
FACTOR = 5
SEQ_LEN = 12                    # encoder input length
LABEL_LEN = 4
PRED_LEN = 4
DEC_LEN = LABEL_LEN + PRED_LEN  # decoder input length = 8
LN_EPS = 1e-5
NEG = -1e30                     # additive-mask / pooling padding value
PACK_WIDTH = 128                # lane width of the packed parameter buffer

APPROX_RECIPROCAL = False       # exact softmax division (PyTorch parity); True -> EUP vrcp
MATMUL_DTYPE = jnp.float32      # set jnp.bfloat16 on v6e/v7x for faster MXU (f32 accumulation
                                # is kept; selection/permutation matmuls stay exact only in f32)

VMEM_SPEC = pl.BlockSpec(memory_space=pltpu.MemorySpace.VMEM)


# --------------------------- static model helpers -----------------------------
def _enc_lengths():
    # sequence length seen by each encoder layer (distil MaxPool1d(3, stride=2, padding=1))
    lens = [SEQ_LEN]
    for _ in range(E_LAYERS - 1):
        lens.append((lens[-1] + 2 - 3) // 2 + 1)
    return lens


def _prob_attn_is_dense(L, factor=FACTOR):
    # ProbAttention: u = factor*ceil(ln L); if u >= L every query is selected -> exact dense attn.
    return factor * math.ceil(math.log(L)) >= L


def _sinusoid_pe(n, d):
    pos = np.arange(n, dtype=np.float32)[:, None]
    div = np.exp(np.arange(0, d, 2, dtype=np.float32) * -(math.log(10000.0) / d))
    pe = np.zeros((n, d), np.float32)
    pe[:, 0::2] = np.sin(pos * div)
    pe[:, 1::2] = np.cos(pos * div)
    return pe


def _circ_perm(L, shift):
    # (B*L, B*L) block-diagonal permutation: row (b,l) selects source row (b, (l+shift) % L)
    P = np.zeros((B * L, B * L), np.float32)
    for b in range(B):
        for l in range(L):
            P[b * L + l, b * L + (l + shift) % L] = 1.0
    return P


def _attn_bias(Lq, Lk, causal):
    # additive mask (B*Lq, B*Lk): 0 inside the same batch block (and j<=i if causal), NEG elsewhere
    m = np.full((B * Lq, B * Lk), NEG, np.float32)
    for b in range(B):
        for i in range(Lq):
            for j in range(Lk):
                if (not causal) or (j <= i):
                    m[b * Lq + i, b * Lk + j] = 0.0
    return m


def _pool_select(L, tap):
    # row-selection matrix for MaxPool1d(3, stride=2, padding=1): window i = rows {2i-1, 2i, 2i+1}
    Lp = (L + 2 - 3) // 2 + 1
    S = np.zeros((B * Lp, B * L), np.float32)
    for b in range(B):
        for i in range(Lp):
            src = 2 * i + tap
            if 0 <= src < L:
                S[b * Lp + i, b * L + src] = 1.0
    return S


def _pool_pad(L):
    # additive NEG for the (padded) left tap of the first window of every batch; ELU >= -1 so
    # NEG always loses the max for real taps.
    Lp = (L + 2 - 3) // 2 + 1
    pad = np.zeros((B * Lp, 1), np.float32)
    for b in range(B):
        pad[b * Lp, 0] = NEG
    return pad


def _out_select():
    # selects the last PRED_LEN decoder positions of every batch (before the final projection)
    S = np.zeros((B * PRED_LEN, B * DEC_LEN), np.float32)
    for b in range(B):
        for i in range(PRED_LEN):
            S[b * PRED_LEN + i, b * DEC_LEN + LABEL_LEN + i] = 1.0
    return S


# ------------------------------ parameter packing ------------------------------
def build_packed_params(seed=0):
    """Pack every weight and every baked constant into ONE (rows, 128) f32 buffer.

    Returns (packed jnp.ndarray, layout: name -> (row_offset, rows, cols)).
    """
    rng = np.random.default_rng(seed)
    chunks, layout = [], {}
    nrows = 0

    def add(name, arr):
        nonlocal nrows
        if name in layout:
            return
        arr = np.asarray(arr, np.float32)
        if arr.ndim == 1:
            arr = arr[None, :]
        r, c = arr.shape
        assert c <= PACK_WIDTH, (name, arr.shape)
        buf = np.zeros((r, PACK_WIDTH), np.float32)
        buf[:, :c] = arr
        layout[name] = (nrows, r, c)
        chunks.append(buf)
        nrows += r

    def w(shape, s=0.05):
        return (s * rng.standard_normal(shape)).astype(np.float32)

    lens = _enc_lengths()

    # ---- baked constants: positional enc, circular-shift perms, attn masks, pool/out selectors
    add("pe_enc", np.tile(_sinusoid_pe(SEQ_LEN, D_MODEL), (B, 1)))
    add("pe_dec", np.tile(_sinusoid_pe(DEC_LEN, D_MODEL), (B, 1)))
    for L in sorted({SEQ_LEN, DEC_LEN} | set(lens[:E_LAYERS - 1])):
        add(f"perm_prev_L{L}", _circ_perm(L, -1))
        add(f"perm_next_L{L}", _circ_perm(L, +1))
    for L in sorted(set(lens)):
        add(f"enc_mask_L{L}", _attn_bias(L, L, causal=False))
    add("dec_self_mask", _attn_bias(DEC_LEN, DEC_LEN, causal=True))
    add("cross_mask", _attn_bias(DEC_LEN, lens[-1], causal=False))
    for L in sorted(set(lens[:E_LAYERS - 1])):
        add(f"pool_mid_L{L}", _pool_select(L, 0))
        add(f"pool_right_L{L}", _pool_select(L, 1))
        add(f"pool_left_L{L}", _pool_select(L, -1))
        add(f"pool_pad_L{L}", _pool_pad(L))
    add("out_select", _out_select())

    # ---- DataEmbedding: token Conv1d(k=3, circular, no bias) + timeF Linear(no bias) fused
    #      into a single (3*c_in + N_MARK, D) matmul weight (cols = [x_prev | x | mark | x_next]).
    add("embed_enc.w", w((3 * ENC_IN + N_MARK, D_MODEL)))
    add("embed_dec.w", w((3 * DEC_IN + N_MARK, D_MODEL)))

    def add_ln(p):
        add(p + "_g", 1.0 + w((1, D_MODEL), 0.02))
        add(p + "_b", w((1, D_MODEL), 0.02))

    def add_self_attn(p):
        add(p + "w_qkv", w((D_MODEL, 3 * D_MODEL)))   # [Wq | Wk | Wv] fused
        add(p + "b_qkv", w((1, 3 * D_MODEL), 0.02))
        add(p + "wo", w((D_MODEL, D_MODEL)))
        add(p + "bo", w((1, D_MODEL), 0.02))

    def add_ffn(p):
        add(p + "w1", w((D_MODEL, D_FF)))
        add(p + "b1", w((1, D_FF), 0.02))
        add(p + "w2", w((D_FF, D_MODEL)))
        add(p + "b2", w((1, D_MODEL), 0.02))

    for i in range(E_LAYERS):
        p = f"enc{i}."
        add_self_attn(p)
        add_ffn(p)
        add_ln(p + "ln1")
        add_ln(p + "ln2")
    for i in range(E_LAYERS - 1):
        p = f"conv{i}."
        add(p + "w", w((3 * D_MODEL, D_MODEL)))       # Conv1d(D,D,3,circular) as im2col matmul
        add(p + "b", w((1, D_MODEL), 0.02))
        gamma = 1.0 + w((1, D_MODEL), 0.02)
        beta = w((1, D_MODEL), 0.02)
        # eval-mode BatchNorm1d with running_mean=0, running_var=1 folded into an affine.
        # TODO(synk): fold real running stats here when loading an actual checkpoint.
        add(p + "bn_scale", gamma / np.sqrt(1.0 + LN_EPS))
        add(p + "bn_shift", beta)
    add_ln("enc_norm")
    for i in range(D_LAYERS):
        p = f"dec{i}."
        add_self_attn(p + "self.")
        add(p + "cross.wq", w((D_MODEL, D_MODEL)))
        add(p + "cross.bq", w((1, D_MODEL), 0.02))
        add(p + "cross.w_kv", w((D_MODEL, 2 * D_MODEL)))   # [Wk | Wv] fused
        add(p + "cross.b_kv", w((1, 2 * D_MODEL), 0.02))
        add(p + "cross.wo", w((D_MODEL, D_MODEL)))
        add(p + "cross.bo", w((1, D_MODEL), 0.02))
        add_ffn(p)
        add_ln(p + "ln1")
        add_ln(p + "ln2")
        add_ln(p + "ln3")
    add_ln("dec_norm")
    add("proj_w", w((D_MODEL, C_OUT)))
    add("proj_b", w((1, C_OUT), 0.02))

    packed = np.concatenate(chunks, axis=0)
    pad = (-packed.shape[0]) % 8
    if pad:
        packed = np.concatenate([packed, np.zeros((pad, PACK_WIDTH), np.float32)], axis=0)
    return jnp.asarray(packed), layout


# ----------------------- in-kernel building blocks (pure jnp) ------------------
def _mm(a, b):
    return jnp.dot(a.astype(MATMUL_DTYPE), b.astype(MATMUL_DTYPE),
                   preferred_element_type=jnp.float32)


def _layernorm(h, g, b):
    mu = jnp.mean(h, axis=-1, keepdims=True)
    hc = h - mu
    var = jnp.mean(hc * hc, axis=-1, keepdims=True)
    return hc * jax.lax.rsqrt(var + LN_EPS) * g + b


def _sdpa(q, k, v, bias):
    # q,k,v: (H, Nq/Nk, D_HEAD) -- all heads batched along the leading (untiled) axis.
    s = jnp.einsum("hqd,hkd->hqk", q.astype(MATMUL_DTYPE), k.astype(MATMUL_DTYPE),
                   preferred_element_type=jnp.float32)
    s = s * jnp.float32(1.0 / math.sqrt(D_HEAD)) + bias[None, :, :]
    s = s - jnp.max(s, axis=-1, keepdims=True)
    e = jnp.exp(s)
    den = jnp.sum(e, axis=-1, keepdims=True)
    p = e * pl.reciprocal(den, approx=True) if APPROX_RECIPROCAL else e / den
    return jnp.einsum("hqk,hkd->hqd", p.astype(MATMUL_DTYPE), v.astype(MATMUL_DTYPE),
                      preferred_element_type=jnp.float32)


def _split_heads(x, base):
    # (N, *) -> (H, N, D_HEAD): lane slices stacked along a NEW leading axis (no relayout).
    return jnp.stack(
        [x[:, base + h * D_HEAD: base + (h + 1) * D_HEAD] for h in range(N_HEADS)], axis=0)


def _merge_heads(o):
    # (H, N, D_HEAD) -> (N, D_MODEL), head-major lanes (matches torch .view(B, L, H*Dh)).
    return jnp.concatenate([o[h] for h in range(N_HEADS)], axis=-1)


def _mha_self(get, pfx, x, bias):
    qkv = _mm(x, get(pfx + "w_qkv")) + get(pfx + "b_qkv")            # fused QKV projection
    q = _split_heads(qkv, 0)
    k = _split_heads(qkv, D_MODEL)
    v = _split_heads(qkv, 2 * D_MODEL)
    o = _merge_heads(_sdpa(q, k, v, bias))
    return _mm(o, get(pfx + "wo")) + get(pfx + "bo")


def _mha_cross(get, pfx, x, mem, bias):
    q_all = _mm(x, get(pfx + "wq")) + get(pfx + "bq")
    kv = _mm(mem, get(pfx + "w_kv")) + get(pfx + "b_kv")             # fused K,V projection
    q = _split_heads(q_all, 0)
    k = _split_heads(kv, 0)
    v = _split_heads(kv, D_MODEL)
    o = _merge_heads(_sdpa(q, k, v, bias))
    return _mm(o, get(pfx + "wo")) + get(pfx + "bo")


def _ffn(get, pfx, x):
    # Conv1d(d_model, d_ff, 1) -> relu -> Conv1d(d_ff, d_model, 1)   (activation='relu')
    h = jnp.maximum(_mm(x, get(pfx + "w1")) + get(pfx + "b1"), 0.0)
    return _mm(h, get(pfx + "w2")) + get(pfx + "b2")


def _embed(get, wname, x_cat, c_in, perm_prev, perm_next, pe):
    # DataEmbedding: token Conv1d(k=3, circular) + timeF linear + positional, as ONE matmul.
    x_val = x_cat[:, :c_in]
    x_prev = _mm(perm_prev, x_val)            # circular shift via baked permutation matmul
    x_next = _mm(perm_next, x_val)
    cols = jnp.concatenate([x_prev, x_cat, x_next], axis=-1)         # (N, 3*c_in + N_MARK)
    return _mm(cols, get(wname)) + pe


def _conv_distil(get, idx, L, x):
    # ConvLayer: Conv1d(D,D,3,circular) -> folded BatchNorm1d -> ELU -> MaxPool1d(3,2,1)
    x_prev = _mm(get(f"perm_prev_L{L}"), x)
    x_next = _mm(get(f"perm_next_L{L}"), x)
    cols = jnp.concatenate([x_prev, x, x_next], axis=-1)             # (N, 3D) im2col
    y = _mm(cols, get(f"conv{idx}.w")) + get(f"conv{idx}.b")
    y = y * get(f"conv{idx}.bn_scale") + get(f"conv{idx}.bn_shift")
    y = jnp.where(y > 0, y, jnp.exp(jnp.minimum(y, 0.0)) - 1.0)      # ELU(alpha=1)
    # MaxPool window i = rows {2i-1, 2i, 2i+1}: three row-selection matmuls + two VPU maxima.
    mid = _mm(get(f"pool_mid_L{L}"), y)
    right = _mm(get(f"pool_right_L{L}"), y)
    left = _mm(get(f"pool_left_L{L}"), y) + get(f"pool_pad_L{L}")    # NEG where tap is padding
    return jnp.maximum(jnp.maximum(mid, right), left)


# ------------------------------- fused kernel ----------------------------------
def _informer_kernel(layout, xe_ref, xd_ref, p_ref, out_ref):
    def get(name):
        off, r, c = layout[name]
        return p_ref[pl.ds(off, r), pl.ds(0, c)]      # point-of-use, static-slice load

    lens = _enc_lengths()

    # ------------------------------ encoder -----------------------------------
    enc = _embed(get, "embed_enc.w", xe_ref[...], ENC_IN,
                 get(f"perm_prev_L{SEQ_LEN}"), get(f"perm_next_L{SEQ_LEN}"), get("pe_enc"))
    for i in range(E_LAYERS):
        L = lens[i]
        pfx = f"enc{i}."
        enc = _layernorm(enc + _mha_self(get, pfx, enc, get(f"enc_mask_L{L}")),
                         get(pfx + "ln1_g"), get(pfx + "ln1_b"))
        enc = _layernorm(enc + _ffn(get, pfx, enc), get(pfx + "ln2_g"), get(pfx + "ln2_b"))
        if i < E_LAYERS - 1:                          # distil=True
            enc = _conv_distil(get, i, L, enc)
    enc = _layernorm(enc, get("enc_norm_g"), get("enc_norm_b"))

    # ------------------------------ decoder -----------------------------------
    dec = _embed(get, "embed_dec.w", xd_ref[...], DEC_IN,
                 get(f"perm_prev_L{DEC_LEN}"), get(f"perm_next_L{DEC_LEN}"), get("pe_dec"))
    for i in range(D_LAYERS):
        pfx = f"dec{i}."
        dec = _layernorm(dec + _mha_self(get, pfx + "self.", dec, get("dec_self_mask")),
                         get(pfx + "ln1_g"), get(pfx + "ln1_b"))
        dec = _layernorm(dec + _mha_cross(get, pfx + "cross.", dec, enc, get("cross_mask")),
                         get(pfx + "ln2_g"), get(pfx + "ln2_b"))
        dec = _layernorm(dec + _ffn(get, pfx, dec), get(pfx + "ln3_g"), get(pfx + "ln3_b"))
    dec = _layernorm(dec, get("dec_norm_g"), get("dec_norm_b"))

    # select last PRED_LEN positions of each batch BEFORE projecting (fewer rows, no post-slice)
    tail = _mm(get("out_select"), dec)                               # (B*PRED_LEN, D)
    out_ref[...] = _mm(tail, get("proj_w")) + get("proj_b")          # output_attention=False


# ------------------------------- cost estimate ---------------------------------
def _flops_estimate():
    mm = lambda m, k, n: 2 * m * k * n
    lens = _enc_lengths()
    f = 0
    for L, cin in ((SEQ_LEN, ENC_IN), (DEC_LEN, DEC_IN)):            # embeddings
        N = B * L
        f += 2 * mm(N, N, cin) + mm(N, 3 * cin + N_MARK, D_MODEL)
    for i, L in enumerate(lens):                                     # encoder layers
        N = B * L
        f += mm(N, D_MODEL, 4 * D_MODEL) + N_HEADS * 2 * mm(N, D_HEAD, N) + 2 * mm(N, D_MODEL, D_FF)
        if i < E_LAYERS - 1:
            Np = B * lens[i + 1]
            f += 2 * mm(N, N, D_MODEL) + mm(N, 3 * D_MODEL, D_MODEL) + 3 * mm(Np, N, D_MODEL)
    Nd, Ne = B * DEC_LEN, B * lens[-1]
    for _ in range(D_LAYERS):                                        # decoder layers
        f += mm(Nd, D_MODEL, 4 * D_MODEL) + N_HEADS * 2 * mm(Nd, D_HEAD, Nd)
        f += mm(Nd, D_MODEL, 2 * D_MODEL) + mm(Ne, D_MODEL, 2 * D_MODEL)
        f += N_HEADS * (mm(Nd, D_HEAD, Ne) + mm(Nd, Ne, D_HEAD))
        f += 2 * mm(Nd, D_MODEL, D_FF)
    f += mm(B * PRED_LEN, Nd, D_MODEL) + mm(B * PRED_LEN, D_MODEL, C_OUT)
    return int(f)


def _transcendental_estimate():
    lens = _enc_lengths()
    t = sum(N_HEADS * (B * L) ** 2 for L in lens)
    t += N_HEADS * (B * DEC_LEN) ** 2 + N_HEADS * (B * DEC_LEN) * (B * lens[-1])
    t += sum(B * lens[i] * D_MODEL for i in range(E_LAYERS - 1))     # ELU exp
    return int(t)


# --------------------------------- wrapper --------------------------------------
def informer_forward(layout, packed, x_enc, x_mark_enc, x_dec, x_mark_dec):
    # ProbSparse == dense-softmax equivalence (u = factor*ceil(ln L) >= L) at every call site.
    for L in _enc_lengths():
        assert _prob_attn_is_dense(L), L
    assert _prob_attn_is_dense(DEC_LEN)

    xe = jnp.concatenate([x_enc, x_mark_enc], axis=-1).reshape(B * SEQ_LEN, ENC_IN + N_MARK)
    xd = jnp.concatenate([x_dec, x_mark_dec], axis=-1).reshape(B * DEC_LEN, DEC_IN + N_MARK)

    cost = pl.CostEstimate(
        flops=_flops_estimate(),
        transcendentals=_transcendental_estimate(),
        bytes_accessed=4 * (packed.size + xe.size + xd.size + B * PRED_LEN * C_OUT),
    )
    out = pl.pallas_call(
        functools.partial(_informer_kernel, layout),
        out_shape=jax.ShapeDtypeStruct((B * PRED_LEN, C_OUT), jnp.float32),
        in_specs=[VMEM_SPEC] * 3,
        out_specs=VMEM_SPEC,
        cost_estimate=cost,
    )(xe, xd, packed)
    return out.reshape(B, PRED_LEN, C_OUT)


# ---------------------------------- main -----------------------------------------
if __name__ == "__main__":
    packed, layout = build_packed_params(0)

    key = jax.random.PRNGKey(0)
    k1, k2, k3, k4 = jax.random.split(key, 4)
    x_enc = jax.random.normal(k1, (B, SEQ_LEN, ENC_IN), jnp.float32)
    x_mark_enc = jax.random.normal(k2, (B, SEQ_LEN, N_MARK), jnp.float32)
    x_dec = jax.random.normal(k3, (B, DEC_LEN, DEC_IN), jnp.float32)
    x_mark_dec = jax.random.normal(k4, (B, DEC_LEN, N_MARK), jnp.float32)

    fwd = jax.jit(functools.partial(informer_forward, layout))
    out = jax.block_until_ready(fwd(packed, x_enc, x_mark_enc, x_dec, x_mark_dec))

    assert out.shape == (B, PRED_LEN, C_OUT), out.shape
    assert bool(jnp.all(jnp.isfinite(out)))
    print("KERNEL_OK")
</pallas_src>

<mosaic_0001>
module attributes {stable_mosaic.version = 11 : i64} {
  func.func @_informer_kernel(%arg0: memref<24x8xf32, #tpu.memory_space<vmem>>, %arg1: memref<16x8xf32, #tpu.memory_space<vmem>>, %arg2: memref<1024x128xf32, #tpu.memory_space<vmem>>, %arg3: memref<8x4xf32, #tpu.memory_space<vmem>>) attributes {dimension_semantics = [], scalar_prefetch = 0 : i64, scratch_operands = 0 : i64, tpu.core_type = #tpu.core_type<tc>} {
    %c0 = arith.constant 0 : index
    %c0_0 = arith.constant 0 : index
    %0 = vector.load %arg0[%c0, %c0_0] : memref<24x8xf32, #tpu.memory_space<vmem>>, vector<24x8xf32>
    %c72 = arith.constant 72 : index
    %c0_1 = arith.constant 0 : index
    %1 = vector.load %arg2[%c72, %c0_1] : memref<1024x128xf32, #tpu.memory_space<vmem>>, vector<24x24xf32>
    %c96 = arith.constant 96 : index
    %c0_2 = arith.constant 0 : index
    %2 = vector.load %arg2[%c96, %c0_2] : memref<1024x128xf32, #tpu.memory_space<vmem>>, vector<24x24xf32>
    %c0_3 = arith.constant 0 : index
    %c0_4 = arith.constant 0 : index
    %3 = vector.load %arg2[%c0_3, %c0_4] : memref<1024x128xf32, #tpu.memory_space<vmem>>, vector<24x32xf32>
    %4 = vector.extract_strided_slice %0 {offsets = [0, 0], sizes = [24, 4], strides = [1, 1]} : vector<24x8xf32> to vector<24x4xf32>
    %cst = arith.constant dense<0.000000e+00> : vector<24x4xf32>
    %5 = tpu.matmul %1, %4, %cst {dimension_numbers = #tpu.dot_dimension_numbers<[1], [0], [0], [1], [0, 0, 1, 1], [], []>} : vector<24x24xf32>, vector<24x4xf32>, vector<24x4xf32> -> vector<24x4xf32>
    %cst_5 = arith.constant dense<0.000000e+00> : vector<24x4xf32>
    %6 = tpu.matmul %2, %4, %cst_5 {dimension_numbers = #tpu.dot_dimension_numbers<[1], [0], [0], [1], [0, 0, 1, 1], [], []>} : vector<24x24xf32>, vector<24x4xf32>, vector<24x4xf32> -> vector<24x4xf32>
    %7 = tpu.concatenate %5, %0, %6 in 1 : vector<24x4xf32>, vector<24x8xf32>, vector<24x4xf32> -> vector<24x16xf32>
    %c244 = arith.constant 244 : index
    %c0_6 = arith.constant 0 : index
    %8 = vector.load %arg2[%c244, %c0_6] : memref<1024x128xf32, #tpu.memory_space<vmem>>, vector<16x32xf32>
    %cst_7 = arith.constant dense<0.000000e+00> : vector<24x32xf32>
    %9 = tpu.matmul %7, %8, %cst_7 {dimension_numbers = #tpu.dot_dimension_numbers<[1], [0], [0], [1], [0, 0, 1, 1], [], []>} : vector<24x16xf32>, vector<16x32xf32>, vector<24x32xf32> -> vector<24x32xf32>
    %10 = arith.addf %9, %3 : vector<24x32xf32>
    %c132 = arith.constant 132 : index
    %c0_8 = arith.constant 0 : index
    %11 = vector.load %arg2[%c132, %c0_8] : memref<1024x128xf32, #tpu.memory_space<vmem>>, vector<24x24xf32>
    %c276 = arith.constant 276 : index
    %c0_9 = arith.constant 0 : index
    %12 = vector.load %arg2[%c276, %c0_9] : memref<1024x128xf32, #tpu.memory_space<vmem>>, vector<32x96xf32>
    %cst_10 = arith.constant dense<0.000000e+00> : vector<24x96xf32>
    %13 = tpu.matmul %10, %12, %cst_10 {dimension_numbers = #tpu.dot_dimension_numbers<[1], [0], [0], [1], [0, 0, 1, 1], [], []>} : vector<24x32xf32>, vector<32x96xf32>, vector<24x96xf32> -> vector<24x96xf32>
    %c308 = arith.constant 308 : index
    %c0_11 = arith.constant 0 : index
    %14 = vector.load %arg2[%c308, %c0_11] : memref<1024x128xf32, #tpu.memory_space<vmem>>, vector<1x96xf32>
    %15 = vector.broadcast %14 : vector<1x96xf32> to vector<24x96xf32>
    %16 = arith.addf %13, %15 : vector<24x96xf32>
    %17 = vector.extract_strided_slice %16 {offsets = [0, 0], sizes = [24, 8], strides = [1, 1]} : vector<24x96xf32> to vector<24x8xf32>
    %18 = vector.extract_strided_slice %16 {offsets = [0, 8], sizes = [24, 8], strides = [1, 1]} : vector<24x96xf32> to vector<24x8xf32>
    %19 = vector.extract_strided_slice %16 {offsets = [0, 16], sizes = [24, 8], strides = [1, 1]} : vector<24x96xf32> to vector<24x8xf32>
    %20 = vector.extract_strided_slice %16 {offsets = [0, 24], sizes = [24, 8], strides = [1, 1]} : vector<24x96xf32> to vector<24x8xf32>
    %21 = vector.shape_cast %17 : vector<24x8xf32> to vector<1x24x8xf32>
    %22 = vector.shape_cast %18 : vector<24x8xf32> to vector<1x24x8xf32>
    %23 = vector.shape_cast %19 : vector<24x8xf32> to vector<1x24x8xf32>
    %24 = vector.shape_cast %20 : vector<24x8xf32> to vector<1x24x8xf32>
    %25 = tpu.concatenate %21, %22, %23, %24 in 0 : vector<1x24x8xf32>, vector<1x24x8xf32>, vector<1x24x8xf32>, vector<1x24x8xf32> -> vector<4x24x8xf32>
    %26 = vector.extract_strided_slice %16 {offsets = [0, 32], sizes = [24, 8], strides = [1, 1]} : vector<24x96xf32> to vector<24x8xf32>
    %27 = vector.extract_strided_slice %16 {offsets = [0, 40], sizes = [24, 8], strides = [1, 1]} : vector<24x96xf32> to vector<24x8xf32>
    %28 = vector.extract_strided_slice %16 {offsets = [0, 48], sizes = [24, 8], strides = [1, 1]} : vector<24x96xf32> to vector<24x8xf32>
    %29 = vector.extract_strided_slice %16 {offsets = [0, 56], sizes = [24, 8], strides = [1, 1]} : vector<24x96xf32> to vector<24x8xf32>
    %30 = vector.shape_cast %26 : vector<24x8xf32> to vector<1x24x8xf32>
    %31 = vector.shape_cast %27 : vector<24x8xf32> to vector<1x24x8xf32>
    %32 = vector.shape_cast %28 : vector<24x8xf32> to vector<1x24x8xf32>
    %33 = vector.shape_cast %29 : vector<24x8xf32> to vector<1x24x8xf32>
    %34 = tpu.concatenate %30, %31, %32, %33 in 0 : vector<1x24x8xf32>, vector<1x24x8xf32>, vector<1x24x8xf32>, vector<1x24x8xf32> -> vector<4x24x8xf32>
    %35 = vector.extract_strided_slice %16 {offsets = [0, 64], sizes = [24, 8], strides = [1, 1]} : vector<24x96xf32> to vector<24x8xf32>
    %36 = vector.extract_strided_slice %16 {offsets = [0, 72], sizes = [24, 8], strides = [1, 1]} : vector<24x96xf32> to vector<24x8xf32>
    %37 = vector.extract_strided_slice %16 {offsets = [0, 80], sizes = [24, 8], strides = [1, 1]} : vector<24x96xf32> to vector<24x8xf32>
    %38 = vector.extract_strided_slice %16 {offsets = [0, 88], sizes = [24, 8], strides = [1, 1]} : vector<24x96xf32> to vector<24x8xf32>
    %39 = vector.shape_cast %35 : vector<24x8xf32> to vector<1x24x8xf32>
    %40 = vector.shape_cast %36 : vector<24x8xf32> to vector<1x24x8xf32>
    %41 = vector.shape_cast %37 : vector<24x8xf32> to vector<1x24x8xf32>
    %42 = vector.shape_cast %38 : vector<24x8xf32> to vector<1x24x8xf32>
    %43 = tpu.concatenate %39, %40, %41, %42 in 0 : vector<1x24x8xf32>, vector<1x24x8xf32>, vector<1x24x8xf32>, vector<1x24x8xf32> -> vector<4x24x8xf32>
    "tpu.trace_start"() <{level = 10 : i32, message = "hqd,hkd->hqk"}> : () -> ()
    %cst_12 = arith.constant dense<0.000000e+00> : vector<4x24x24xf32>
    %44 = tpu.matmul %25, %34, %cst_12 {dimension_numbers = #tpu.dot_dimension_numbers<[2], [2], [1], [1], [0, 0, 0, 1, 1, 1], [0], [0]>} : vector<4x24x8xf32>, vector<4x24x8xf32>, vector<4x24x24xf32> -> vector<4x24x24xf32>
    "tpu.trace_stop"() : () -> ()
    %cst_13 = arith.constant 0.353553385 : f32
    %45 = vector.broadcast %cst_13 : f32 to vector<4x24x24xf32>
    %46 = arith.mulf %44, %45 : vector<4x24x24xf32>
    %47 = vector.shape_cast %11 : vector<24x24xf32> to vector<1x24x24xf32>
    %48 = vector.broadcast %47 : vector<1x24x24xf32> to vector<4x24x24xf32>
    %49 = arith.addf %46, %48 : vector<4x24x24xf32>
    %cst_14 = arith.constant dense<0xFF800000> : vector<4x24xf32>
    %50 = vector.multi_reduction <maximumf>, %49, %cst_14 [2] : vector<4x24x24xf32> to vector<4x24xf32>
    %51 = vector.shape_cast %50 : vector<4x24xf32> to vector<4x24x1xf32>
    %52 = vector.broadcast %51 : vector<4x24x1xf32> to vector<4x24x24xf32>
    %53 = arith.subf %49, %52 : vector<4x24x24xf32>
    %54 = math.exp %53 : vector<4x24x24xf32>
    %cst_15 = arith.constant dense<0.000000e+00> : vector<4x24xf32>
    %55 = vector.multi_reduction <add>, %54, %cst_15 [2] : vector<4x24x24xf32> to vector<4x24xf32>
    %56 = vector.shape_cast %55 : vector<4x24xf32> to vector<4x24x1xf32>
    %57 = vector.broadcast %56 : vector<4x24x1xf32> to vector<4x24x24xf32>
    %58 = arith.divf %54, %57 : vector<4x24x24xf32>
    "tpu.trace_start"() <{level = 10 : i32, message = "hqk,hkd->hqd"}> : () -> ()
    %cst_16 = arith.constant dense<0.000000e+00> : vector<4x24x8xf32>
    %59 = tpu.matmul %58, %43, %cst_16 {dimension_numbers = #tpu.dot_dimension_numbers<[2], [1], [1], [2], [0, 0, 0, 1, 1, 2], [0], [0]>} : vector<4x24x24xf32>, vector<4x24x8xf32>, vector<4x24x8xf32> -> vector<4x24x8xf32>
    "tpu.trace_stop"() : () -> ()
    %60 = vector.extract_strided_slice %59 {offsets = [0, 0, 0], sizes = [1, 24, 8], strides = [1, 1, 1]} : vector<4x24x8xf32> to vector<1x24x8xf32>
    %61 = vector.shape_cast %60 : vector<1x24x8xf32> to vector<24x8xf32>
    %62 = vector.extract_strided_slice %59 {offsets = [1, 0, 0], sizes = [1, 24, 8], strides = [1, 1, 1]} : vector<4x24x8xf32> to vector<1x24x8xf32>
    %63 = vector.shape_cast %62 : vector<1x24x8xf32> to vector<24x8xf32>
    %64 = vector.extract_strided_slice %59 {offsets = [2, 0, 0], sizes = [1, 24, 8], strides = [1, 1, 1]} : vector<4x24x8xf32> to vector<1x24x8xf32>
    %65 = vector.shape_cast %64 : vector<1x24x8xf32> to vector<24x8xf32>
    %66 = vector.extract_strided_slice %59 {offsets = [3, 0, 0], sizes = [1, 24, 8], strides = [1, 1, 1]} : vector<4x24x8xf32> to vector<1x24x8xf32>
    %67 = vector.shape_cast %66 : vector<1x24x8xf32> to vector<24x8xf32>
    %68 = tpu.concatenate %61, %63, %65, %67 in 1 : vector<24x8xf32>, vector<24x8xf32>, vector<24x8xf32>, vector<24x8xf32> -> vector<24x32xf32>
    %c309 = arith.constant 309 : index
    %c0_17 = arith.constant 0 : index
    %69 = vector.load %arg2[%c309, %c0_17] : memref<1024x128xf32, #tpu.memory_space<vmem>>, vector<32x32xf32>
    %cst_18 = arith.constant dense<0.000000e+00> : vector<24x32xf32>
    %70 = tpu.matmul %68, %69, %cst_18 {dimension_numbers = #tpu.dot_dimension_numbers<[1], [0], [0], [1], [0, 0, 1, 1], [], []>} : vector<24x32xf32>, vector<32x32xf32>, vector<24x32xf32> -> vector<24x32xf32>
    %c341 = arith.constant 341 : index
    %c0_19 = arith.constant 0 : index
    %71 = vector.load %arg2[%c341, %c0_19] : memref<1024x128xf32, #tpu.memory_space<vmem>>, vector<1x32xf32>
    %72 = vector.broadcast %71 : vector<1x32xf32> to vector<24x32xf32>
    %73 = arith.addf %70, %72 : vector<24x32xf32>
    %74 = arith.addf %10, %73 : vector<24x32xf32>
    %c440 = arith.constant 440 : index
    %c0_20 = arith.constant 0 : index
    %75 = vector.load %arg2[%c440, %c0_20] : memref<1024x128xf32, #tpu.memory_space<vmem>>, vector<1x32xf32>
    %c441 = arith.constant 441 : index
    %c0_21 = arith.constant 0 : index
    %76 = vector.load %arg2[%c441, %c0_21] : memref<1024x128xf32, #tpu.memory_space<vmem>>, vector<1x32xf32>
    %cst_22 = arith.constant dense<0.000000e+00> : vector<24xf32>
    %77 = vector.multi_reduction <add>, %74, %cst_22 [1] : vector<24x32xf32> to vector<24xf32>
    %78 = vector.shape_cast %77 : vector<24xf32> to vector<24x1xf32>
    %cst_23 = arith.constant 3.200000e+01 : f32
    %79 = vector.broadcast %cst_23 : f32 to vector<24x1xf32>
    %80 = arith.divf %78, %79 : vector<24x1xf32>
    %81 = vector.broadcast %80 : vector<24x1xf32> to vector<24x32xf32>
    %82 = arith.subf %74, %81 : vector<24x32xf32>
    %83 = arith.mulf %82, %82 : vector<24x32xf32>
    %cst_24 = arith.constant dense<0.000000e+00> : vector<24xf32>
    %84 = vector.multi_reduction <add>, %83, %cst_24 [1] : vector<24x32xf32> to vector<24xf32>
    %85 = vector.shape_cast %84 : vector<24xf32> to vector<24x1xf32>
    %cst_25 = arith.constant 3.200000e+01 : f32
    %86 = vector.broadcast %cst_25 : f32 to vector<24x1xf32>
    %87 = arith.divf %85, %86 : vector<24x1xf32>
    %cst_26 = arith.constant 9.99999974E-6 : f32
    %88 = vector.broadcast %cst_26 : f32 to vector<24x1xf32>
    %89 = arith.addf %87, %88 : vector<24x1xf32>
    %90 = math.rsqrt %89 : vector<24x1xf32>
    %91 = vector.broadcast %90 : vector<24x1xf32> to vector<24x32xf32>
    %92 = arith.mulf %82, %91 : vector<24x32xf32>
    %93 = vector.broadcast %75 : vector<1x32xf32> to vector<24x32xf32>
    %94 = arith.mulf %92, %93 : vector<24x32xf32>
    %95 = vector.broadcast %76 : vector<1x32xf32> to vector<24x32xf32>
    %96 = arith.addf %94, %95 : vector<24x32xf32>
    %c342 = arith.constant 342 : index
    %c0_27 = arith.constant 0 : index
    %97 = vector.load %arg2[%c342, %c0_27] : memref<1024x128xf32, #tpu.memory_space<vmem>>, vector<32x64xf32>
    %cst_28 = arith.constant dense<0.000000e+00> : vector<24x64xf32>
    %98 = tpu.matmul %96, %97, %cst_28 {dimension_numbers = #tpu.dot_dimension_numbers<[1], [0], [0], [1], [0, 0, 1, 1], [], []>} : vector<24x32xf32>, vector<32x64xf32>, vector<24x64xf32> -> vector<24x64xf32>
    %c374 = arith.constant 374 : index
    %c0_29 = arith.constant 0 : index
    %99 = vector.load %arg2[%c374, %c0_29] : memref<1024x128xf32, #tpu.memory_space<vmem>>, vector<1x64xf32>
    %100 = vector.broadcast %99 : vector<1x64xf32> to vector<24x64xf32>
    %101 = arith.addf %98, %100 : vector<24x64xf32>
    %cst_30 = arith.constant 0.000000e+00 : f32
    %102 = vector.broadcast %cst_30 : f32 to vector<24x64xf32>
    %103 = arith.maximumf %101, %102 : vector<24x64xf32>
    %c375 = arith.constant 375 : index
    %c0_31 = arith.constant 0 : index
    %104 = vector.load %arg2[%c375, %c0_31] : memref<1024x128xf32, #tpu.memory_space<vmem>>, vector<64x32xf32>
    %cst_32 = arith.constant dense<0.000000e+00> : vector<24x32xf32>
    %105 = tpu.matmul %103, %104, %cst_32 {dimension_numbers = #tpu.dot_dimension_numbers<[1], [0], [0], [1], [0, 0, 1, 1], [], []>} : vector<24x64xf32>, vector<64x32xf32>, vector<24x32xf32> -> vector<24x32xf32>
    %c439 = arith.constant 439 : index
    %c0_33 = arith.constant 0 : index
    %106 = vector.load %arg2[%c439, %c0_33] : memref<1024x128xf32, #tpu.memory_space<vmem>>, vector<1x32xf32>
    %107 = vector.broadcast %106 : vector<1x32xf32> to vector<24x32xf32>
    %108 = arith.addf %105, %107 : vector<24x32xf32>
    %109 = arith.addf %96, %108 : vector<24x32xf32>
    %c442 = arith.constant 442 : index
    %c0_34 = arith.constant 0 : index
    %110 = vector.load %arg2[%c442, %c0_34] : memref<1024x128xf32, #tpu.memory_space<vmem>>, vector<1x32xf32>
    %c443 = arith.constant 443 : index
    %c0_35 = arith.constant 0 : index
    %111 = vector.load %arg2[%c443, %c0_35] : memref<1024x128xf32, #tpu.memory_space<vmem>>, vector<1x32xf32>
    %cst_36 = arith.constant dense<0.000000e+00> : vector<24xf32>
    %112 = vector.multi_reduction <add>, %109, %cst_36 [1] : vector<24x32xf32> to vector<24xf32>
    %113 = vector.shape_cast %112 : vector<24xf32> to vector<24x1xf32>
    %cst_37 = arith.constant 3.200000e+01 : f32
    %114 = vector.broadcast %cst_37 : f32 to vector<24x1xf32>
    %115 = arith.divf %113, %114 : vector<24x1xf32>
    %116 = vector.broadcast %115 : vector<24x1xf32> to vector<24x32xf32>
    %117 = arith.subf %109, %116 : vector<24x32xf32>
    %118 = arith.mulf %117, %117 : vector<24x32xf32>
    %cst_38 = arith.constant dense<0.000000e+00> : vector<24xf32>
    %119 = vector.multi_reduction <add>, %118, %cst_38 [1] : vector<24x32xf32> to vector<24xf32>
    %120 = vector.shape_cast %119 : vector<24xf32> to vector<24x1xf32>
    %cst_39 = arith.constant 3.200000e+01 : f32
    %121 = vector.broadcast %cst_39 : f32 to vector<24x1xf32>
    %122 = arith.divf %120, %121 : vector<24x1xf32>
    %cst_40 = arith.constant 9.99999974E-6 : f32
    %123 = vector.broadcast %cst_40 : f32 to vector<24x1xf32>
    %124 = arith.addf %122, %123 : vector<24x1xf32>
    %125 = math.rsqrt %124 : vector<24x1xf32>
    %126 = vector.broadcast %125 : vector<24x1xf32> to vector<24x32xf32>
    %127 = arith.mulf %117, %126 : vector<24x32xf32>
    %128 = vector.broadcast %110 : vector<1x32xf32> to vector<24x32xf32>
    %129 = arith.mulf %127, %128 : vector<24x32xf32>
    %130 = vector.broadcast %111 : vector<1x32xf32> to vector<24x32xf32>
    %131 = arith.addf %129, %130 : vector<24x32xf32>
    %c72_41 = arith.constant 72 : index
    %c0_42 = arith.constant 0 : index
    %132 = vector.load %arg2[%c72_41, %c0_42] : memref<1024x128xf32, #tpu.memory_space<vmem>>, vector<24x24xf32>
    %cst_43 = arith.constant dense<0.000000e+00> : vector<24x32xf32>
    %133 = tpu.matmul %132, %131, %cst_43 {dimension_numbers = #tpu.dot_dimension_numbers<[1], [0], [0], [1], [0, 0, 1, 1], [], []>} : vector<24x24xf32>, vector<24x32xf32>, vector<24x32xf32> -> vector<24x32xf32>
    %c96_44 = arith.constant 96 : index
    %c0_45 = arith.constant 0 : index
    %134 = vector.load %arg2[%c96_44, %c0_45] : memref<1024x128xf32, #tpu.memory_space<vmem>>, vector<24x24xf32>
    %cst_46 = arith.constant dense<0.000000e+00> : vector<24x32xf32>
    %135 = tpu.matmul %134, %131, %cst_46 {dimension_numbers = #tpu.dot_dimension_numbers<[1], [0], [0], [1], [0, 0, 1, 1], [], []>} : vector<24x24xf32>, vector<24x32xf32>, vector<24x32xf32> -> vector<24x32xf32>
    %136 = tpu.concatenate %133, %131, %135 in 1 : vector<24x32xf32>, vector<24x32xf32>, vector<24x32xf32> -> vector<24x96xf32>
    %c612 = arith.constant 612 : index
    %c0_47 = arith.constant 0 : index
    %137 = vector.load %arg2[%c612, %c0_47] : memref<1024x128xf32, #tpu.memory_space<vmem>>, vector<96x32xf32>
    %cst_48 = arith.constant dense<0.000000e+00> : vector<24x32xf32>
    %138 = tpu.matmul %136, %137, %cst_48 {dimension_numbers = #tpu.dot_dimension_numbers<[1], [0], [0], [1], [0, 0, 1, 1], [], []>} : vector<24x96xf32>, vector<96x32xf32>, vector<24x32xf32> -> vector<24x32xf32>
    %c708 = arith.constant 708 : index
    %c0_49 = arith.constant 0 : index
    %139 = vector.load %arg2[%c708, %c0_49] : memref<1024x128xf32, #tpu.memory_space<vmem>>, vector<1x32xf32>
    %140 = vector.broadcast %139 : vector<1x32xf32> to vector<24x32xf32>
    %141 = arith.addf %138, %140 : vector<24x32xf32>
    %c709 = arith.constant 709 : index
    %c0_50 = arith.constant 0 : index
    %142 = vector.load %arg2[%c709, %c0_50] : memref<1024x128xf32, #tpu.memory_space<vmem>>, vector<1x32xf32>
    %143 = vector.broadcast %142 : vector<1x32xf32> to vector<24x32xf32>
    %144 = arith.mulf %141, %143 : vector<24x32xf32>
    %c710 = arith.constant 710 : index
    %c0_51 = arith.constant 0 : index
    %145 = vector.load %arg2[%c710, %c0_51] : memref<1024x128xf32, #tpu.memory_space<vmem>>, vector<1x32xf32>
    %146 = vector.broadcast %145 : vector<1x32xf32> to vector<24x32xf32>
    %147 = arith.addf %144, %146 : vector<24x32xf32>
    %cst_52 = arith.constant 0.000000e+00 : f32
    %148 = vector.broadcast %cst_52 : f32 to vector<24x32xf32>
    %149 = arith.cmpf ogt, %147, %148 : vector<24x32xf32>
    %cst_53 = arith.constant 0.000000e+00 : f32
    %150 = vector.broadcast %cst_53 : f32 to vector<24x32xf32>
    %151 = arith.minimumf %147, %150 : vector<24x32xf32>
    %152 = math.exp %151 : vector<24x32xf32>
    %cst_54 = arith.constant 1.000000e+00 : f32
    %153 = vector.broadcast %cst_54 : f32 to vector<24x32xf32>
    %154 = arith.subf %152, %153 : vector<24x32xf32>
    %155 = arith.select %149, %147, %154 : vector<24x32xi1>, vector<24x32xf32>
    %c188 = arith.constant 188 : index
    %c0_55 = arith.constant 0 : index
    %156 = vector.load %arg2[%c188, %c0_55] : memref<1024x128xf32, #tpu.memory_space<vmem>>, vector<12x24xf32>
    %cst_56 = arith.constant dense<0.000000e+00> : vector<12x32xf32>
    %157 = tpu.matmul %156, %155, %cst_56 {dimension_numbers = #tpu.dot_dimension_numbers<[1], [0], [0], [1], [0, 0, 1, 1], [], []>} : vector<12x24xf32>, vector<24x32xf32>, vector<12x32xf32> -> vector<12x32xf32>
    %c200 = arith.constant 200 : index
    %c0_57 = arith.constant 0 : index
    %158 = vector.load %arg2[%c200, %c0_57] : memref<1024x128xf32, #tpu.memory_space<vmem>>, vector<12x24xf32>
    %cst_58 = arith.constant dense<0.000000e+00> : vector<12x32xf32>
    %159 = tpu.matmul %158, %155, %cst_58 {dimension_numbers = #tpu.dot_dimension_numbers<[1], [0], [0], [1], [0, 0, 1, 1], [], []>} : vector<12x24xf32>, vector<24x32xf32>, vector<12x32xf32> -> vector<12x32xf32>
    %c212 = arith.constant 212 : index
    %c0_59 = arith.constant 0 : index
    %160 = vector.load %arg2[%c212, %c0_59] : memref<1024x128xf32, #tpu.memory_space<vmem>>, vector<12x24xf32>
    %cst_60 = arith.constant dense<0.000000e+00> : vector<12x32xf32>
    %161 = tpu.matmul %160, %155, %cst_60 {dimension_numbers = #tpu.dot_dimension_numbers<[1], [0], [0], [1], [0, 0, 1, 1], [], []>} : vector<12x24xf32>, vector<24x32xf32>, vector<12x32xf32> -> vector<12x32xf32>
    %c224 = arith.constant 224 : index
    %c0_61 = arith.constant 0 : index
    %162 = vector.load %arg2[%c224, %c0_61] : memref<1024x128xf32, #tpu.memory_space<vmem>>, vector<12x1xf32>
    %163 = vector.broadcast %162 : vector<12x1xf32> to vector<12x32xf32>
    %164 = arith.addf %161, %163 : vector<12x32xf32>
    %165 = arith.maximumf %157, %159 : vector<12x32xf32>
    %166 = arith.maximumf %165, %164 : vector<12x32xf32>
    %c120 = arith.constant 120 : index
    %c0_62 = arith.constant 0 : index
    %167 = vector.load %arg2[%c120, %c0_62] : memref<1024x128xf32, #tpu.memory_space<vmem>>, vector<12x12xf32>
    %c444 = arith.constant 444 : index
    %c0_63 = arith.constant 0 : index
    %168 = vector.load %arg2[%c444, %c0_63] : memref<1024x128xf32, #tpu.memory_space<vmem>>, vector<32x96xf32>
    %cst_64 = arith.constant dense<0.000000e+00> : vector<12x96xf32>
    %169 = tpu.matmul %166, %168, %cst_64 {dimension_numbers = #tpu.dot_dimension_numbers<[1], [0], [0], [1], [0, 0, 1, 1], [], []>} : vector<12x32xf32>, vector<32x96xf32>, vector<12x96xf32> -> vector<12x96xf32>
    %c476 = arith.constant 476 : index
    %c0_65 = arith.constant 0 : index
    %170 = vector.load %arg2[%c476, %c0_65] : memref<1024x128xf32, #tpu.memory_space<vmem>>, vector<1x96xf32>
    %171 = vector.broadcast %170 : vector<1x96xf32> to vector<12x96xf32>
    %172 = arith.addf %169, %171 : vector<12x96xf32>
    %173 = vector.extract_strided_slice %172 {offsets = [0, 0], sizes = [12, 8], strides = [1, 1]} : vector<12x96xf32> to vector<12x8xf32>
    %174 = vector.extract_strided_slice %172 {offsets = [0, 8], sizes = [12, 8], strides = [1, 1]} : vector<12x96xf32> to vector<12x8xf32>
    %175 = vector.extract_strided_slice %172 {offsets = [0, 16], sizes = [12, 8], strides = [1, 1]} : vector<12x96xf32> to vector<12x8xf32>
    %176 = vector.extract_strided_slice %172 {offsets = [0, 24], sizes = [12, 8], strides = [1, 1]} : vector<12x96xf32> to vector<12x8xf32>
    %177 = vector.shape_cast %173 : vector<12x8xf32> to vector<1x12x8xf32>
    %178 = vector.shape_cast %174 : vector<12x8xf32> to vector<1x12x8xf32>
    %179 = vector.shape_cast %175 : vector<12x8xf32> to vector<1x12x8xf32>
    %180 = vector.shape_cast %176 : vector<12x8xf32> to vector<1x12x8xf32>
    %181 = tpu.concatenate %177, %178, %179, %180 in 0 : vector<1x12x8xf32>, vector<1x12x8xf32>, vector<1x12x8xf32>, vector<1x12x8xf32> -> vector<4x12x8xf32>
    %182 = vector.extract_strided_slice %172 {offsets = [0, 32], sizes = [12, 8], strides = [1, 1]} : vector<12x96xf32> to vector<12x8xf32>
    %183 = vector.extract_strided_slice %172 {offsets = [0, 40], sizes = [12, 8], strides = [1, 1]} : vector<12x96xf32> to vector<12x8xf32>
    %184 = vector.extract_strided_slice %172 {offsets = [0, 48], sizes = [12, 8], strides = [1, 1]} : vector<12x96xf32> to vector<12x8xf32>
    %185 = vector.extract_strided_slice %172 {offsets = [0, 56], sizes = [12, 8], strides = [1, 1]} : vector<12x96xf32> to vector<12x8xf32>
    %186 = vector.shape_cast %182 : vector<12x8xf32> to vector<1x12x8xf32>
    %187 = vector.shape_cast %183 : vector<12x8xf32> to vector<1x12x8xf32>
    %188 = vector.shape_cast %184 : vector<12x8xf32> to vector<1x12x8xf32>
    %189 = vector.shape_cast %185 : vector<12x8xf32> to vector<1x12x8xf32>
    %190 = tpu.concatenate %186, %187, %188, %189 in 0 : vector<1x12x8xf32>, vector<1x12x8xf32>, vector<1x12x8xf32>, vector<1x12x8xf32> -> vector<4x12x8xf32>
    %191 = vector.extract_strided_slice %172 {offsets = [0, 64], sizes = [12, 8], strides = [1, 1]} : vector<12x96xf32> to vector<12x8xf32>
    %192 = vector.extract_strided_slice %172 {offsets = [0, 72], sizes = [12, 8], strides = [1, 1]} : vector<12x96xf32> to vector<12x8xf32>
    %193 = vector.extract_strided_slice %172 {offsets = [0, 80], sizes = [12, 8], strides = [1, 1]} : vector<12x96xf32> to vector<12x8xf32>
    %194 = vector.extract_strided_slice %172 {offsets = [0, 88], sizes = [12, 8], strides = [1, 1]} : vector<12x96xf32> to vector<12x8xf32>
    %195 = vector.shape_cast %191 : vector<12x8xf32> to vector<1x12x8xf32>
    %196 = vector.shape_cast %192 : vector<12x8xf32> to vector<1x12x8xf32>
    %197 = vector.shape_cast %193 : vector<12x8xf32> to vector<1x12x8xf32>
    %198 = vector.shape_cast %194 : vector<12x8xf32> to vector<1x12x8xf32>
    %199 = tpu.concatenate %195, %196, %197, %198 in 0 : vector<1x12x8xf32>, vector<1x12x8xf32>, vector<1x12x8xf32>, vector<1x12x8xf32> -> vector<4x12x8xf32>
    "tpu.trace_start"() <{level = 10 : i32, message = "hqd,hkd->hqk"}> : () -> ()
    %cst_66 = arith.constant dense<0.000000e+00> : vector<4x12x12xf32>
    %200 = tpu.matmul %181, %190, %cst_66 {dimension_numbers = #tpu.dot_dimension_numbers<[2], [2], [1], [1], [0, 0, 0, 1, 1, 1], [0], [0]>} : vector<4x12x8xf32>, vector<4x12x8xf32>, vector<4x12x12xf32> -> vector<4x12x12xf32>
    "tpu.trace_stop"() : () -> ()
    %cst_67 = arith.constant 0.353553385 : f32
    %201 = vector.broadcast %cst_67 : f32 to vector<4x12x12xf32>
    %202 = arith.mulf %200, %201 : vector<4x12x12xf32>
    %203 = vector.shape_cast %167 : vector<12x12xf32> to vector<1x12x12xf32>
    %204 = vector.broadcast %203 : vector<1x12x12xf32> to vector<4x12x12xf32>
    %205 = arith.addf %202, %204 : vector<4x12x12xf32>
    %cst_68 = arith.constant dense<0xFF800000> : vector<4x12xf32>
    %206 = vector.multi_reduction <maximumf>, %205, %cst_68 [2] : vector<4x12x12xf32> to vector<4x12xf32>
    %207 = vector.shape_cast %206 : vector<4x12xf32> to vector<4x12x1xf32>
    %208 = vector.broadcast %207 : vector<4x12x1xf32> to vector<4x12x12xf32>
    %209 = arith.subf %205, %208 : vector<4x12x12xf32>
    %210 = math.exp %209 : vector<4x12x12xf32>
    %cst_69 = arith.constant dense<0.000000e+00> : vector<4x12xf32>
    %211 = vector.multi_reduction <add>, %210, %cst_69 [2] : vector<4x12x12xf32> to vector<4x12xf32>
    %212 = vector.shape_cast %211 : vector<4x12xf32> to vector<4x12x1xf32>
    %213 = vector.broadcast %212 : vector<4x12x1xf32> to vector<4x12x12xf32>
    %214 = arith.divf %210, %213 : vector<4x12x12xf32>
    "tpu.trace_start"() <{level = 10 : i32, message = "hqk,hkd->hqd"}> : () -> ()
    %cst_70 = arith.constant dense<0.000000e+00> : vector<4x12x8xf32>
    %215 = tpu.matmul %214, %199, %cst_70 {dimension_numbers = #tpu.dot_dimension_numbers<[2], [1], [1], [2], [0, 0, 0, 1, 1, 2], [0], [0]>} : vector<4x12x12xf32>, vector<4x12x8xf32>, vector<4x12x8xf32> -> vector<4x12x8xf32>
    "tpu.trace_stop"() : () -> ()
    %216 = vector.extract_strided_slice %215 {offsets = [0, 0, 0], sizes = [1, 12, 8], strides = [1, 1, 1]} : vector<4x12x8xf32> to vector<1x12x8xf32>
    %217 = vector.shape_cast %216 : vector<1x12x8xf32> to vector<12x8xf32>
    %218 = vector.extract_strided_slice %215 {offsets = [1, 0, 0], sizes = [1, 12, 8], strides = [1, 1, 1]} : vector<4x12x8xf32> to vector<1x12x8xf32>
    %219 = vector.shape_cast %218 : vector<1x12x8xf32> to vector<12x8xf32>
    %220 = vector.extract_strided_slice %215 {offsets = [2, 0, 0], sizes = [1, 12, 8], strides = [1, 1, 1]} : vector<4x12x8xf32> to vector<1x12x8xf32>
    %221 = vector.shape_cast %220 : vector<1x12x8xf32> to vector<12x8xf32>
    %222 = vector.extract_strided_slice %215 {offsets = [3, 0, 0], sizes = [1, 12, 8], strides = [1, 1, 1]} : vector<4x12x8xf32> to vector<1x12x8xf32>
    %223 = vector.shape_cast %222 : vector<1x12x8xf32> to vector<12x8xf32>
    %224 = tpu.concatenate %217, %219, %221, %223 in 1 : vector<12x8xf32>, vector<12x8xf32>, vector<12x8xf32>, vector<12x8xf32> -> vector<12x32xf32>
    %c477 = arith.constant 477 : index
    %c0_71 = arith.constant 0 : index
    %225 = vector.load %arg2[%c477, %c0_71] : memref<1024x128xf32, #tpu.memory_space<vmem>>, vector<32x32xf32>
    %cst_72 = arith.constant dense<0.000000e+00> : vector<12x32xf32>
    %226 = tpu.matmul %224, %225, %cst_72 {dimension_numbers = #tpu.dot_dimension_numbers<[1], [0], [0], [1], [0, 0, 1, 1], [], []>} : vector<12x32xf32>, vector<32x32xf32>, vector<12x32xf32> -> vector<12x32xf32>
    %c509 = arith.constant 509 : index
    %c0_73 = arith.constant 0 : index
    %227 = vector.load %arg2[%c509, %c0_73] : memref<1024x128xf32, #tpu.memory_space<vmem>>, vector<1x32xf32>
    %228 = vector.broadcast %227 : vector<1x32xf32> to vector<12x32xf32>
    %229 = arith.addf %226, %228 : vector<12x32xf32>
    %230 = arith.addf %166, %229 : vector<12x32xf32>
    %c608 = arith.constant 608 : index
    %c0_74 = arith.constant 0 : index
    %231 = vector.load %arg2[%c608, %c0_74] : memref<1024x128xf32, #tpu.memory_space<vmem>>, vector<1x32xf32>
    %c609 = arith.constant 609 : index
    %c0_75 = arith.constant 0 : index
    %232 = vector.load %arg2[%c609, %c0_75] : memref<1024x128xf32, #tpu.memory_space<vmem>>, vector<1x32xf32>
    %cst_76 = arith.constant dense<0.000000e+00> : vector<12xf32>
    %233 = vector.multi_reduction <add>, %230, %cst_76 [1] : vector<12x32xf32> to vector<12xf32>
    %234 = vector.shape_cast %233 : vector<12xf32> to vector<12x1xf32>
    %cst_77 = arith.constant 3.200000e+01 : f32
    %235 = vector.broadcast %cst_77 : f32 to vector<12x1xf32>
    %236 = arith.divf %234, %235 : vector<12x1xf32>
    %237 = vector.broadcast %236 : vector<12x1xf32> to vector<12x32xf32>
    %238 = arith.subf %230, %237 : vector<12x32xf32>
    %239 = arith.mulf %238, %238 : vector<12x32xf32>
    %cst_78 = arith.constant dense<0.000000e+00> : vector<12xf32>
    %240 = vector.multi_reduction <add>, %239, %cst_78 [1] : vector<12x32xf32> to vector<12xf32>
    %241 = vector.shape_cast %240 : vector<12xf32> to vector<12x1xf32>
    %cst_79 = arith.constant 3.200000e+01 : f32
    %242 = vector.broadcast %cst_79 : f32 to vector<12x1xf32>
    %243 = arith.divf %241, %242 : vector<12x1xf32>
    %cst_80 = arith.constant 9.99999974E-6 : f32
    %244 = vector.broadcast %cst_80 : f32 to vector<12x1xf32>
    %245 = arith.addf %243, %244 : vector<12x1xf32>
    %246 = math.rsqrt %245 : vector<12x1xf32>
    %247 = vector.broadcast %246 : vector<12x1xf32> to vector<12x32xf32>
    %248 = arith.mulf %238, %247 : vector<12x32xf32>
    %249 = vector.broadcast %231 : vector<1x32xf32> to vector<12x32xf32>
    %250 = arith.mulf %248, %249 : vector<12x32xf32>
    %251 = vector.broadcast %232 : vector<1x32xf32> to vector<12x32xf32>
    %252 = arith.addf %250, %251 : vector<12x32xf32>
    %c510 = arith.constant 510 : index
    %c0_81 = arith.constant 0 : index
    %253 = vector.load %arg2[%c510, %c0_81] : memref<1024x128xf32, #tpu.memory_space<vmem>>, vector<32x64xf32>
    %cst_82 = arith.constant dense<0.000000e+00> : vector<12x64xf32>
    %254 = tpu.matmul %252, %253, %cst_82 {dimension_numbers = #tpu.dot_dimension_numbers<[1], [0], [0], [1], [0, 0, 1, 1], [], []>} : vector<12x32xf32>, vector<32x64xf32>, vector<12x64xf32> -> vector<12x64xf32>
    %c542 = arith.constant 542 : index
    %c0_83 = arith.constant 0 : index
    %255 = vector.load %arg2[%c542, %c0_83] : memref<1024x128xf32, #tpu.memory_space<vmem>>, vector<1x64xf32>
    %256 = vector.broadcast %255 : vector<1x64xf32> to vector<12x64xf32>
    %257 = arith.addf %254, %256 : vector<12x64xf32>
    %cst_84 = arith.constant 0.000000e+00 : f32
    %258 = vector.broadcast %cst_84 : f32 to vector<12x64xf32>
    %259 = arith.maximumf %257, %258 : vector<12x64xf32>
    %c543 = arith.constant 543 : index
    %c0_85 = arith.constant 0 : index
    %260 = vector.load %arg2[%c543, %c0_85] : memref<1024x128xf32, #tpu.memory_space<vmem>>, vector<64x32xf32>
    %cst_86 = arith.constant dense<0.000000e+00> : vector<12x32xf32>
    %261 = tpu.matmul %259, %260, %cst_86 {dimension_numbers = #tpu.dot_dimension_numbers<[1], [0], [0], [1], [0, 0, 1, 1], [], []>} : vector<12x64xf32>, vector<64x32xf32>, vector<12x32xf32> -> vector<12x32xf32>
    %c607 = arith.constant 607 : index
    %c0_87 = arith.constant 0 : index
    %262 = vector.load %arg2[%c607, %c0_87] : memref<1024x128xf32, #tpu.memory_space<vmem>>, vector<1x32xf32>
    %263 = vector.broadcast %262 : vector<1x32xf32> to vector<12x32xf32>
    %264 = arith.addf %261, %263 : vector<12x32xf32>
    %265 = arith.addf %252, %264 : vector<12x32xf32>
    %c610 = arith.constant 610 : index
    %c0_88 = arith.constant 0 : index
    %266 = vector.load %arg2[%c610, %c0_88] : memref<1024x128xf32, #tpu.memory_space<vmem>>, vector<1x32xf32>
    %c611 = arith.constant 611 : index
    %c0_89 = arith.constant 0 : index
    %267 = vector.load %arg2[%c611, %c0_89] : memref<1024x128xf32, #tpu.memory_space<vmem>>, vector<1x32xf32>
    %cst_90 = arith.constant dense<0.000000e+00> : vector<12xf32>
    %268 = vector.multi_reduction <add>, %265, %cst_90 [1] : vector<12x32xf32> to vector<12xf32>
    %269 = vector.shape_cast %268 : vector<12xf32> to vector<12x1xf32>
    %cst_91 = arith.constant 3.200000e+01 : f32
    %270 = vector.broadcast %cst_91 : f32 to vector<12x1xf32>
    %271 = arith.divf %269, %270 : vector<12x1xf32>
    %272 = vector.broadcast %271 : vector<12x1xf32> to vector<12x32xf32>
    %273 = arith.subf %265, %272 : vector<12x32xf32>
    %274 = arith.mulf %273, %273 : vector<12x32xf32>
    %cst_92 = arith.constant dense<0.000000e+00> : vector<12xf32>
    %275 = vector.multi_reduction <add>, %274, %cst_92 [1] : vector<12x32xf32> to vector<12xf32>
    %276 = vector.shape_cast %275 : vector<12xf32> to vector<12x1xf32>
    %cst_93 = arith.constant 3.200000e+01 : f32
    %277 = vector.broadcast %cst_93 : f32 to vector<12x1xf32>
    %278 = arith.divf %276, %277 : vector<12x1xf32>
    %cst_94 = arith.constant 9.99999974E-6 : f32
    %279 = vector.broadcast %cst_94 : f32 to vector<12x1xf32>
    %280 = arith.addf %278, %279 : vector<12x1xf32>
    %281 = math.rsqrt %280 : vector<12x1xf32>
    %282 = vector.broadcast %281 : vector<12x1xf32> to vector<12x32xf32>
    %283 = arith.mulf %273, %282 : vector<12x32xf32>
    %284 = vector.broadcast %266 : vector<1x32xf32> to vector<12x32xf32>
    %285 = arith.mulf %283, %284 : vector<12x32xf32>
    %286 = vector.broadcast %267 : vector<1x32xf32> to vector<12x32xf32>
    %287 = arith.addf %285, %286 : vector<12x32xf32>
    %c711 = arith.constant 711 : index
    %c0_95 = arith.constant 0 : index
    %288 = vector.load %arg2[%c711, %c0_95] : memref<1024x128xf32, #tpu.memory_space<vmem>>, vector<1x32xf32>
    %c712 = arith.constant 712 : index
    %c0_96 = arith.constant 0 : index
    %289 = vector.load %arg2[%c712, %c0_96] : memref<1024x128xf32, #tpu.memory_space<vmem>>, vector<1x32xf32>
    %cst_97 = arith.constant dense<0.000000e+00> : vector<12xf32>
    %290 = vector.multi_reduction <add>, %287, %cst_97 [1] : vector<12x32xf32> to vector<12xf32>
    %291 = vector.shape_cast %290 : vector<12xf32> to vector<12x1xf32>
    %cst_98 = arith.constant 3.200000e+01 : f32
    %292 = vector.broadcast %cst_98 : f32 to vector<12x1xf32>
    %293 = arith.divf %291, %292 : vector<12x1xf32>
    %294 = vector.broadcast %293 : vector<12x1xf32> to vector<12x32xf32>
    %295 = arith.subf %287, %294 : vector<12x32xf32>
    %296 = arith.mulf %295, %295 : vector<12x32xf32>
    %cst_99 = arith.constant dense<0.000000e+00> : vector<12xf32>
    %297 = vector.multi_reduction <add>, %296, %cst_99 [1] : vector<12x32xf32> to vector<12xf32>
    %298 = vector.shape_cast %297 : vector<12xf32> to vector<12x1xf32>
    %cst_100 = arith.constant 3.200000e+01 : f32
    %299 = vector.broadcast %cst_100 : f32 to vector<12x1xf32>
    %300 = arith.divf %298, %299 : vector<12x1xf32>
    %cst_101 = arith.constant 9.99999974E-6 : f32
    %301 = vector.broadcast %cst_101 : f32 to vector<12x1xf32>
    %302 = arith.addf %300, %301 : vector<12x1xf32>
    %303 = math.rsqrt %302 : vector<12x1xf32>
    %304 = vector.broadcast %303 : vector<12x1xf32> to vector<12x32xf32>
    %305 = arith.mulf %295, %304 : vector<12x32xf32>
    %306 = vector.broadcast %288 : vector<1x32xf32> to vector<12x32xf32>
    %307 = arith.mulf %305, %306 : vector<12x32xf32>
    %308 = vector.broadcast %289 : vector<1x32xf32> to vector<12x32xf32>
    %309 = arith.addf %307, %308 : vector<12x32xf32>
    %c0_102 = arith.constant 0 : index
    %c0_103 = arith.constant 0 : index
    %310 = vector.load %arg1[%c0_102, %c0_103] : memref<16x8xf32, #tpu.memory_space<vmem>>, vector<16x8xf32>
    %c40 = arith.constant 40 : index
    %c0_104 = arith.constant 0 : index
    %311 = vector.load %arg2[%c40, %c0_104] : memref<1024x128xf32, #tpu.memory_space<vmem>>, vector<16x16xf32>
    %c56 = arith.constant 56 : index
    %c0_105 = arith.constant 0 : index
    %312 = vector.load %arg2[%c56, %c0_105] : memref<1024x128xf32, #tpu.memory_space<vmem>>, vector<16x16xf32>
    %c24 = arith.constant 24 : index
    %c0_106 = arith.constant 0 : index
    %313 = vector.load %arg2[%c24, %c0_106] : memref<1024x128xf32, #tpu.memory_space<vmem>>, vector<16x32xf32>
    %314 = vector.extract_strided_slice %310 {offsets = [0, 0], sizes = [16, 4], strides = [1, 1]} : vector<16x8xf32> to vector<16x4xf32>
    %cst_107 = arith.constant dense<0.000000e+00> : vector<16x4xf32>
    %315 = tpu.matmul %311, %314, %cst_107 {dimension_numbers = #tpu.dot_dimension_numbers<[1], [0], [0], [1], [0, 0, 1, 1], [], []>} : vector<16x16xf32>, vector<16x4xf32>, vector<16x4xf32> -> vector<16x4xf32>
    %cst_108 = arith.constant dense<0.000000e+00> : vector<16x4xf32>
    %316 = tpu.matmul %312, %314, %cst_108 {dimension_numbers = #tpu.dot_dimension_numbers<[1], [0], [0], [1], [0, 0, 1, 1], [], []>} : vector<16x16xf32>, vector<16x4xf32>, vector<16x4xf32> -> vector<16x4xf32>
    %317 = tpu.concatenate %315, %310, %316 in 1 : vector<16x4xf32>, vector<16x8xf32>, vector<16x4xf32> -> vector<16x16xf32>
    %c260 = arith.constant 260 : index
    %c0_109 = arith.constant 0 : index
    %318 = vector.load %arg2[%c260, %c0_109] : memref<1024x128xf32, #tpu.memory_space<vmem>>, vector<16x32xf32>
    %cst_110 = arith.constant dense<0.000000e+00> : vector<16x32xf32>
    %319 = tpu.matmul %317, %318, %cst_110 {dimension_numbers = #tpu.dot_dimension_numbers<[1], [0], [0], [1], [0, 0, 1, 1], [], []>} : vector<16x16xf32>, vector<16x32xf32>, vector<16x32xf32> -> vector<16x32xf32>
    %320 = arith.addf %319, %313 : vector<16x32xf32>
    %c156 = arith.constant 156 : index
    %c0_111 = arith.constant 0 : index
    %321 = vector.load %arg2[%c156, %c0_111] : memref<1024x128xf32, #tpu.memory_space<vmem>>, vector<16x16xf32>
    %c713 = arith.constant 713 : index
    %c0_112 = arith.constant 0 : index
    %322 = vector.load %arg2[%c713, %c0_112] : memref<1024x128xf32, #tpu.memory_space<vmem>>, vector<32x96xf32>
    %cst_113 = arith.constant dense<0.000000e+00> : vector<16x96xf32>
    %323 = tpu.matmul %320, %322, %cst_113 {dimension_numbers = #tpu.dot_dimension_numbers<[1], [0], [0], [1], [0, 0, 1, 1], [], []>} : vector<16x32xf32>, vector<32x96xf32>, vector<16x96xf32> -> vector<16x96xf32>
    %c745 = arith.constant 745 : index
    %c0_114 = arith.constant 0 : index
    %324 = vector.load %arg2[%c745, %c0_114] : memref<1024x128xf32, #tpu.memory_space<vmem>>, vector<1x96xf32>
    %325 = vector.broadcast %324 : vector<1x96xf32> to vector<16x96xf32>
    %326 = arith.addf %323, %325 : vector<16x96xf32>
    %327 = vector.extract_strided_slice %326 {offsets = [0, 0], sizes = [16, 8], strides = [1, 1]} : vector<16x96xf32> to vector<16x8xf32>
    %328 = vector.extract_strided_slice %326 {offsets = [0, 8], sizes = [16, 8], strides = [1, 1]} : vector<16x96xf32> to vector<16x8xf32>
    %329 = vector.extract_strided_slice %326 {offsets = [0, 16], sizes = [16, 8], strides = [1, 1]} : vector<16x96xf32> to vector<16x8xf32>
    %330 = vector.extract_strided_slice %326 {offsets = [0, 24], sizes = [16, 8], strides = [1, 1]} : vector<16x96xf32> to vector<16x8xf32>
    %331 = vector.shape_cast %327 : vector<16x8xf32> to vector<1x16x8xf32>
    %332 = vector.shape_cast %328 : vector<16x8xf32> to vector<1x16x8xf32>
    %333 = vector.shape_cast %329 : vector<16x8xf32> to vector<1x16x8xf32>
    %334 = vector.shape_cast %330 : vector<16x8xf32> to vector<1x16x8xf32>
    %335 = tpu.concatenate %331, %332, %333, %334 in 0 : vector<1x16x8xf32>, vector<1x16x8xf32>, vector<1x16x8xf32>, vector<1x16x8xf32> -> vector<4x16x8xf32>
    %336 = vector.extract_strided_slice %326 {offsets = [0, 32], sizes = [16, 8], strides = [1, 1]} : vector<16x96xf32> to vector<16x8xf32>
    %337 = vector.extract_strided_slice %326 {offsets = [0, 40], sizes = [16, 8], strides = [1, 1]} : vector<16x96xf32> to vector<16x8xf32>
    %338 = vector.extract_strided_slice %326 {offsets = [0, 48], sizes = [16, 8], strides = [1, 1]} : vector<16x96xf32> to vector<16x8xf32>
    %339 = vector.extract_strided_slice %326 {offsets = [0, 56], sizes = [16, 8], strides = [1, 1]} : vector<16x96xf32> to vector<16x8xf32>
    %340 = vector.shape_cast %336 : vector<16x8xf32> to vector<1x16x8xf32>
    %341 = vector.shape_cast %337 : vector<16x8xf32> to vector<1x16x8xf32>
    %342 = vector.shape_cast %338 : vector<16x8xf32> to vector<1x16x8xf32>
    %343 = vector.shape_cast %339 : vector<16x8xf32> to vector<1x16x8xf32>
    %344 = tpu.concatenate %340, %341, %342, %343 in 0 : vector<1x16x8xf32>, vector<1x16x8xf32>, vector<1x16x8xf32>, vector<1x16x8xf32> -> vector<4x16x8xf32>
    %345 = vector.extract_strided_slice %326 {offsets = [0, 64], sizes = [16, 8], strides = [1, 1]} : vector<16x96xf32> to vector<16x8xf32>
    %346 = vector.extract_strided_slice %326 {offsets = [0, 72], sizes = [16, 8], strides = [1, 1]} : vector<16x96xf32> to vector<16x8xf32>
    %347 = vector.extract_strided_slice %326 {offsets = [0, 80], sizes = [16, 8], strides = [1, 1]} : vector<16x96xf32> to vector<16x8xf32>
    %348 = vector.extract_strided_slice %326 {offsets = [0, 88], sizes = [16, 8], strides = [1, 1]} : vector<16x96xf32> to vector<16x8xf32>
    %349 = vector.shape_cast %345 : vector<16x8xf32> to vector<1x16x8xf32>
    %350 = vector.shape_cast %346 : vector<16x8xf32> to vector<1x16x8xf32>
    %351 = vector.shape_cast %347 : vector<16x8xf32> to vector<1x16x8xf32>
    %352 = vector.shape_cast %348 : vector<16x8xf32> to vector<1x16x8xf32>
    %353 = tpu.concatenate %349, %350, %351, %352 in 0 : vector<1x16x8xf32>, vector<1x16x8xf32>, vector<1x16x8xf32>, vector<1x16x8xf32> -> vector<4x16x8xf32>
    "tpu.trace_start"() <{level = 10 : i32, message = "hqd,hkd->hqk"}> : () -> ()
    %cst_115 = arith.constant dense<0.000000e+00> : vector<4x16x16xf32>
    %354 = tpu.matmul %335, %344, %cst_115 {dimension_numbers = #tpu.dot_dimension_numbers<[2], [2], [1], [1], [0, 0, 0, 1, 1, 1], [0], [0]>} : vector<4x16x8xf32>, vector<4x16x8xf32>, vector<4x16x16xf32> -> vector<4x16x16xf32>
    "tpu.trace_stop"() : () -> ()
    %cst_116 = arith.constant 0.353553385 : f32
    %355 = vector.broadcast %cst_116 : f32 to vector<4x16x16xf32>
    %356 = arith.mulf %354, %355 : vector<4x16x16xf32>
    %357 = vector.shape_cast %321 : vector<16x16xf32> to vector<1x16x16xf32>
    %358 = vector.broadcast %357 : vector<1x16x16xf32> to vector<4x16x16xf32>
    %359 = arith.addf %356, %358 : vector<4x16x16xf32>
    %cst_117 = arith.constant dense<0xFF800000> : vector<4x16xf32>
    %360 = vector.multi_reduction <maximumf>, %359, %cst_117 [2] : vector<4x16x16xf32> to vector<4x16xf32>
    %361 = vector.shape_cast %360 : vector<4x16xf32> to vector<4x16x1xf32>
    %362 = vector.broadcast %361 : vector<4x16x1xf32> to vector<4x16x16xf32>
    %363 = arith.subf %359, %362 : vector<4x16x16xf32>
    %364 = math.exp %363 : vector<4x16x16xf32>
    %cst_118 = arith.constant dense<0.000000e+00> : vector<4x16xf32>
    %365 = vector.multi_reduction <add>, %364, %cst_118 [2] : vector<4x16x16xf32> to vector<4x16xf32>
    %366 = vector.shape_cast %365 : vector<4x16xf32> to vector<4x16x1xf32>
    %367 = vector.broadcast %366 : vector<4x16x1xf32> to vector<4x16x16xf32>
    %368 = arith.divf %364, %367 : vector<4x16x16xf32>
    "tpu.trace_start"() <{level = 10 : i32, message = "hqk,hkd->hqd"}> : () -> ()
    %cst_119 = arith.constant dense<0.000000e+00> : vector<4x16x8xf32>
    %369 = tpu.matmul %368, %353, %cst_119 {dimension_numbers = #tpu.dot_dimension_numbers<[2], [1], [1], [2], [0, 0, 0, 1, 1, 2], [0], [0]>} : vector<4x16x16xf32>, vector<4x16x8xf32>, vector<4x16x8xf32> -> vector<4x16x8xf32>
    "tpu.trace_stop"() : () -> ()
    %370 = vector.extract_strided_slice %369 {offsets = [0, 0, 0], sizes = [1, 16, 8], strides = [1, 1, 1]} : vector<4x16x8xf32> to vector<1x16x8xf32>
    %371 = vector.shape_cast %370 : vector<1x16x8xf32> to vector<16x8xf32>
    %372 = vector.extract_strided_slice %369 {offsets = [1, 0, 0], sizes = [1, 16, 8], strides = [1, 1, 1]} : vector<4x16x8xf32> to vector<1x16x8xf32>
    %373 = vector.shape_cast %372 : vector<1x16x8xf32> to vector<16x8xf32>
    %374 = vector.extract_strided_slice %369 {offsets = [2, 0, 0], sizes = [1, 16, 8], strides = [1, 1, 1]} : vector<4x16x8xf32> to vector<1x16x8xf32>
    %375 = vector.shape_cast %374 : vector<1x16x8xf32> to vector<16x8xf32>
    %376 = vector.extract_strided_slice %369 {offsets = [3, 0, 0], sizes = [1, 16, 8], strides = [1, 1, 1]} : vector<4x16x8xf32> to vector<1x16x8xf32>
    %377 = vector.shape_cast %376 : vector<1x16x8xf32> to vector<16x8xf32>
    %378 = tpu.concatenate %371, %373, %375, %377 in 1 : vector<16x8xf32>, vector<16x8xf32>, vector<16x8xf32>, vector<16x8xf32> -> vector<16x32xf32>
    %c746 = arith.constant 746 : index
    %c0_120 = arith.constant 0 : index
    %379 = vector.load %arg2[%c746, %c0_120] : memref<1024x128xf32, #tpu.memory_space<vmem>>, vector<32x32xf32>
    %cst_121 = arith.constant dense<0.000000e+00> : vector<16x32xf32>
    %380 = tpu.matmul %378, %379, %cst_121 {dimension_numbers = #tpu.dot_dimension_numbers<[1], [0], [0], [1], [0, 0, 1, 1], [], []>} : vector<16x32xf32>, vector<32x32xf32>, vector<16x32xf32> -> vector<16x32xf32>
    %c778 = arith.constant 778 : index
    %c0_122 = arith.constant 0 : index
    %381 = vector.load %arg2[%c778, %c0_122] : memref<1024x128xf32, #tpu.memory_space<vmem>>, vector<1x32xf32>
    %382 = vector.broadcast %381 : vector<1x32xf32> to vector<16x32xf32>
    %383 = arith.addf %380, %382 : vector<16x32xf32>
    %384 = arith.addf %320, %383 : vector<16x32xf32>
    %c976 = arith.constant 976 : index
    %c0_123 = arith.constant 0 : index
    %385 = vector.load %arg2[%c976, %c0_123] : memref<1024x128xf32, #tpu.memory_space<vmem>>, vector<1x32xf32>
    %c977 = arith.constant 977 : index
    %c0_124 = arith.constant 0 : index
    %386 = vector.load %arg2[%c977, %c0_124] : memref<1024x128xf32, #tpu.memory_space<vmem>>, vector<1x32xf32>
    %cst_125 = arith.constant dense<0.000000e+00> : vector<16xf32>
    %387 = vector.multi_reduction <add>, %384, %cst_125 [1] : vector<16x32xf32> to vector<16xf32>
    %388 = vector.shape_cast %387 : vector<16xf32> to vector<16x1xf32>
    %cst_126 = arith.constant 3.200000e+01 : f32
    %389 = vector.broadcast %cst_126 : f32 to vector<16x1xf32>
    %390 = arith.divf %388, %389 : vector<16x1xf32>
    %391 = vector.broadcast %390 : vector<16x1xf32> to vector<16x32xf32>
    %392 = arith.subf %384, %391 : vector<16x32xf32>
    %393 = arith.mulf %392, %392 : vector<16x32xf32>
    %cst_127 = arith.constant dense<0.000000e+00> : vector<16xf32>
    %394 = vector.multi_reduction <add>, %393, %cst_127 [1] : vector<16x32xf32> to vector<16xf32>
    %395 = vector.shape_cast %394 : vector<16xf32> to vector<16x1xf32>
    %cst_128 = arith.constant 3.200000e+01 : f32
    %396 = vector.broadcast %cst_128 : f32 to vector<16x1xf32>
    %397 = arith.divf %395, %396 : vector<16x1xf32>
    %cst_129 = arith.constant 9.99999974E-6 : f32
    %398 = vector.broadcast %cst_129 : f32 to vector<16x1xf32>
    %399 = arith.addf %397, %398 : vector<16x1xf32>
    %400 = math.rsqrt %399 : vector<16x1xf32>
    %401 = vector.broadcast %400 : vector<16x1xf32> to vector<16x32xf32>
    %402 = arith.mulf %392, %401 : vector<16x32xf32>
    %403 = vector.broadcast %385 : vector<1x32xf32> to vector<16x32xf32>
    %404 = arith.mulf %402, %403 : vector<16x32xf32>
    %405 = vector.broadcast %386 : vector<1x32xf32> to vector<16x32xf32>
    %406 = arith.addf %404, %405 : vector<16x32xf32>
    %c172 = arith.constant 172 : index
    %c0_130 = arith.constant 0 : index
    %407 = vector.load %arg2[%c172, %c0_130] : memref<1024x128xf32, #tpu.memory_space<vmem>>, vector<16x12xf32>
    %c779 = arith.constant 779 : index
    %c0_131 = arith.constant 0 : index
    %408 = vector.load %arg2[%c779, %c0_131] : memref<1024x128xf32, #tpu.memory_space<vmem>>, vector<32x32xf32>
    %cst_132 = arith.constant dense<0.000000e+00> : vector<16x32xf32>
    %409 = tpu.matmul %406, %408, %cst_132 {dimension_numbers = #tpu.dot_dimension_numbers<[1], [0], [0], [1], [0, 0, 1, 1], [], []>} : vector<16x32xf32>, vector<32x32xf32>, vector<16x32xf32> -> vector<16x32xf32>
    %c811 = arith.constant 811 : index
    %c0_133 = arith.constant 0 : index
    %410 = vector.load %arg2[%c811, %c0_133] : memref<1024x128xf32, #tpu.memory_space<vmem>>, vector<1x32xf32>
    %411 = vector.broadcast %410 : vector<1x32xf32> to vector<16x32xf32>
    %412 = arith.addf %409, %411 : vector<16x32xf32>
    %c812 = arith.constant 812 : index
    %c0_134 = arith.constant 0 : index
    %413 = vector.load %arg2[%c812, %c0_134] : memref<1024x128xf32, #tpu.memory_space<vmem>>, vector<32x64xf32>
    %cst_135 = arith.constant dense<0.000000e+00> : vector<12x64xf32>
    %414 = tpu.matmul %309, %413, %cst_135 {dimension_numbers = #tpu.dot_dimension_numbers<[1], [0], [0], [1], [0, 0, 1, 1], [], []>} : vector<12x32xf32>, vector<32x64xf32>, vector<12x64xf32> -> vector<12x64xf32>
    %c844 = arith.constant 844 : index
    %c0_136 = arith.constant 0 : index
    %415 = vector.load %arg2[%c844, %c0_136] : memref<1024x128xf32, #tpu.memory_space<vmem>>, vector<1x64xf32>
    %416 = vector.broadcast %415 : vector<1x64xf32> to vector<12x64xf32>
    %417 = arith.addf %414, %416 : vector<12x64xf32>
    %418 = vector.extract_strided_slice %412 {offsets = [0, 0], sizes = [16, 8], strides = [1, 1]} : vector<16x32xf32> to vector<16x8xf32>
    %419 = vector.extract_strided_slice %412 {offsets = [0, 8], sizes = [16, 8], strides = [1, 1]} : vector<16x32xf32> to vector<16x8xf32>
    %420 = vector.extract_strided_slice %412 {offsets = [0, 16], sizes = [16, 8], strides = [1, 1]} : vector<16x32xf32> to vector<16x8xf32>
    %421 = vector.extract_strided_slice %412 {offsets = [0, 24], sizes = [16, 8], strides = [1, 1]} : vector<16x32xf32> to vector<16x8xf32>
    %422 = vector.shape_cast %418 : vector<16x8xf32> to vector<1x16x8xf32>
    %423 = vector.shape_cast %419 : vector<16x8xf32> to vector<1x16x8xf32>
    %424 = vector.shape_cast %420 : vector<16x8xf32> to vector<1x16x8xf32>
    %425 = vector.shape_cast %421 : vector<16x8xf32> to vector<1x16x8xf32>
    %426 = tpu.concatenate %422, %423, %424, %425 in 0 : vector<1x16x8xf32>, vector<1x16x8xf32>, vector<1x16x8xf32>, vector<1x16x8xf32> -> vector<4x16x8xf32>
    %427 = vector.extract_strided_slice %417 {offsets = [0, 0], sizes = [12, 8], strides = [1, 1]} : vector<12x64xf32> to vector<12x8xf32>
    %428 = vector.extract_strided_slice %417 {offsets = [0, 8], sizes = [12, 8], strides = [1, 1]} : vector<12x64xf32> to vector<12x8xf32>
    %429 = vector.extract_strided_slice %417 {offsets = [0, 16], sizes = [12, 8], strides = [1, 1]} : vector<12x64xf32> to vector<12x8xf32>
    %430 = vector.extract_strided_slice %417 {offsets = [0, 24], sizes = [12, 8], strides = [1, 1]} : vector<12x64xf32> to vector<12x8xf32>
    %431 = vector.shape_cast %427 : vector<12x8xf32> to vector<1x12x8xf32>
    %432 = vector.shape_cast %428 : vector<12x8xf32> to vector<1x12x8xf32>
    %433 = vector.shape_cast %429 : vector<12x8xf32> to vector<1x12x8xf32>
    %434 = vector.shape_cast %430 : vector<12x8xf32> to vector<1x12x8xf32>
    %435 = tpu.concatenate %431, %432, %433, %434 in 0 : vector<1x12x8xf32>, vector<1x12x8xf32>, vector<1x12x8xf32>, vector<1x12x8xf32> -> vector<4x12x8xf32>
    %436 = vector.extract_strided_slice %417 {offsets = [0, 32], sizes = [12, 8], strides = [1, 1]} : vector<12x64xf32> to vector<12x8xf32>
    %437 = vector.extract_strided_slice %417 {offsets = [0, 40], sizes = [12, 8], strides = [1, 1]} : vector<12x64xf32> to vector<12x8xf32>
    %438 = vector.extract_strided_slice %417 {offsets = [0, 48], sizes = [12, 8], strides = [1, 1]} : vector<12x64xf32> to vector<12x8xf32>
    %439 = vector.extract_strided_slice %417 {offsets = [0, 56], sizes = [12, 8], strides = [1, 1]} : vector<12x64xf32> to vector<12x8xf32>
    %440 = vector.shape_cast %436 : vector<12x8xf32> to vector<1x12x8xf32>
    %441 = vector.shape_cast %437 : vector<12x8xf32> to vector<1x12x8xf32>
    %442 = vector.shape_cast %438 : vector<12x8xf32> to vector<1x12x8xf32>
    %443 = vector.shape_cast %439 : vector<12x8xf32> to vector<1x12x8xf32>
    %444 = tpu.concatenate %440, %441, %442, %443 in 0 : vector<1x12x8xf32>, vector<1x12x8xf32>, vector<1x12x8xf32>, vector<1x12x8xf32> -> vector<4x12x8xf32>
    "tpu.trace_start"() <{level = 10 : i32, message = "hqd,hkd->hqk"}> : () -> ()
    %cst_137 = arith.constant dense<0.000000e+00> : vector<4x16x12xf32>
    %445 = tpu.matmul %426, %435, %cst_137 {dimension_numbers = #tpu.dot_dimension_numbers<[2], [2], [1], [1], [0, 0, 0, 1, 1, 1], [0], [0]>} : vector<4x16x8xf32>, vector<4x12x8xf32>, vector<4x16x12xf32> -> vector<4x16x12xf32>
    "tpu.trace_stop"() : () -> ()
    %cst_138 = arith.constant 0.353553385 : f32
    %446 = vector.broadcast %cst_138 : f32 to vector<4x16x12xf32>
    %447 = arith.mulf %445, %446 : vector<4x16x12xf32>
    %448 = vector.shape_cast %407 : vector<16x12xf32> to vector<1x16x12xf32>
    %449 = vector.broadcast %448 : vector<1x16x12xf32> to vector<4x16x12xf32>
    %450 = arith.addf %447, %449 : vector<4x16x12xf32>
    %cst_139 = arith.constant dense<0xFF800000> : vector<4x16xf32>
    %451 = vector.multi_reduction <maximumf>, %450, %cst_139 [2] : vector<4x16x12xf32> to vector<4x16xf32>
    %452 = vector.shape_cast %451 : vector<4x16xf32> to vector<4x16x1xf32>
    %453 = vector.broadcast %452 : vector<4x16x1xf32> to vector<4x16x12xf32>
    %454 = arith.subf %450, %453 : vector<4x16x12xf32>
    %455 = math.exp %454 : vector<4x16x12xf32>
    %cst_140 = arith.constant dense<0.000000e+00> : vector<4x16xf32>
    %456 = vector.multi_reduction <add>, %455, %cst_140 [2] : vector<4x16x12xf32> to vector<4x16xf32>
    %457 = vector.shape_cast %456 : vector<4x16xf32> to vector<4x16x1xf32>
    %458 = vector.broadcast %457 : vector<4x16x1xf32> to vector<4x16x12xf32>
    %459 = arith.divf %455, %458 : vector<4x16x12xf32>
    "tpu.trace_start"() <{level = 10 : i32, message = "hqk,hkd->hqd"}> : () -> ()
    %cst_141 = arith.constant dense<0.000000e+00> : vector<4x16x8xf32>
    %460 = tpu.matmul %459, %444, %cst_141 {dimension_numbers = #tpu.dot_dimension_numbers<[2], [1], [1], [2], [0, 0, 0, 1, 1, 2], [0], [0]>} : vector<4x16x12xf32>, vector<4x12x8xf32>, vector<4x16x8xf32> -> vector<4x16x8xf32>
    "tpu.trace_stop"() : () -> ()
    %461 = vector.extract_strided_slice %460 {offsets = [0, 0, 0], sizes = [1, 16, 8], strides = [1, 1, 1]} : vector<4x16x8xf32> to vector<1x16x8xf32>
    %462 = vector.shape_cast %461 : vector<1x16x8xf32> to vector<16x8xf32>
    %463 = vector.extract_strided_slice %460 {offsets = [1, 0, 0], sizes = [1, 16, 8], strides = [1, 1, 1]} : vector<4x16x8xf32> to vector<1x16x8xf32>
    %464 = vector.shape_cast %463 : vector<1x16x8xf32> to vector<16x8xf32>
    %465 = vector.extract_strided_slice %460 {offsets = [2, 0, 0], sizes = [1, 16, 8], strides = [1, 1, 1]} : vector<4x16x8xf32> to vector<1x16x8xf32>
    %466 = vector.shape_cast %465 : vector<1x16x8xf32> to vector<16x8xf32>
    %467 = vector.extract_strided_slice %460 {offsets = [3, 0, 0], sizes = [1, 16, 8], strides = [1, 1, 1]} : vector<4x16x8xf32> to vector<1x16x8xf32>
    %468 = vector.shape_cast %467 : vector<1x16x8xf32> to vector<16x8xf32>
    %469 = tpu.concatenate %462, %464, %466, %468 in 1 : vector<16x8xf32>, vector<16x8xf32>, vector<16x8xf32>, vector<16x8xf32> -> vector<16x32xf32>
    %c845 = arith.constant 845 : index
    %c0_142 = arith.constant 0 : index
    %470 = vector.load %arg2[%c845, %c0_142] : memref<1024x128xf32, #tpu.memory_space<vmem>>, vector<32x32xf32>
    %cst_143 = arith.constant dense<0.000000e+00> : vector<16x32xf32>
    %471 = tpu.matmul %469, %470, %cst_143 {dimension_numbers = #tpu.dot_dimension_numbers<[1], [0], [0], [1], [0, 0, 1, 1], [], []>} : vector<16x32xf32>, vector<32x32xf32>, vector<16x32xf32> -> vector<16x32xf32>
    %c877 = arith.constant 877 : index
    %c0_144 = arith.constant 0 : index
    %472 = vector.load %arg2[%c877, %c0_144] : memref<1024x128xf32, #tpu.memory_space<vmem>>, vector<1x32xf32>
    %473 = vector.broadcast %472 : vector<1x32xf32> to vector<16x32xf32>
    %474 = arith.addf %471, %473 : vector<16x32xf32>
    %475 = arith.addf %406, %474 : vector<16x32xf32>
    %c978 = arith.constant 978 : index
    %c0_145 = arith.constant 0 : index
    %476 = vector.load %arg2[%c978, %c0_145] : memref<1024x128xf32, #tpu.memory_space<vmem>>, vector<1x32xf32>
    %c979 = arith.constant 979 : index
    %c0_146 = arith.constant 0 : index
    %477 = vector.load %arg2[%c979, %c0_146] : memref<1024x128xf32, #tpu.memory_space<vmem>>, vector<1x32xf32>
    %cst_147 = arith.constant dense<0.000000e+00> : vector<16xf32>
    %478 = vector.multi_reduction <add>, %475, %cst_147 [1] : vector<16x32xf32> to vector<16xf32>
    %479 = vector.shape_cast %478 : vector<16xf32> to vector<16x1xf32>
    %cst_148 = arith.constant 3.200000e+01 : f32
    %480 = vector.broadcast %cst_148 : f32 to vector<16x1xf32>
    %481 = arith.divf %479, %480 : vector<16x1xf32>
    %482 = vector.broadcast %481 : vector<16x1xf32> to vector<16x32xf32>
    %483 = arith.subf %475, %482 : vector<16x32xf32>
    %484 = arith.mulf %483, %483 : vector<16x32xf32>
    %cst_149 = arith.constant dense<0.000000e+00> : vector<16xf32>
    %485 = vector.multi_reduction <add>, %484, %cst_149 [1] : vector<16x32xf32> to vector<16xf32>
    %486 = vector.shape_cast %485 : vector<16xf32> to vector<16x1xf32>
    %cst_150 = arith.constant 3.200000e+01 : f32
    %487 = vector.broadcast %cst_150 : f32 to vector<16x1xf32>
    %488 = arith.divf %486, %487 : vector<16x1xf32>
    %cst_151 = arith.constant 9.99999974E-6 : f32
    %489 = vector.broadcast %cst_151 : f32 to vector<16x1xf32>
    %490 = arith.addf %488, %489 : vector<16x1xf32>
    %491 = math.rsqrt %490 : vector<16x1xf32>
    %492 = vector.broadcast %491 : vector<16x1xf32> to vector<16x32xf32>
    %493 = arith.mulf %483, %492 : vector<16x32xf32>
    %494 = vector.broadcast %476 : vector<1x32xf32> to vector<16x32xf32>
    %495 = arith.mulf %493, %494 : vector<16x32xf32>
    %496 = vector.broadcast %477 : vector<1x32xf32> to vector<16x32xf32>
    %497 = arith.addf %495, %496 : vector<16x32xf32>
    %c878 = arith.constant 878 : index
    %c0_152 = arith.constant 0 : index
    %498 = vector.load %arg2[%c878, %c0_152] : memref<1024x128xf32, #tpu.memory_space<vmem>>, vector<32x64xf32>
    %cst_153 = arith.constant dense<0.000000e+00> : vector<16x64xf32>
    %499 = tpu.matmul %497, %498, %cst_153 {dimension_numbers = #tpu.dot_dimension_numbers<[1], [0], [0], [1], [0, 0, 1, 1], [], []>} : vector<16x32xf32>, vector<32x64xf32>, vector<16x64xf32> -> vector<16x64xf32>
    %c910 = arith.constant 910 : index
    %c0_154 = arith.constant 0 : index
    %500 = vector.load %arg2[%c910, %c0_154] : memref<1024x128xf32, #tpu.memory_space<vmem>>, vector<1x64xf32>
    %501 = vector.broadcast %500 : vector<1x64xf32> to vector<16x64xf32>
    %502 = arith.addf %499, %501 : vector<16x64xf32>
    %cst_155 = arith.constant 0.000000e+00 : f32
    %503 = vector.broadcast %cst_155 : f32 to vector<16x64xf32>
    %504 = arith.maximumf %502, %503 : vector<16x64xf32>
    %c911 = arith.constant 911 : index
    %c0_156 = arith.constant 0 : index
    %505 = vector.load %arg2[%c911, %c0_156] : memref<1024x128xf32, #tpu.memory_space<vmem>>, vector<64x32xf32>
    %cst_157 = arith.constant dense<0.000000e+00> : vector<16x32xf32>
    %506 = tpu.matmul %504, %505, %cst_157 {dimension_numbers = #tpu.dot_dimension_numbers<[1], [0], [0], [1], [0, 0, 1, 1], [], []>} : vector<16x64xf32>, vector<64x32xf32>, vector<16x32xf32> -> vector<16x32xf32>
    %c975 = arith.constant 975 : index
    %c0_158 = arith.constant 0 : index
    %507 = vector.load %arg2[%c975, %c0_158] : memref<1024x128xf32, #tpu.memory_space<vmem>>, vector<1x32xf32>
    %508 = vector.broadcast %507 : vector<1x32xf32> to vector<16x32xf32>
    %509 = arith.addf %506, %508 : vector<16x32xf32>
    %510 = arith.addf %497, %509 : vector<16x32xf32>
    %c980 = arith.constant 980 : index
    %c0_159 = arith.constant 0 : index
    %511 = vector.load %arg2[%c980, %c0_159] : memref<1024x128xf32, #tpu.memory_space<vmem>>, vector<1x32xf32>
    %c981 = arith.constant 981 : index
    %c0_160 = arith.constant 0 : index
    %512 = vector.load %arg2[%c981, %c0_160] : memref<1024x128xf32, #tpu.memory_space<vmem>>, vector<1x32xf32>
    %cst_161 = arith.constant dense<0.000000e+00> : vector<16xf32>
    %513 = vector.multi_reduction <add>, %510, %cst_161 [1] : vector<16x32xf32> to vector<16xf32>
    %514 = vector.shape_cast %513 : vector<16xf32> to vector<16x1xf32>
    %cst_162 = arith.constant 3.200000e+01 : f32
    %515 = vector.broadcast %cst_162 : f32 to vector<16x1xf32>
    %516 = arith.divf %514, %515 : vector<16x1xf32>
    %517 = vector.broadcast %516 : vector<16x1xf32> to vector<16x32xf32>
    %518 = arith.subf %510, %517 : vector<16x32xf32>
    %519 = arith.mulf %518, %518 : vector<16x32xf32>
    %cst_163 = arith.constant dense<0.000000e+00> : vector<16xf32>
    %520 = vector.multi_reduction <add>, %519, %cst_163 [1] : vector<16x32xf32> to vector<16xf32>
    %521 = vector.shape_cast %520 : vector<16xf32> to vector<16x1xf32>
    %cst_164 = arith.constant 3.200000e+01 : f32
    %522 = vector.broadcast %cst_164 : f32 to vector<16x1xf32>
    %523 = arith.divf %521, %522 : vector<16x1xf32>
    %cst_165 = arith.constant 9.99999974E-6 : f32
    %524 = vector.broadcast %cst_165 : f32 to vector<16x1xf32>
    %525 = arith.addf %523, %524 : vector<16x1xf32>
    %526 = math.rsqrt %525 : vector<16x1xf32>
    %527 = vector.broadcast %526 : vector<16x1xf32> to vector<16x32xf32>
    %528 = arith.mulf %518, %527 : vector<16x32xf32>
    %529 = vector.broadcast %511 : vector<1x32xf32> to vector<16x32xf32>
    %530 = arith.mulf %528, %529 : vector<16x32xf32>
    %531 = vector.broadcast %512 : vector<1x32xf32> to vector<16x32xf32>
    %532 = arith.addf %530, %531 : vector<16x32xf32>
    %c982 = arith.constant 982 : index
    %c0_166 = arith.constant 0 : index
    %533 = vector.load %arg2[%c982, %c0_166] : memref<1024x128xf32, #tpu.memory_space<vmem>>, vector<1x32xf32>
    %c983 = arith.constant 983 : index
    %c0_167 = arith.constant 0 : index
    %534 = vector.load %arg2[%c983, %c0_167] : memref<1024x128xf32, #tpu.memory_space<vmem>>, vector<1x32xf32>
    %cst_168 = arith.constant dense<0.000000e+00> : vector<16xf32>
    %535 = vector.multi_reduction <add>, %532, %cst_168 [1] : vector<16x32xf32> to vector<16xf32>
    %536 = vector.shape_cast %535 : vector<16xf32> to vector<16x1xf32>
    %cst_169 = arith.constant 3.200000e+01 : f32
    %537 = vector.broadcast %cst_169 : f32 to vector<16x1xf32>
    %538 = arith.divf %536, %537 : vector<16x1xf32>
    %539 = vector.broadcast %538 : vector<16x1xf32> to vector<16x32xf32>
    %540 = arith.subf %532, %539 : vector<16x32xf32>
    %541 = arith.mulf %540, %540 : vector<16x32xf32>
    %cst_170 = arith.constant dense<0.000000e+00> : vector<16xf32>
    %542 = vector.multi_reduction <add>, %541, %cst_170 [1] : vector<16x32xf32> to vector<16xf32>
    %543 = vector.shape_cast %542 : vector<16xf32> to vector<16x1xf32>
    %cst_171 = arith.constant 3.200000e+01 : f32
    %544 = vector.broadcast %cst_171 : f32 to vector<16x1xf32>
    %545 = arith.divf %543, %544 : vector<16x1xf32>
    %cst_172 = arith.constant 9.99999974E-6 : f32
    %546 = vector.broadcast %cst_172 : f32 to vector<16x1xf32>
    %547 = arith.addf %545, %546 : vector<16x1xf32>
    %548 = math.rsqrt %547 : vector<16x1xf32>
    %549 = vector.broadcast %548 : vector<16x1xf32> to vector<16x32xf32>
    %550 = arith.mulf %540, %549 : vector<16x32xf32>
    %551 = vector.broadcast %533 : vector<1x32xf32> to vector<16x32xf32>
    %552 = arith.mulf %550, %551 : vector<16x32xf32>
    %553 = vector.broadcast %534 : vector<1x32xf32> to vector<16x32xf32>
    %554 = arith.addf %552, %553 : vector<16x32xf32>
    %c236 = arith.constant 236 : index
    %c0_173 = arith.constant 0 : index
    %555 = vector.load %arg2[%c236, %c0_173] : memref<1024x128xf32, #tpu.memory_space<vmem>>, vector<8x16xf32>
    %cst_174 = arith.constant dense<0.000000e+00> : vector<8x32xf32>
    %556 = tpu.matmul %555, %554, %cst_174 {dimension_numbers = #tpu.dot_dimension_numbers<[1], [0], [0], [1], [0, 0, 1, 1], [], []>} : vector<8x16xf32>, vector<16x32xf32>, vector<8x32xf32> -> vector<8x32xf32>
    %c984 = arith.constant 984 : index
    %c0_175 = arith.constant 0 : index
    %557 = vector.load %arg2[%c984, %c0_175] : memref<1024x128xf32, #tpu.memory_space<vmem>>, vector<32x4xf32>
    %cst_176 = arith.constant dense<0.000000e+00> : vector<8x4xf32>
    %558 = tpu.matmul %556, %557, %cst_176 {dimension_numbers = #tpu.dot_dimension_numbers<[1], [0], [0], [1], [0, 0, 1, 1], [], []>} : vector<8x32xf32>, vector<32x4xf32>, vector<8x4xf32> -> vector<8x4xf32>
    %c1016 = arith.constant 1016 : index
    %c0_177 = arith.constant 0 : index
    %559 = vector.load %arg2[%c1016, %c0_177] : memref<1024x128xf32, #tpu.memory_space<vmem>>, vector<1x4xf32>
    %560 = vector.broadcast %559 : vector<1x4xf32> to vector<8x4xf32>
    %561 = arith.addf %558, %560 : vector<8x4xf32>
    %c0_178 = arith.constant 0 : index
    %c0_179 = arith.constant 0 : index
    %562 = vector.load %arg3[%c0_178, %c0_179] : memref<8x4xf32, #tpu.memory_space<vmem>>, vector<8x4xf32>
    tpu.vector_store %arg3[%c0_178, %c0_179], %561 {strides = array<i32>} : memref<8x4xf32, #tpu.memory_space<vmem>>, vector<8x4xf32>,
    return
  }
}

</mosaic_0001>

<bundles_post_ra>
// kernel: informer_forward.1
= control target key start
LH: loop header
LB: loop body
LE: loop exit
PB: predicated region body
PF: predicated region fallthrough
CT: control target
= control target key end

     0   :  { %8 = vsyncpa [#allocation3], 0  ;;  %s9818_s0 = inlined_call_operand.vmem [shape: f32[24,8], index: 0, kind: input, shape index: {}]   ;;  %s9819_s1 = inlined_call_operand.vmem [shape: f32[16,8], index: 1, kind: input, shape index: {}]   ;;  %s9820_s2 = inlined_call_operand.hbm [shape: f32[1024,128], index: 2, kind: input, shape index: {}]   ;;  %s9821_s3 = inlined_call_operand.hbm [shape: f32[8,4], index: 3, kind: output, shape index: {}]  }
   0x1   :  { %9 = vsyncpa [#allocation4], 0  ;;  %s8778_s12 = smov [#allocation2]   ;;  %s8730_s16 = scalar_lea.hbm %s9820_s2, 16384 }
   0x2   :  { %s19_s13 = sshll.u32 %s8778_s12, 4  ;;  %p8731_p0 = scmp.ne.s32.totalorder %s9820_s2, %s8730_s16  ;;  %s20_s13 = int_to_ptr.vmem [resolvable:$true] %s19_s13 }
   0x3   :  { %p8734_p1 = scmp.lt.u32.totalorder %s8730_s16, %s9820_s2 }
   0x5   :  { %p8736_p2 = pnand %p8734_p1, %p8731_p0 }
   0x7   :  { %8739 = shalt.err (!%p8736_p2)
}
   0x8   :  { %s8740_s21 = scalar_lea.vmem %s20_s13, 16384  ;;  %p8745_p4 = scmp.lt.s32.totalorder %s20_s13, %s20_s13 }
   0x9   :  { %p8741_p3 = scmp.ne.s32.totalorder %s20_s13, %s8740_s21  ;;  %p8746_p5 = scmp.lt.s32.totalorder %s8740_s21, %s8740_s21 }
   0xb   :  { %p8747_p6 = por %p8746_p5, %p8745_p4 }
   0xd   :  { %p8748_p7 = pnand %p8747_p6, %p8741_p3 }
   0xf   :  { %8751 = shalt.err (!%p8748_p7)
}
  0x10   :  { %s8779_s22 = smov 128   ;;  %s8780_s23 = smov 8  }
  0x11   :  { %25 = dma.hbm_to_vmem [thread:$0]  %s9820_s2, 16384, %s20_s13, [#allocation3], %s8779_s22, %s8779_s22, %s8780_s23  }
  0x12   :  { %8774 = dma.done.wait [#allocation3], 16384  }
  0x13   :  { %8775 = vsyncadd [#allocation3], 4294950912  ;;  %v8781_v0 = vmov 0.0|0.0   ;;  %vm8782_vm0 = vmmov 0   ;;  %v8783_v1 = vmov 0.0   ;;  %v29_v2 = vld [vmem:[%s9818_s0] sm:$0xff] }
  0x14   :  { %8003 = vmatprep.subr.bf16.mxu1 %v8781_v0  ;;  %7348 = vmatprep.mubr.msk.f32.mxu1 %vm8782_vm0, %v8783_v1  ;;  %v30_v3 = vld [vmem:[%s9818_s0 + $0x8] sm:$0xff]  ;;  %s8784_s29 = smov 4   ;;  %v31_v5 = vld [vmem:[%s9818_s0 + $0x10] sm:$0xff]  ;;  %v35_v6 = vld [vmem:[#allocation2 + $0x60] sm:$0xff]  ;;  %vm41_vm1 = vcmask 195584   ;;  %s8785_s0 = smov 12  }
  0x15   :  { %8000 = vmatprep.subr.bf16.mxu0 %v8781_v0  ;;  %7333 = vmatprep.mubr.msk.f32.mxu0 %vm8782_vm0, %v8783_v1  ;;  %v8001_v4 = vpack.c.bf16 %v30_v3, %v29_v2  ;;  %v32_v7 = vld [vmem:[#allocation2 + $0x48] sm:$0xff]  ;;  %v33_v9 = vld [vmem:[#allocation2 + $0x50] sm:$0xff]  ;;  %v34_v11 = vld [vmem:[#allocation2 + $0x58] sm:$0xff]  ;;  %vm244_vm2 = vcmask 31744   ;;  %vm248_vm3 = vcmask 97280   ;;  %vm254_vm4 = vcmask 130048  }
  0x16   :  { %223 = vrot.lane.b32.xlu0 %v29_v2, %s8784_s29  ;;  %225 = vrot.lane.b32.xlu1 %v30_v3, %s8784_s29  ;;  %v36_v8 = vld [vmem:[#allocation2 + $0x68] sm:$0xff]  ;;  %v37_v10 = vld [vmem:[#allocation2 + $0x70] sm:$0xff]  ;;  %v253_v13 = vld [vmem:[#allocation2 + $0xfc] sm:$0xff]  ;;  %vm356_vm5 = vcmask 261120   ;;  %s8786_s5 = smov 120   ;;  %s8787_s6 = smov 112  }
  0x17   :  { %8005 = vmatpush3.bf16.msra.mxu1 %v8001_v4  ;;  %8002 = vmatpush3.bf16.msra.mxu0 %v8001_v4  ;;  %v252_v12 = vld [vmem:[#allocation2 + $0xf4] sm:$0xff]  ;;  %v348_v16 = vld [vmem:[#allocation2 + $0x11c] sm:$0xff]  ;;  %v349_v42 = vld [vmem:[#allocation2 + $0x124] sm:$0xff]  ;;  %s8788_s7 = smov 104   ;;  %s8789_s8 = smov 96   ;;  %vm473_vm6 = vcmask 64512  }
  0x18   :  { %7346 = vmatprep.subr.mxu1 %v8783_v1  ;;  %7331 = vmatprep.subr.mxu0 %v8783_v1  ;;  %v8007_v14 = vpack.c.bf16 %v253_v13, %v252_v12  ;;  %v347_v15 = vld [vmem:[#allocation2 + $0x114] sm:$0xff]  ;;  %v350_v43 = vld [vmem:[#allocation2 + $0x12c] sm:$0xff]  ;;  %v38_v45 = vld [vmem:[#allocation2] sm:$0xff]  ;;  %s8790_s9 = smov 64   ;;  %s8791_s10 = smov 16   ;;  %vm1724_vm8 = vcmask 523264  }
  0x19   :  { %v8010_v17 = vpack.c.bf16 %v348_v16, %v347_v15  ;;  %v8013_v44 = vpack.c.bf16 %v350_v43, %v349_v42  ;;  %v39_v49 = vld [vmem:[#allocation2 + $0x8] sm:$0xff]  ;;  %v40_v53 = vld [vmem:[#allocation2 + $0x10] sm:$0xff]  ;;  %vm8964_vm7 = vmpackc.low %vm473_vm6, %vm473_vm6  ;;  %s8792_s11 = smov 24   ;;  %s8793_s12 = smov 32   ;;  %vm2103_vm9 = vcmask 785408   ;;  %vm2965_vm13 = vcmask 93184  }
  0x1a   :  { %v6785_v57 = vld [vmem:[#allocation2 + $0x134] ss:$0 sm:$0xff]  ;;  %vm3062_vm14 = vcmask 1043456   ;;  %vm8795_vm15 = vmmov 1  }
  0x1b   :  { %7347 = vmatpush3.msra.mxu1 %v31_v5  ;;  %7332 = vmatpush3.msra.mxu0 %v31_v5 }
  0x1c   :  { %7349 = vmatmul.mubr.msk.f32.vlgmr.msra.gmra.mrb[0].mxu1 %vm41_vm1, %v35_v6  ;;  %7334 = vmatmul.mubr.msk.f32.vlgmr.msra.gmra.mrb[0].mxu0 %vm41_vm1, %v32_v7 }
  0x1d   :  { %7351 = vmatprep.mubr.msk.f32.mxu1 %vm8782_vm0, %v8783_v1  ;;  %7336 = vmatprep.mubr.msk.f32.mxu0 %vm8782_vm0, %v8783_v1 }
  0x1e   :  { %8006 = vmatprep.subr.bf16.mxu0 %v8781_v0  ;;  %8009 = vmatprep.subr.bf16.mxu1 %v8781_v0 }
  0x1f   :  { %8008 = vmatpush3.bf16.msra.mxu0 %v8007_v14  ;;  %8011 = vmatpush3.bf16.msra.mxu1 %v8010_v17 }
  0x20   :  { %7352 = vmatmul.mubr.msk.f32.gmra.mrb[2].mxu1 %vm41_vm1, %v36_v8  ;;  %7337 = vmatmul.mubr.msk.f32.gmra.mrb[2].mxu0 %vm41_vm1, %v33_v9 }
  0x21   :  { %7354 = vmatprep.mubr.msk.f32.mxu1 %vm8782_vm0, %v8783_v1  ;;  %7339 = vmatprep.mubr.msk.f32.mxu0 %vm8782_vm0, %v8783_v1 }
  0x22   :  { %8015 = vmatprep.subr.bf16.mxu0 %v8781_v0  ;;  %8012 = vmatprep.subr.bf16.mxu1 %v8781_v0 }
  0x23   :  { %8014 = vmatpush3.bf16.msra.mxu1 %v8013_v44 }
  0x24   :  { %7355 = vmatmul.mubr.msk.f32.gmra.mrb[4].mxu1 %vm41_vm1, %v37_v10  ;;  %7340 = vmatmul.mubr.msk.f32.gmra.mrb[4].mxu0 %vm41_vm1, %v34_v11 }
  0x25   :  { %7361 = vmatprep.mubr.msk.f32.mxu0 %vm8782_vm0, %v8783_v1  ;;  %7378 = vmatprep.mubr.msk.f32.mxu1 %vm8782_vm0, %v8783_v1 }
  0x26   :  { %8019 = vmatprep.subr.bf16.mxu1 %v8781_v0 }
  0x88   :  { %v224_v30 = vpop.permute.xlu0 %223  ;;  %v226_v31 = vpop.permute.xlu1 %225 }
  0xef   :  { %v206_v18 = vpop.f32.mrb[0].mxu1  ;;  %v117_v19 = vpop.f32.mrb[0].mxu0 }
  0xf0   :  { %235 = vrot.lane.b32.xlu0 %v206_v18, %s8785_s0  ;;  %v7350_v20 = vpop.f32.mrb[1].mxu1  ;;  %v7335_v21 = vpop.f32.mrb[1].mxu0  ;;  %v245_v32 = vsel %vm244_vm2, %v117_v19, %v224_v30 }
  0xf3   :  { %v211_v22 = vpop.f32.mrb[2].mxu1  ;;  %v122_v23 = vpop.f32.mrb[2].mxu0 }
  0xf4   :  { %237 = vrot.lane.b32.xlu1 %v211_v22, %s8785_s0  ;;  %v7353_v24 = vpop.f32.mrb[3].mxu1  ;;  %227 = vrot.lane.b32.xlu0 %v31_v5, %s8784_s29  ;;  %v7338_v25 = vpop.f32.mrb[3].mxu0  ;;  %v246_v35 = vsel %vm244_vm2, %v122_v23, %v226_v31 }
  0xf7   :  { %v216_v26 = vpop.f32.mrb[4].mxu1  ;;  %v127_v27 = vpop.f32.mrb[4].mxu0 }
  0xf8   :  { %239 = vrot.lane.b32.xlu1 %v216_v26, %s8785_s0  ;;  %v7356_v28 = vpop.f32.mrb[5].mxu1  ;;  %v7341_v29 = vpop.f32.mrb[5].mxu0 }
 0x162   :  { %v236_v33 = vpop.permute.xlu0 %235 }
 0x163   :  { %v249_v34 = vsel %vm248_vm3, %v245_v32, %v236_v33 }
 0x164   :  { %7362 = vmatmul.mubr.msk.f32.vlgmr.msra.gmra.mrb[6].mxu0 %vm254_vm4, %v249_v34 }
 0x165   :  { %7364 = vmatprep.mubr.msk.f32.mxu0 %vm8782_vm0, %v8783_v1 }
 0x166   :  { %v238_v36 = vpop.permute.xlu1 %237  ;;  %v228_v37 = vpop.permute.xlu0 %227 }
 0x167   :  { %v250_v38 = vsel %vm248_vm3, %v246_v35, %v238_v36  ;;  %v247_v39 = vsel %vm244_vm2, %v127_v27, %v228_v37 }
 0x168   :  { %7365 = vmatmul.mubr.msk.f32.gmra.mrb[8].mxu0 %vm254_vm4, %v250_v38 }
 0x169   :  { %7367 = vmatprep.mubr.msk.f32.mxu0 %vm8782_vm0, %v8783_v1 }
 0x16a   :  { %v240_v40 = vpop.permute.xlu1 %239 }
 0x16b   :  { %v251_v41 = vsel %vm248_vm3, %v247_v39, %v240_v40  ;;  %v9031_v40 = vld [vmem:[#allocation2 + $0x84] sm:$0xff] }
 0x16c   :  { %7368 = vmatmul.mubr.msk.f32.gmra.mrb[10].mxu0 %vm254_vm4, %v251_v41 }
 0x16d   :  { %7393 = vmatprep.mubr.msk.f32.mxu0 %vm8782_vm0, %v8783_v1 }
 0x237   :  { %v330_v46 = vpop.f32.mrb[6].mxu0 }
 0x238   :  { %v8891_v47 = vadd.f32 %v330_v46, %v38_v45  ;;  %v7363_v48 = vpop.f32.mrb[7].mxu0  ;;  %v9036_v45 = vld [vmem:[#allocation2 + $0x8c] sm:$0xff] }
 0x23a   :  { %7379 = vmatmul.mubr.msk.f32.vlgmr.msra.gmra.mrb[6].mxu1 %vm356_vm5, %v8891_v47 }
 0x23b   :  { %v335_v50 = vpop.f32.mrb[8].mxu0  ;;  %7381 = vmatprep.mubr.msk.f32.mxu1 %vm8782_vm0, %v8783_v1 }
 0x23c   :  { %v8897_v51 = vadd.f32 %v335_v50, %v39_v49  ;;  %v7366_v52 = vpop.f32.mrb[9].mxu0 }
 0x23e   :  { %7382 = vmatmul.mubr.msk.f32.gmra.mrb[8].mxu1 %vm356_vm5, %v8897_v51 }
 0x23f   :  { %v340_v54 = vpop.f32.mrb[10].mxu0  ;;  %7384 = vmatprep.mubr.msk.f32.mxu1 %vm8782_vm0, %v8783_v1 }
 0x240   :  { %v8903_v55 = vadd.f32 %v340_v54, %v40_v53  ;;  %v7369_v56 = vpop.f32.mrb[11].mxu0  ;;  %v9043_v53 = vld [vmem:[#allocation2 + $0x94] sm:$0xff] }
 0x242   :  { %7385 = vmatmul.mubr.msk.f32.gmra.mrb[10].mxu1 %vm356_vm5, %v8903_v55 }
 0x243   :  { %7408 = vmatprep.mubr.msk.f32.mxu1 %vm8782_vm0, %v8783_v1 }
 0x30d   :  { %v432_v58 = vpop.f32.mrb[6].mxu1 }
 0x30e   :  { %v433_v59 = vadd.f32 %v6785_v57, %v432_v58  ;;  %v7380_v60 = vpop.f32.mrb[7].mxu1 }
 0x310   :  { %449 = vrot.lane.b32.xlu0 %v433_v59, %s8786_s5 }
 0x311   :  { %v437_v61 = vpop.f32.mrb[8].mxu1 }
 0x312   :  { %v438_v62 = vadd.f32 %v6785_v57, %v437_v61  ;;  %v7383_v63 = vpop.f32.mrb[9].mxu1 }
 0x314   :  { %457 = vrot.lane.b32.xlu0 %v438_v62, %s8787_s6  ;;  %451 = vrot.lane.b32.xlu1 %v438_v62, %s8786_s5  ;;  %v8923_v5 = vpack.i.bf16 %v438_v62, %v433_v59 }
 0x315   :  { %v442_v2 = vpop.f32.mrb[10].mxu1 }
 0x316   :  { %v8912_v3 = vadd.f32 %v6785_v57, %v442_v2  ;;  %v7386_v4 = vpop.f32.mrb[11].mxu1 }
 0x318   :  { %455 = vrot.lane.b32.xlu1 %v433_v59, %s8787_s6  ;;  %453 = vrot.lane.b32.xlu0 %v8912_v3, %s8786_s5 }
 0x31c   :  { %461 = vrot.lane.b32.xlu1 %v433_v59, %s8788_s7  ;;  %463 = vrot.lane.b32.xlu0 %v438_v62, %s8788_s7 }
 0x320   :  { %459 = vrot.lane.b32.xlu1 %v8912_v3, %s8787_s6  ;;  %465 = vrot.lane.b32.xlu0 %v8912_v3, %s8788_s7 }
 0x324   :  { %8384 = vrot.lane.b32.xlu1 %v8923_v5, %s8789_s8 }
 0x328   :  { %471 = vrot.lane.b32.xlu1 %v8912_v3, %s8789_s8 }
 0x382   :  { %v450_v6 = vpop.permute.xlu0 %449 }
 0x386   :  { %v8929_v7 = vpop.permute.xlu0 %457  ;;  %v452_v8 = vpop.permute.xlu1 %451 }
 0x387   :  { %v8931_v9 = vpack.i.bf16 %v452_v8, %v450_v6 }
 0x389   :  { %8389 = vrot.lane.b32.xlu0 %v8931_v9, %s8789_s8 }
 0x38a   :  { %v456_v10 = vpop.permute.xlu1 %455  ;;  %v8935_v11 = vpop.permute.xlu0 %453 }
 0x38b   :  { %v8938_v12 = vpack.i.bf16 %v8929_v7, %v456_v10 }
 0x38d   :  { %8394 = vrot.lane.b32.xlu1 %v8938_v12, %s8789_s8  ;;  %570 = vrot.lane.b32.xlu0 %v8935_v11, %s8789_s8 }
 0x38e   :  { %v8944_v13 = vpop.permute.xlu1 %461  ;;  %v8946_v14 = vpop.permute.xlu0 %463 }
 0x38f   :  { %v8950_v15 = vpack.i.bf16 %v8946_v14, %v8944_v13 }
 0x391   :  { %8399 = vrot.lane.b32.xlu0 %v8950_v15, %s8789_s8 }
 0x392   :  { %v8954_v16 = vpop.permute.xlu1 %459  ;;  %v8956_v17 = vpop.permute.xlu0 %465 }
 0x393   :  { %668 = vrot.lane.b32.xlu1 %v8954_v16, %s8789_s8 }
 0x395   :  { %766 = vrot.lane.b32.xlu0 %v8956_v17, %s8789_s8 }
 0x396   :  { %v8385_v18 = vpop.permute.xlu1 %8384 }
 0x397   :  { %v8387_v19 = vunpack.i.h.bf16 %v8385_v18  ;;  %v8386_v20 = vunpack.i.l.bf16 %v8385_v18 }
 0x399   :  { %v8016_v22 = vpack.c.bf16 %v8387_v19, %v8386_v20 }
 0x39a   :  { %v472_v23 = vpop.permute.xlu1 %471 }
 0x39b   :  { %8018 = vmatpush3.bf16.xpose.msk.msra.mxu0 %vm8964_vm7, %v8016_v22 }
 0x39c   :  { %7391 = vmatprep.subr.mxu0 %v8783_v1 }
 0x3a3   :  { %7392 = vmatpush3.xpose.msk.msra.mxu0 %vm473_vm6, %v472_v23 }
 0x3a4   :  { %8023 = vmatprep.subr.bf16.mxu0 %v8781_v0 }
 0x3a6   :  { %7394 = vmatmul.mubr.msk.f32.vlgmr.msra.gmra.mrb[12].mxu0 %vm473_vm6, %v433_v59 }
 0x3a7   :  { %7396 = vmatprep.mubr.msk.f32.mxu0 %vm8782_vm0, %v8783_v1 }
 0x3aa   :  { %7397 = vmatmul.mubr.msk.f32.gmra.mrb[14].mxu0 %vm473_vm6, %v438_v62 }
 0x3ab   :  { %7399 = vmatprep.mubr.msk.f32.mxu0 %vm8782_vm0, %v8783_v1 }
 0x3ae   :  { %7400 = vmatmul.mubr.msk.f32.gmra.mrb[16].mxu0 %vm473_vm6, %v8912_v3 }
 0x3af   :  { %7423 = vmatprep.mubr.msk.f32.mxu0 %vm8782_vm0, %v8783_v1 }
 0x3fb   :  { %v8390_v24 = vpop.permute.xlu0 %8389 }
 0x3fc   :  { %v8392_v25 = vunpack.i.h.bf16 %v8390_v24  ;;  %v8391_v26 = vunpack.i.l.bf16 %v8390_v24 }
 0x3fe   :  { %v8020_v27 = vpack.c.bf16 %v8392_v25, %v8391_v26 }
 0x3ff   :  { %v8395_v28 = vpop.permute.xlu1 %8394  ;;  %v571_v29 = vpop.permute.xlu0 %570 }
 0x400   :  { %v8397_v30 = vunpack.i.h.bf16 %v8395_v28  ;;  %v8396_v31 = vunpack.i.l.bf16 %v8395_v28  ;;  %8022 = vmatpush3.bf16.xpose.msk.msra.mxu1 %vm8964_vm7, %v8020_v27 }
 0x401   :  { %7406 = vmatprep.subr.mxu1 %v8783_v1 }
 0x402   :  { %v8024_v32 = vpack.c.bf16 %v8397_v30, %v8396_v31 }
 0x403   :  { %v8400_v33 = vpop.permute.xlu0 %8399 }
 0x404   :  { %8026 = vmatpush3.bf16.xpose.msk.msra.mxu0 %vm8964_vm7, %v8024_v32  ;;  %v8402_v34 = vunpack.i.h.bf16 %v8400_v33  ;;  %v8401_v35 = vunpack.i.l.bf16 %v8400_v33 }
 0x405   :  { %7421 = vmatprep.subr.mxu0 %v8783_v1  ;;  %v669_v37 = vpop.permute.xlu1 %668 }
 0x406   :  { %v8028_v36 = vpack.c.bf16 %v8402_v34, %v8401_v35 }
 0x407   :  { %v767_v38 = vpop.permute.xlu0 %766 }
 0x408   :  { %7407 = vmatpush3.xpose.msk.msra.mxu1 %vm473_vm6, %v571_v29 }
 0x409   :  { %8027 = vmatprep.subr.bf16.mxu1 %v8781_v0 }
 0x40b   :  { %7409 = vmatmul.mubr.msk.f32.vlgmr.msra.gmra.mrb[12].mxu1 %vm473_vm6, %v450_v6 }
 0x40c   :  { %7422 = vmatpush3.xpose.msk.msra.mxu0 %vm473_vm6, %v669_v37  ;;  %8030 = vmatpush3.bf16.xpose.msk.msra.mxu1 %vm8964_vm7, %v8028_v36 }
 0x40d   :  { %7411 = vmatprep.mubr.msk.f32.mxu1 %vm8782_vm0, %v8783_v1  ;;  %7436 = vmatprep.subr.mxu1 %v8783_v1 }
 0x40e   :  { %8031 = vmatprep.subr.bf16.mxu0 %v8781_v0 }
 0x40f   :  { %7412 = vmatmul.mubr.msk.f32.gmra.mrb[14].mxu1 %vm473_vm6, %v452_v8  ;;  %7424 = vmatmul.mubr.msk.f32.vlgmr.msra.gmra.mrb[18].mxu0 %vm473_vm6, %v456_v10 }
 0x410   :  { %7414 = vmatprep.mubr.msk.f32.mxu1 %vm8782_vm0, %v8783_v1  ;;  %7426 = vmatprep.mubr.msk.f32.mxu0 %vm8782_vm0, %v8783_v1 }
 0x413   :  { %7415 = vmatmul.mubr.msk.f32.gmra.mrb[16].mxu1 %vm473_vm6, %v8935_v11  ;;  %7427 = vmatmul.mubr.msk.f32.gmra.mrb[20].mxu0 %vm473_vm6, %v8929_v7 }
 0x414   :  { %7437 = vmatpush3.xpose.msk.msra.mxu1 %vm473_vm6, %v767_v38  ;;  %7429 = vmatprep.mubr.msk.f32.mxu0 %vm8782_vm0, %v8783_v1 }
 0x415   :  { %7438 = vmatprep.mubr.msk.f32.mxu1 %vm8782_vm0, %v8783_v1  ;;  %8034 = vmatprep.subr.bf16.mxu1 %v8781_v0 }
 0x417   :  { %7430 = vmatmul.mubr.msk.f32.gmra.mrb[22].mxu0 %vm473_vm6, %v8954_v16  ;;  %7439 = vmatmul.mubr.msk.f32.vlgmr.msra.gmra.mrb[18].mxu1 %vm473_vm6, %v8944_v13 }
 0x418   :  { %7441 = vmatprep.mubr.msk.f32.mxu1 %vm8782_vm0, %v8783_v1  ;;  %7453 = vmatprep.mubr.msk.f32.mxu0 %vm8782_vm0, %v8783_v1 }
 0x41b   :  { %7442 = vmatmul.mubr.msk.f32.gmra.mrb[20].mxu1 %vm473_vm6, %v8946_v14 }
 0x41c   :  { %7444 = vmatprep.mubr.msk.f32.mxu1 %vm8782_vm0, %v8783_v1 }
 0x41f   :  { %7445 = vmatmul.mubr.msk.f32.gmra.mrb[22].mxu1 %vm473_vm6, %v8956_v17 }
 0x420   :  { %7468 = vmatprep.mubr.msk.f32.mxu1 %vm8782_vm0, %v8783_v1 }
 0x479   :  { %v552_v39 = vpop.f32.mrb[12].mxu0 }
 0x47a   :  { %v860_v41 = vmul.f32 0.35355338, %v552_v39  ;;  %v7395_v42 = vpop.f32.mrb[13].mxu0 }
 0x47c   :  { %v9034_v43 = vadd.f32 %v860_v41, %v9031_v40 }
 0x47d   :  { %v557_v44 = vpop.f32.mrb[14].mxu0 }
 0x47e   :  { %v861_v46 = vmul.f32 0.35355338, %v557_v44  ;;  %v7398_v48 = vpop.f32.mrb[15].mxu0  ;;  %v884_v49 = vsel %vm41_vm1, %v9034_v43, -inf }
 0x47f   :  { %885 = vmax.xlane.f32.xlu1 %v884_v49 }
 0x480   :  { %v9041_v50 = vadd.f32 %v861_v46, %v9036_v45 }
 0x481   :  { %v562_v52 = vpop.f32.mrb[16].mxu0 }
 0x482   :  { %v862_v54 = vmul.f32 0.35355338, %v562_v52  ;;  %v7401_v56 = vpop.f32.mrb[17].mxu0  ;;  %v887_v57 = vsel %vm41_vm1, %v9041_v50, -inf }
 0x483   :  { %888 = vmax.xlane.f32.xlu0 %v887_v57 }
 0x484   :  { %v9048_v58 = vadd.f32 %v862_v54, %v9043_v53 }
 0x486   :  { %v890_v59 = vsel %vm41_vm1, %v9048_v58, -inf }
 0x487   :  { %891 = vmax.xlane.f32.xlu0 %v890_v59 }
 0x490   :  { %8409 = vrot.lane.b32.xlu1 %v8931_v9, %s8790_s9 }
 0x4de   :  { %v650_v60 = vpop.f32.mrb[12].mxu1 }
 0x4df   :  { %v863_v61 = vmul.f32 0.35355338, %v650_v60  ;;  %v7410_v62 = vpop.f32.mrb[13].mxu1 }
 0x4e1   :  { %v9055_v63 = vadd.f32 %v863_v61, %v9031_v40 }
 0x4e2   :  { %v655_v2 = vpop.f32.mrb[14].mxu1  ;;  %v748_v4 = vpop.f32.mrb[18].mxu0 }
 0x4e3   :  { %v864_v6 = vmul.f32 0.35355338, %v655_v2  ;;  %v7413_v7 = vpop.f32.mrb[15].mxu1  ;;  %v7425_v8 = vpop.f32.mrb[19].mxu0  ;;  %v893_v10 = vsel %vm41_vm1, %v9055_v63, -inf }
 0x4e4   :  { %894 = vmax.xlane.f32.xlu0 %v893_v10  ;;  %v866_v35 = vmul.f32 0.35355338, %v748_v4 }
 0x4e5   :  { %v9060_v13 = vadd.f32 %v864_v6, %v9036_v45 }
 0x4e6   :  { %v660_v14 = vpop.f32.mrb[16].mxu1  ;;  %v753_v9 = vpop.f32.mrb[20].mxu0  ;;  %v9074_v41 = vadd.f32 %v866_v35, %v9031_v40 }
 0x4e7   :  { %v865_v18 = vmul.f32 0.35355338, %v660_v14  ;;  %v7416_v19 = vpop.f32.mrb[17].mxu1  ;;  %v7428_v20 = vpop.f32.mrb[21].mxu0  ;;  %v896_v22 = vsel %vm41_vm1, %v9060_v13, -inf }
 0x4e8   :  { %897 = vmax.xlane.f32.xlu1 %v896_v22  ;;  %v867_v39 = vmul.f32 0.35355338, %v753_v9 }
 0x4e9   :  { %v9065_v23 = vadd.f32 %v865_v18, %v9043_v53 }
 0x4ea   :  { %v758_v24 = vpop.f32.mrb[22].mxu0  ;;  %v846_v25 = vpop.f32.mrb[18].mxu1 }
 0x4eb   :  { %v7431_v26 = vpop.f32.mrb[23].mxu0  ;;  %v7440_v27 = vpop.f32.mrb[19].mxu1  ;;  %v899_v28 = vsel %vm41_vm1, %v9065_v23, -inf  ;;  %v868_v42 = vmul.f32 0.35355338, %v758_v24 }
 0x4ec   :  { %900 = vmax.xlane.f32.xlu1 %v899_v28  ;;  %v869_v44 = vmul.f32 0.35355338, %v846_v25 }
 0x4ed   :  { %v9088_v52 = vadd.f32 %v868_v42, %v9043_v53 }
 0x4ee   :  { %v851_v29 = vpop.f32.mrb[20].mxu1  ;;  %v9085_v49 = vadd.f32 %v869_v44, %v9031_v40 }
 0x4ef   :  { %v7443_v30 = vpop.f32.mrb[21].mxu1  ;;  %v870_v46 = vmul.f32 0.35355338, %v851_v29  ;;  %v908_v57 = vsel %vm41_vm1, %v9088_v52, -inf }
 0x4f0   :  { %v911_v56 = vsel %vm41_vm1, %v9085_v49, -inf }
 0x4f1   :  { %v9095_v59 = vadd.f32 %v870_v46, %v9036_v45 }
 0x4f2   :  { %v856_v31 = vpop.f32.mrb[22].mxu1 }
 0x4f3   :  { %v7446_v32 = vpop.f32.mrb[23].mxu1  ;;  %v871_v54 = vmul.f32 0.35355338, %v856_v31  ;;  %v914_v40 = vsel %vm41_vm1, %v9095_v59, -inf }
 0x4f5   :  { %v9100_v60 = vadd.f32 %v871_v54, %v9043_v53 }
 0x4f7   :  { %v917_v61 = vsel %vm41_vm1, %v9100_v60, -inf }
 0x4fa   :  { %8404 = vrot.lane.b32.xlu0 %v8923_v5, %s8790_s9  ;;  %v902_v5 = vsel %vm41_vm1, %v9074_v41, -inf }
 0x4fd   :  { %1118 = vrot.lane.b32.xlu1 %v8935_v11, %s8790_s9  ;;  %v9080_v11 = vadd.f32 %v867_v39, %v9036_v45 }
 0x4ff   :  { %v905_v48 = vsel %vm41_vm1, %v9080_v11, -inf }
 0x50c   :  { %v886_v33 = vpop.xlane.xlu1 %885 }
 0x50d   :  { %v920_v62 = vsub.f32 %v9034_v43, %v886_v33 }
 0x50f   :  { %v932_v2 = vmul.f32 1.442695, %v920_v62 }
 0x510   :  { %v8410_v34 = vpop.permute.xlu1 %8409  ;;  %v889_v45 = vpop.xlane.xlu0 %888 }
 0x511   :  { %v8412_v36 = vunpack.i.h.bf16 %v8410_v34  ;;  %v8411_v37 = vunpack.i.l.bf16 %v8410_v34  ;;  %v921_v53 = vsub.f32 %v9041_v50, %v889_v45  ;;  %8540 = vpow2.f32 %v932_v2 }
 0x513   :  { %v8035_v38 = vpack.c.bf16 %v8412_v36, %v8411_v37  ;;  %v934_v6 = vmul.f32 1.442695, %v921_v53 }
 0x514   :  { %v892_v4 = vpop.xlane.xlu0 %891 }
 0x515   :  { %8036 = vmatpush3.bf16.msra.mxu1 %v8035_v38  ;;  %v922_v7 = vsub.f32 %v9048_v58, %v892_v4  ;;  %8542 = vpow2.f32 %v934_v6 }
 0x516   :  { %7466 = vmatprep.subr.mxu1 %v8783_v1 }
 0x517   :  { %v936_v8 = vmul.f32 1.442695, %v922_v7 }
 0x519   :  { %903 = vmax.xlane.f32.xlu0 %v902_v5  ;;  %8544 = vpow2.f32 %v936_v8 }
 0x51d   :  { %906 = vmax.xlane.f32.xlu0 %v905_v48 }
 0x521   :  { %912 = vmax.xlane.f32.xlu1 %v911_v56  ;;  %909 = vmax.xlane.f32.xlu0 %v908_v57 }
 0x525   :  { %915 = vmax.xlane.f32.xlu1 %v914_v40 }
 0x529   :  { %918 = vmax.xlane.f32.xlu1 %v917_v61 }
 0x537   :  { %1020 = vrot.lane.b32.xlu0 %v8912_v3, %s8790_s9  ;;  %v9113_v3 = vpop.eup %8540 }
 0x53a   :  { %8414 = vrot.lane.b32.xlu1 %v8938_v12, %s8790_s9  ;;  %v956_v12 = vsel %vm41_vm1, %v9113_v3, 0.0 }
 0x53b   :  { %8419 = vrot.lane.b32.xlu0 %v8950_v15, %s8790_s9  ;;  %v9117_v15 = vpop.eup %8542 }
 0x53c   :  { %v959_v43 = vsel %vm41_vm1, %v9117_v15, 0.0  ;;  %v9121_v50 = vpop.eup %8544 }
 0x53d   :  { %v962_v58 = vsel %vm41_vm1, %v9121_v50, 0.0 }
 0x55a   :  { %957 = vadd.xlane.f32.xlu0 %v956_v12 }
 0x55e   :  { %960 = vadd.xlane.f32.xlu0 %v959_v43 }
 0x562   :  { %963 = vadd.xlane.f32.xlu0 %v962_v58 }
 0x571   :  { %v895_v10 = vpop.xlane.xlu0 %894 }
 0x572   :  { %v923_v14 = vsub.f32 %v9055_v63, %v895_v10 }
 0x574   :  { %v938_v9 = vmul.f32 1.442695, %v923_v14 }
 0x575   :  { %v898_v18 = vpop.xlane.xlu1 %897  ;;  %v8405_v19 = vpop.permute.xlu0 %8404 }
 0x576   :  { %8546 = vpow2.f32 %v938_v9  ;;  %v924_v20 = vsub.f32 %v9060_v13, %v898_v18  ;;  %v8407_v22 = vunpack.i.h.bf16 %v8405_v19  ;;  %v8406_v24 = vunpack.i.l.bf16 %v8405_v19 }
 0x578   :  { %v940_v25 = vmul.f32 1.442695, %v924_v20  ;;  %v8032_v26 = vpack.c.bf16 %v8407_v22, %v8406_v24 }
 0x579   :  { %v901_v27 = vpop.xlane.xlu1 %900 }
 0x57a   :  { %8548 = vpow2.f32 %v940_v25  ;;  %v925_v28 = vsub.f32 %v9065_v23, %v901_v27  ;;  %8033 = vmatpush3.bf16.msra.mxu0 %v8032_v26 }
 0x57b   :  { %7451 = vmatprep.subr.mxu0 %v8783_v1 }
 0x57c   :  { %v942_v29 = vmul.f32 1.442695, %v925_v28 }
 0x57d   :  { %v1119_v30 = vpop.permute.xlu1 %1118 }
 0x57e   :  { %8550 = vpow2.f32 %v942_v29  ;;  %7467 = vmatpush3.msra.mxu1 %v1119_v30 }
 0x57f   :  { %8040 = vmatprep.subr.bf16.mxu1 %v8781_v0 }
 0x580   :  { %v9130_v63 = vpop.eup %8546 }
 0x581   :  { %v965_v13 = vsel %vm41_vm1, %v9130_v63, 0.0 }
 0x582   :  { %966 = vadd.xlane.f32.xlu1 %v965_v13 }
 0x584   :  { %v9134_v31 = vpop.eup %8548 }
 0x585   :  { %v968_v23 = vsel %vm41_vm1, %v9134_v31, 0.0 }
 0x586   :  { %969 = vadd.xlane.f32.xlu1 %v968_v23 }
 0x588   :  { %v9138_v32 = vpop.eup %8550 }
 0x589   :  { %v971_v33 = vsel %vm41_vm1, %v9138_v32, 0.0 }
 0x58a   :  { %972 = vadd.xlane.f32.xlu1 %v971_v33 }
 0x5a6   :  { %v904_v34 = vpop.xlane.xlu0 %903 }
 0x5a7   :  { %v926_v35 = vsub.f32 %v9074_v41, %v904_v34 }
 0x5a9   :  { %v944_v36 = vmul.f32 1.442695, %v926_v35 }
 0x5aa   :  { %v907_v37 = vpop.xlane.xlu0 %906 }
 0x5ab   :  { %8552 = vpow2.f32 %v944_v36  ;;  %v927_v38 = vsub.f32 %v9080_v11, %v907_v37 }
 0x5ad   :  { %v946_v39 = vmul.f32 1.442695, %v927_v38 }
 0x5ae   :  { %v913_v42 = vpop.xlane.xlu1 %912  ;;  %v910_v44 = vpop.xlane.xlu0 %909 }
 0x5af   :  { %8554 = vpow2.f32 %v946_v39  ;;  %v929_v5 = vsub.f32 %v9085_v49, %v913_v42  ;;  %v928_v46 = vsub.f32 %v9088_v52, %v910_v44 }
 0x5b1   :  { %v948_v48 = vmul.f32 1.442695, %v928_v46  ;;  %v950_v54 = vmul.f32 1.442695, %v929_v5 }
 0x5b2   :  { %v916_v56 = vpop.xlane.xlu1 %915  ;;  %v1021_v57 = vpop.permute.xlu0 %1020 }
 0x5b3   :  { %v930_v40 = vsub.f32 %v9095_v59, %v916_v56  ;;  %7452 = vmatpush3.msra.mxu0 %v1021_v57  ;;  %8556 = vpow2.f32 %v948_v48 }
 0x5b4   :  { %8037 = vmatprep.subr.bf16.mxu0 %v8781_v0  ;;  %8558 = vpow2.f32 %v950_v54 }
 0x5b5   :  { %v9148_v41 = vpop.eup %8552  ;;  %v952_v11 = vmul.f32 1.442695, %v930_v40 }
 0x5b6   :  { %v919_v61 = vpop.xlane.xlu1 %918  ;;  %v974_v49 = vsel %vm41_vm1, %v9148_v41, 0.0  ;;  %v8420_v43 = vpop.permute.xlu0 %8419 }
 0x5b7   :  { %v931_v52 = vsub.f32 %v9100_v60, %v919_v61  ;;  %975 = vadd.xlane.f32.xlu0 %v974_v49  ;;  %8560 = vpow2.f32 %v952_v11  ;;  %v8422_v28 = vunpack.i.h.bf16 %v8420_v43  ;;  %v8421_v29 = vunpack.i.l.bf16 %v8420_v43 }
 0x5b9   :  { %v9153_v45 = vpop.eup %8554  ;;  %v954_v62 = vmul.f32 1.442695, %v931_v52  ;;  %v8041_v23 = vpack.c.bf16 %v8422_v28, %v8421_v29 }
 0x5ba   :  { %v977_v59 = vsel %vm41_vm1, %v9153_v45, 0.0  ;;  %v8415_v14 = vpop.permute.xlu1 %8414 }
 0x5bb   :  { %8562 = vpow2.f32 %v954_v62  ;;  %978 = vadd.xlane.f32.xlu0 %v977_v59  ;;  %v8417_v18 = vunpack.i.h.bf16 %v8415_v14  ;;  %v8416_v19 = vunpack.i.l.bf16 %v8415_v14  ;;  %v1455_v14 = vld [vmem:[#allocation2 + $0x145] sm:$0xff] }
 0x5bd   :  { %v9157_v2 = vpop.eup %8556  ;;  %v8038_v24 = vpack.c.bf16 %v8417_v18, %v8416_v19 }
 0x5be   :  { %v980_v53 = vsel %vm41_vm1, %v9157_v2, 0.0  ;;  %v9161_v4 = vpop.eup %8558 }
 0x5bf   :  { %981 = vadd.xlane.f32.xlu1 %v980_v53  ;;  %v983_v60 = vsel %vm41_vm1, %v9161_v4, 0.0 }
 0x5c1   :  { %v9165_v6 = vpop.eup %8560 }
 0x5c2   :  { %v986_v12 = vsel %vm41_vm1, %v9165_v6, 0.0 }
 0x5c3   :  { %984 = vadd.xlane.f32.xlu1 %v983_v60  ;;  %v1454_v60 = vld [vmem:[#allocation2 + $0x13d] sm:$0xff] }
 0x5c5   :  { %v9167_v7 = vpop.eup %8562 }
 0x5c6   :  { %v989_v8 = vsel %vm41_vm1, %v9167_v7, 0.0 }
 0x5c7   :  { %990 = vadd.xlane.f32.xlu0 %v989_v8  ;;  %987 = vadd.xlane.f32.xlu1 %v986_v12 }
 0x5d8   :  { %1216 = vrot.lane.b32.xlu1 %v8954_v16, %s8790_s9 }
 0x5dd   :  { %1314 = vrot.lane.b32.xlu0 %v8956_v17, %s8790_s9 }
 0x5e7   :  { %v958_v58 = vpop.xlane.xlu0 %957 }
 0x5e8   :  { %8564 = vrcp.f32 %v958_v58 }
 0x5eb   :  { %v961_v10 = vpop.xlane.xlu0 %960 }
 0x5ec   :  { %8566 = vrcp.f32 %v961_v10 }
 0x5ef   :  { %v964_v9 = vpop.xlane.xlu0 %963 }
 0x5f0   :  { %8568 = vrcp.f32 %v964_v9  ;;  %v1456_v9 = vld [vmem:[#allocation2 + $0x14d] sm:$0xff] }
 0x5f1   :  { %v8047_v18 = vpack.c.bf16 %v1456_v9, %v1455_v14 }
 0x5f2   :  { %v8565_v20 = vpop.eup %8564 }
 0x5f3   :  { %v993_v22 = vmul.f32 %v8565_v20, %v9113_v3 }
 0x5f5   :  { %7454 = vmatmul.mubr.msk.f32.vlgmr.msra.gmra.mrb[24].mxu0 %vm41_vm1, %v993_v22 }
 0x5f6   :  { %v8567_v16 = vpop.eup %8566  ;;  %8039 = vmatpush3.bf16.msra.mxu0 %v8038_v24  ;;  %7456 = vmatprep.mubr.msk.f32.mxu0 %vm8782_vm0, %v8783_v1 }
 0x5f7   :  { %v995_v17 = vmul.f32 %v8567_v16, %v9117_v15  ;;  %7481 = vmatprep.subr.mxu0 %v8783_v1 }
 0x5f9   :  { %7457 = vmatmul.mubr.msk.f32.gmra.mrb[26].mxu0 %vm41_vm1, %v995_v17 }
 0x5fa   :  { %v8569_v25 = vpop.eup %8568  ;;  %7459 = vmatprep.mubr.msk.f32.mxu0 %vm8782_vm0, %v8783_v1 }
 0x5fb   :  { %v997_v3 = vmul.f32 %v8569_v25, %v9121_v50 }
 0x5fd   :  { %7460 = vmatmul.mubr.msk.f32.gmra.mrb[28].mxu0 %vm41_vm1, %v997_v3 }
 0x5fe   :  { %7483 = vmatprep.mubr.msk.f32.mxu0 %vm8782_vm0, %v8783_v1 }
 0x60f   :  { %v967_v26 = vpop.xlane.xlu1 %966 }
 0x610   :  { %8570 = vrcp.f32 %v967_v26 }
 0x613   :  { %v970_v27 = vpop.xlane.xlu1 %969 }
 0x614   :  { %8572 = vrcp.f32 %v970_v27 }
 0x617   :  { %v973_v15 = vpop.xlane.xlu1 %972 }
 0x618   :  { %8574 = vrcp.f32 %v973_v15 }
 0x61a   :  { %v8571_v30 = vpop.eup %8570 }
 0x61b   :  { %v999_v13 = vmul.f32 %v8571_v30, %v9130_v63 }
 0x61d   :  { %7469 = vmatmul.mubr.msk.f32.vlgmr.msra.gmra.mrb[24].mxu1 %vm41_vm1, %v999_v13 }
 0x61e   :  { %v8573_v50 = vpop.eup %8572  ;;  %8042 = vmatpush3.bf16.msra.mxu1 %v8041_v23  ;;  %7471 = vmatprep.mubr.msk.f32.mxu1 %vm8782_vm0, %v8783_v1 }
 0x61f   :  { %v1001_v33 = vmul.f32 %v8573_v50, %v9134_v31  ;;  %7496 = vmatprep.subr.mxu1 %v8783_v1 }
 0x621   :  { %7472 = vmatmul.mubr.msk.f32.gmra.mrb[26].mxu1 %vm41_vm1, %v1001_v33 }
 0x622   :  { %v8575_v34 = vpop.eup %8574  ;;  %7474 = vmatprep.mubr.msk.f32.mxu1 %vm8782_vm0, %v8783_v1 }
 0x623   :  { %v1003_v63 = vmul.f32 %v8575_v34, %v9138_v32 }
 0x625   :  { %7475 = vmatmul.mubr.msk.f32.gmra.mrb[28].mxu1 %vm41_vm1, %v1003_v63 }
 0x626   :  { %7498 = vmatprep.mubr.msk.f32.mxu1 %vm8782_vm0, %v8783_v1 }
 0x644   :  { %v976_v35 = vpop.xlane.xlu0 %975 }
 0x645   :  { %8576 = vrcp.f32 %v976_v35 }
 0x648   :  { %v979_v36 = vpop.xlane.xlu0 %978 }
 0x649   :  { %8578 = vrcp.f32 %v979_v36 }
 0x64c   :  { %v982_v37 = vpop.xlane.xlu1 %981 }
 0x64f   :  { %v8577_v42 = vpop.eup %8576 }
 0x650   :  { %v985_v31 = vpop.xlane.xlu1 %984  ;;  %v1005_v32 = vmul.f32 %v8577_v42, %v9148_v41 }
 0x651   :  { %8580 = vrcp.f32 %v985_v31 }
 0x652   :  { %8582 = vrcp.f32 %v982_v37 }
 0x653   :  { %v8579_v46 = vpop.eup %8578 }
 0x654   :  { %v991_v38 = vpop.xlane.xlu0 %990  ;;  %v988_v39 = vpop.xlane.xlu1 %987  ;;  %v1007_v56 = vmul.f32 %v8579_v46, %v9153_v45  ;;  %v6825_v46 = vld [vmem:[#allocation2 + $0x155] ss:$0 sm:$0xff] }
 0x655   :  { %8584 = vrcp.f32 %v988_v39 }
 0x656   :  { %8586 = vrcp.f32 %v991_v38 }
 0x658   :  { %v1315_v44 = vpop.permute.xlu0 %1314  ;;  %v1217_v5 = vpop.permute.xlu1 %1216 }
 0x659   :  { %7497 = vmatpush3.msra.mxu1 %v1315_v44  ;;  %7482 = vmatpush3.msra.mxu0 %v1217_v5 }
 0x65a   :  { %8049 = vmatprep.subr.bf16.mxu1 %v8781_v0  ;;  %7484 = vmatmul.mubr.msk.f32.vlgmr.msra.gmra.mrb[30].mxu0 %vm41_vm1, %v1005_v32 }
 0x65b   :  { %8043 = vmatprep.subr.bf16.mxu0 %v8781_v0  ;;  %v8581_v48 = vpop.eup %8580  ;;  %7486 = vmatprep.mubr.msk.f32.mxu0 %vm8782_vm0, %v8783_v1 }
 0x65c   :  { %v1011_v54 = vmul.f32 %v8581_v48, %v9161_v4  ;;  %v8583_v57 = vpop.eup %8582  ;;  %v1453_v4 = vld [vmem:[#allocation2 + $0x135] sm:$0xff] }
 0x65d   :  { %v1009_v41 = vmul.f32 %v8583_v57, %v9157_v2 }
 0x65e   :  { %7487 = vmatmul.mubr.msk.f32.gmra.mrb[32].mxu0 %vm41_vm1, %v1007_v56  ;;  %7499 = vmatmul.mubr.msk.f32.vlgmr.msra.gmra.mrb[30].mxu1 %vm41_vm1, %v1011_v54 }
 0x65f   :  { %v8585_v40 = vpop.eup %8584  ;;  %7489 = vmatprep.mubr.msk.f32.mxu0 %vm8782_vm0, %v8783_v1  ;;  %7501 = vmatprep.mubr.msk.f32.mxu1 %vm8782_vm0, %v8783_v1 }
 0x660   :  { %v1013_v11 = vmul.f32 %v8585_v40, %v9165_v6  ;;  %v8587_v61 = vpop.eup %8586  ;;  %v8044_v6 = vpack.c.bf16 %v1454_v60, %v1453_v4 }
 0x661   :  { %v1015_v49 = vmul.f32 %v8587_v61, %v9167_v7 }
 0x662   :  { %7490 = vmatmul.mubr.msk.f32.gmra.mrb[34].mxu0 %vm41_vm1, %v1009_v41  ;;  %7502 = vmatmul.mubr.msk.f32.gmra.mrb[32].mxu1 %vm41_vm1, %v1013_v11 }
 0x663   :  { %7504 = vmatprep.mubr.msk.f32.mxu1 %vm8782_vm0, %v8783_v1  ;;  %7515 = vmatprep.mubr.msk.f32.mxu0 %vm8782_vm0, %v8783_v1 }
 0x664   :  { %8045 = vmatpush3.bf16.msra.mxu0 %v8044_v6 }
 0x665   :  { %8046 = vmatprep.subr.bf16.mxu0 %v8781_v0 }
 0x666   :  { %7505 = vmatmul.mubr.msk.f32.gmra.mrb[34].mxu1 %vm41_vm1, %v1015_v49 }
 0x667   :  { %7532 = vmatprep.mubr.msk.f32.mxu1 %vm8782_vm0, %v8783_v1 }
 0x668   :  { %8048 = vmatpush3.bf16.msra.mxu0 %v8047_v18 }
 0x669   :  { %8055 = vmatprep.subr.bf16.mxu0 %v8781_v0 }
 0x6c8   :  { %v1100_v52 = vpop.f32.mrb[24].mxu0 }
 0x6c9   :  { %v7455_v45 = vpop.f32.mrb[25].mxu0 }
 0x6cc   :  { %v1105_v62 = vpop.f32.mrb[26].mxu0 }
 0x6cd   :  { %v7458_v59 = vpop.f32.mrb[27].mxu0 }
 0x6d0   :  { %v1110_v2 = vpop.f32.mrb[28].mxu0 }
 0x6d1   :  { %v7461_v53 = vpop.f32.mrb[29].mxu0 }
 0x6f0   :  { %v1198_v8 = vpop.f32.mrb[24].mxu1 }
 0x6f1   :  { %v7470_v12 = vpop.f32.mrb[25].mxu1  ;;  %1411 = vrot.lane.b32.xlu1 %v1198_v8, %s8780_s23 }
 0x6f4   :  { %v1203_v7 = vpop.f32.mrb[26].mxu1 }
 0x6f5   :  { %v7473_v43 = vpop.f32.mrb[27].mxu1 }
 0x6f8   :  { %v1208_v58 = vpop.f32.mrb[28].mxu1 }
 0x6f9   :  { %v7476_v10 = vpop.f32.mrb[29].mxu1 }
 0x72d   :  { %v1296_v19 = vpop.f32.mrb[30].mxu0 }
 0x72e   :  { %1423 = vrot.lane.b32.xlu0 %v1296_v19, %s8791_s10  ;;  %v7485_v20 = vpop.f32.mrb[31].mxu0  ;;  %v1610_v19 = vld [vmem:[#allocation2 + $0x156] sm:$0xff] }
 0x72f   :  { %v1611_v20 = vld [vmem:[#allocation2 + $0x15e] sm:$0xff] }
 0x731   :  { %v1301_v22 = vpop.f32.mrb[32].mxu0  ;;  %v1394_v24 = vpop.f32.mrb[30].mxu1 }
 0x732   :  { %1435 = vrot.lane.b32.xlu1 %v1394_v24, %s8792_s11  ;;  %v7500_v16 = vpop.f32.mrb[31].mxu1  ;;  %1413 = vrot.lane.b32.xlu0 %v1203_v7, %s8780_s23  ;;  %v7488_v17 = vpop.f32.mrb[33].mxu0  ;;  %v1612_v24 = vld [vmem:[#allocation2 + $0x166] sm:$0xff] }
 0x733   :  { %v1613_v16 = vld [vmem:[#allocation2 + $0x16e] sm:$0xff] }
 0x734   :  { %v8053_v17 = vpack.c.bf16 %v1613_v16, %v1612_v24 }
 0x735   :  { %v1306_v25 = vpop.f32.mrb[34].mxu0  ;;  %v1399_v3 = vpop.f32.mrb[32].mxu1 }
 0x736   :  { %v7503_v26 = vpop.f32.mrb[33].mxu1  ;;  %1437 = vrot.lane.b32.xlu0 %v1399_v3, %s8792_s11  ;;  %1425 = vrot.lane.b32.xlu1 %v1301_v22, %s8791_s10  ;;  %v7491_v27 = vpop.f32.mrb[35].mxu0  ;;  %v8050_v22 = vpack.c.bf16 %v1611_v20, %v1610_v19  ;;  %v1712_v3 = vld [vmem:[#allocation2 + $0x17f] sm:$0xff] }
 0x737   :  { %v1713_v26 = vld [vmem:[#allocation2 + $0x187] sm:$0xff] }
 0x738   :  { %8051 = vmatpush3.bf16.msra.mxu1 %v8050_v22 }
 0x739   :  { %v1404_v15 = vpop.f32.mrb[34].mxu1  ;;  %8052 = vmatprep.subr.bf16.mxu1 %v8781_v0 }
 0x73a   :  { %v7506_v28 = vpop.f32.mrb[35].mxu1  ;;  %1415 = vrot.lane.b32.xlu1 %v1208_v58, %s8780_s23  ;;  %1427 = vrot.lane.b32.xlu0 %v1306_v25, %s8791_s10  ;;  %v1711_v25 = vld [vmem:[#allocation2 + $0x177] sm:$0xff] }
 0x73b   :  { %v8056_v27 = vpack.c.bf16 %v1712_v3, %v1711_v25 }
 0x73c   :  { %8054 = vmatpush3.bf16.msra.mxu1 %v8053_v17 }
 0x73d   :  { %8067 = vmatprep.subr.bf16.mxu1 %v8781_v0 }
 0x73e   :  { %1439 = vrot.lane.b32.xlu1 %v1404_v15, %s8792_s11  ;;  %v1714_v15 = vld [vmem:[#allocation2 + $0x18f] sm:$0xff] }
 0x73f   :  { %v8059_v28 = vpack.c.bf16 %v1714_v15, %v1713_v26 }
 0x763   :  { %v1412_v29 = vpop.permute.xlu1 %1411 }
 0x764   :  { %v1444_v13 = vsel %vm473_vm6, %v1100_v52, %v1412_v29  ;;  %v1715_v29 = vld [vmem:[#allocation2 + $0x197] sm:$0xff] }
 0x7a0   :  { %v1424_v30 = vpop.permute.xlu0 %1423 }
 0x7a1   :  { %v1447_v23 = vsel %vm254_vm4, %v1444_v13, %v1424_v30  ;;  %v1716_v30 = vld [vmem:[#allocation2 + $0x19f] sm:$0xff] }
 0x7a2   :  { %v8062_v13 = vpack.c.bf16 %v1716_v30, %v1715_v29 }
 0x7a4   :  { %v1436_v50 = vpop.permute.xlu1 %1435  ;;  %v1414_v33 = vpop.permute.xlu0 %1413 }
 0x7a5   :  { %v1450_v34 = vsel %vm41_vm1, %v1447_v23, %v1436_v50  ;;  %v1445_v63 = vsel %vm473_vm6, %v1105_v62, %v1414_v33 }
 0x7a6   :  { %7516 = vmatmul.mubr.msk.f32.vlgmr.msra.gmra.mrb[36].mxu0 %vm356_vm5, %v1450_v34 }
 0x7a7   :  { %7518 = vmatprep.mubr.msk.f32.mxu0 %vm8782_vm0, %v8783_v1  ;;  %8057 = vmatpush3.bf16.msra.mxu0 %v8056_v27 }
 0x7a8   :  { %v1438_v35 = vpop.permute.xlu0 %1437  ;;  %v1426_v36 = vpop.permute.xlu1 %1425  ;;  %8058 = vmatprep.subr.bf16.mxu0 %v8781_v0 }
 0x7a9   :  { %v1448_v37 = vsel %vm254_vm4, %v1445_v63, %v1426_v36 }
 0x7aa   :  { %v1451_v31 = vsel %vm41_vm1, %v1448_v37, %v1438_v35 }
 0x7ab   :  { %7519 = vmatmul.mubr.msk.f32.gmra.mrb[38].mxu0 %vm356_vm5, %v1451_v31 }
 0x7ac   :  { %v1416_v38 = vpop.permute.xlu1 %1415  ;;  %7521 = vmatprep.mubr.msk.f32.mxu0 %vm8782_vm0, %v8783_v1  ;;  %v1428_v42 = vpop.permute.xlu0 %1427  ;;  %8060 = vmatpush3.bf16.msra.mxu0 %v8059_v28 }
 0x7ad   :  { %v1446_v39 = vsel %vm473_vm6, %v1110_v2, %v1416_v38  ;;  %8061 = vmatprep.subr.bf16.mxu0 %v8781_v0  ;;  %v6829_v38 = vld [vmem:[#allocation2 + $0x1b8] ss:$0 sm:$0xff] }
 0x7ae   :  { %v1449_v44 = vsel %vm254_vm4, %v1446_v39, %v1428_v42 }
 0x7b0   :  { %v1440_v32 = vpop.permute.xlu1 %1439  ;;  %8063 = vmatpush3.bf16.msra.mxu0 %v8062_v13 }
 0x7b1   :  { %v1452_v5 = vsel %vm41_vm1, %v1449_v44, %v1440_v32  ;;  %8064 = vmatprep.subr.bf16.mxu0 %v8781_v0  ;;  %v6830_v44 = vld [vmem:[#allocation2 + $0x1b9] ss:$0 sm:$0xff] }
 0x7b2   :  { %7522 = vmatmul.mubr.msk.f32.gmra.mrb[40].mxu0 %vm356_vm5, %v1452_v5 }
 0x7b3   :  { %7557 = vmatprep.mubr.msk.f32.mxu0 %vm8782_vm0, %v8783_v1 }
 0x879   :  { %v1537_v48 = vpop.f32.mrb[36].mxu0 }
 0x87a   :  { %v1538_v54 = vadd.f32 %v6825_v46, %v1537_v48  ;;  %v7517_v56 = vpop.f32.mrb[37].mxu0 }
 0x87c   :  { %v1551_v57 = vadd.f32 %v1538_v54, %v8891_v47 }
 0x87e   :  { %v1542_v40 = vpop.f32.mrb[38].mxu0  ;;  %v1556_v41 = vsel %vm356_vm5, %v1551_v57, 0.0 }
 0x87f   :  { %v1543_v11 = vadd.f32 %v6825_v46, %v1542_v40  ;;  %1557 = vadd.xlane.f32.xlu0 %v1556_v41  ;;  %v7520_v61 = vpop.f32.mrb[39].mxu0 }
 0x880   :  { %v1717_v61 = vld [vmem:[#allocation2 + $0x1a7] sm:$0xff] }
 0x881   :  { %v1552_v49 = vadd.f32 %v1543_v11, %v8897_v51 }
 0x883   :  { %v1559_v52 = vsel %vm356_vm5, %v1552_v49, 0.0 }
 0x884   :  { %1560 = vadd.xlane.f32.xlu1 %v1559_v52 }
 0x885   :  { %v1547_v45 = vpop.f32.mrb[40].mxu0 }
 0x886   :  { %v1548_v62 = vadd.f32 %v6825_v46, %v1547_v45  ;;  %v7523_v59 = vpop.f32.mrb[41].mxu0  ;;  %v6831_v45 = vld [vmem:[#allocation2 + $0x176] ss:$0 sm:$0xff] }
 0x888   :  { %v1553_v2 = vadd.f32 %v1548_v62, %v8903_v55 }
 0x88a   :  { %v1562_v53 = vsel %vm356_vm5, %v1553_v2, 0.0 }
 0x88b   :  { %1563 = vadd.xlane.f32.xlu0 %v1562_v53 }
 0x90c   :  { %v1558_v47 = vpop.xlane.xlu0 %1557 }
 0x90d   :  { %v1566_v4 = vmul.f32 0.03125, %v1558_v47 }
 0x90f   :  { %v1569_v60 = vsub.f32 %v1551_v57, %v1566_v4 }
 0x911   :  { %v1561_v6 = vpop.xlane.xlu1 %1560  ;;  %v1572_v8 = vmul.f32 %v1569_v60, %v1569_v60 }
 0x912   :  { %v1567_v12 = vmul.f32 0.03125, %v1561_v6 }
 0x913   :  { %v1575_v7 = vsel %vm356_vm5, %v1572_v8, 0.0 }
 0x914   :  { %v1570_v51 = vsub.f32 %v1552_v49, %v1567_v12  ;;  %1576 = vadd.xlane.f32.xlu0 %v1575_v7  ;;  %v1718_v49 = vld [vmem:[#allocation2 + $0x1af] sm:$0xff] }
 0x915   :  { %v8065_v52 = vpack.c.bf16 %v1718_v49, %v1717_v61 }
 0x916   :  { %v1573_v43 = vmul.f32 %v1570_v51, %v1570_v51 }
 0x917   :  { %8066 = vmatpush3.bf16.msra.mxu0 %v8065_v52 }
 0x918   :  { %v1564_v58 = vpop.xlane.xlu0 %1563  ;;  %v1578_v10 = vsel %vm356_vm5, %v1573_v43, 0.0  ;;  %8073 = vmatprep.subr.bf16.mxu0 %v8781_v0  ;;  %v6835_v43 = vld [vmem:[#allocation2 + $0x1b7] ss:$0 sm:$0xff] }
 0x919   :  { %v1568_v14 = vmul.f32 0.03125, %v1564_v58  ;;  %1579 = vadd.xlane.f32.xlu1 %v1578_v10 }
 0x91b   :  { %v1571_v55 = vsub.f32 %v1553_v2, %v1568_v14 }
 0x91d   :  { %v1574_v9 = vmul.f32 %v1571_v55, %v1571_v55 }
 0x91f   :  { %v1581_v18 = vsel %vm356_vm5, %v1574_v9, 0.0 }
 0x920   :  { %1582 = vadd.xlane.f32.xlu0 %v1581_v18 }
 0x9a1   :  { %v1577_v23 = vpop.xlane.xlu0 %1576 }
 0x9a2   :  { %v1584_v50 = vmul.f32 0.03125, %v1577_v23 }
 0x9a4   :  { %v1587_v33 = vadd.f32 1e-05, %v1584_v50 }
 0x9a6   :  { %8588 = vrsqrt.f32 %v1587_v33  ;;  %v1580_v34 = vpop.xlane.xlu1 %1579 }
 0x9a7   :  { %v1585_v63 = vmul.f32 0.03125, %v1580_v34 }
 0x9a9   :  { %v1588_v35 = vadd.f32 1e-05, %v1585_v63 }
 0x9ab   :  { %8590 = vrsqrt.f32 %v1588_v35 }
 0x9ad   :  { %v1583_v36 = vpop.xlane.xlu0 %1582 }
 0x9ae   :  { %v1586_v37 = vmul.f32 0.03125, %v1583_v36 }
 0x9b0   :  { %v8589_v31 = vpop.eup %8588  ;;  %v1589_v39 = vadd.f32 1e-05, %v1586_v37 }
 0x9b1   :  { %v1593_v42 = vmul.f32 %v8589_v31, %v1569_v60 }
 0x9b2   :  { %8592 = vrsqrt.f32 %v1589_v39 }
 0x9b3   :  { %v1600_v32 = vmul.f32 %v6829_v38, %v1593_v42 }
 0x9b5   :  { %v8591_v5 = vpop.eup %8590  ;;  %v1607_v46 = vadd.f32 %v6830_v44, %v1600_v32 }
 0x9b6   :  { %v1594_v48 = vmul.f32 %v8591_v5, %v1570_v51 }
 0x9b7   :  { %7533 = vmatmul.mubr.msk.f32.vlgmr.msra.gmra.mrb[36].mxu1 %vm356_vm5, %v1607_v46 }
 0x9b8   :  { %7535 = vmatprep.mubr.msk.f32.mxu1 %vm8782_vm0, %v8783_v1  ;;  %v1601_v54 = vmul.f32 %v6829_v38, %v1594_v48 }
 0x9ba   :  { %v1608_v56 = vadd.f32 %v6830_v44, %v1601_v54 }
 0x9bc   :  { %v8593_v57 = vpop.eup %8592  ;;  %7536 = vmatmul.mubr.msk.f32.gmra.mrb[38].mxu1 %vm356_vm5, %v1608_v56 }
 0x9bd   :  { %7538 = vmatprep.mubr.msk.f32.mxu1 %vm8782_vm0, %v8783_v1  ;;  %v1595_v40 = vmul.f32 %v8593_v57, %v1571_v55  ;;  %v6839_v57 = vld [vmem:[#allocation2 + $0x1ba] ss:$0 sm:$0xff] }
 0x9bf   :  { %v1602_v41 = vmul.f32 %v6829_v38, %v1595_v40 }
 0x9c1   :  { %v1609_v11 = vadd.f32 %v6830_v44, %v1602_v41  ;;  %v6840_v41 = vld [vmem:[#allocation2 + $0x1bb] ss:$0 sm:$0xff] }
 0x9c3   :  { %7539 = vmatmul.mubr.msk.f32.gmra.mrb[40].mxu1 %vm356_vm5, %v1609_v11 }
 0x9c4   :  { %7572 = vmatprep.mubr.msk.f32.mxu1 %vm8782_vm0, %v8783_v1 }
 0xa8a   :  { %v1694_v62 = vpop.f32.mrb[36].mxu1 }
 0xa8b   :  { %v1695_v59 = vadd.f32 %v6831_v45, %v1694_v62  ;;  %v7534_v2 = vpop.f32.mrb[37].mxu1 }
 0xa8d   :  { %v1708_v53 = vmax.f32 %v1695_v59, 0.0 }
 0xa8f   :  { %v1699_v47 = vpop.f32.mrb[38].mxu1  ;;  %7558 = vmatmul.mubr.msk.f32.vlgmr.msra.gmra.mrb[42].mxu0 %vm1724_vm8, %v1708_v53 }
 0xa90   :  { %v1700_v4 = vadd.f32 %v6831_v45, %v1699_v47  ;;  %v7537_v60 = vpop.f32.mrb[39].mxu1  ;;  %7560 = vmatprep.mubr.msk.f32.mxu0 %vm8782_vm0, %v8783_v1 }
 0xa91   :  { %v1872_v60 = vld [vmem:[#allocation2 + $0x48] sm:$0xff] }
 0xa92   :  { %v1709_v6 = vmax.f32 %v1700_v4, 0.0 }
 0xa94   :  { %7561 = vmatmul.mubr.msk.f32.gmra.mrb[44].mxu0 %vm1724_vm8, %v1709_v6  ;;  %v1873_v6 = vld [vmem:[#allocation2 + $0x50] sm:$0xff] }
 0xa95   :  { %7563 = vmatprep.mubr.msk.f32.mxu0 %vm8782_vm0, %v8783_v1 }
 0xa96   :  { %v1704_v8 = vpop.f32.mrb[40].mxu1 }
 0xa97   :  { %v1705_v12 = vadd.f32 %v6831_v45, %v1704_v8  ;;  %v7540_v7 = vpop.f32.mrb[41].mxu1  ;;  %v1874_v8 = vld [vmem:[#allocation2 + $0x58] sm:$0xff] }
 0xa98   :  { %v1965_v7 = vld [vmem:[#allocation2 + $0x68] sm:$0xff] }
 0xa99   :  { %v1710_v51 = vmax.f32 %v1705_v12, 0.0  ;;  %v1964_v12 = vld [vmem:[#allocation2 + $0x60] sm:$0xff] }
 0xa9b   :  { %7564 = vmatmul.mubr.msk.f32.gmra.mrb[46].mxu0 %vm1724_vm8, %v1710_v51  ;;  %v1966_v51 = vld [vmem:[#allocation2 + $0x70] sm:$0xff] }
 0xa9c   :  { %7620 = vmatprep.mubr.msk.f32.mxu0 %vm8782_vm0, %v8783_v1 }
 0xb62   :  { %v1800_v58 = vpop.f32.mrb[42].mxu0 }
 0xb63   :  { %v1801_v10 = vadd.f32 %v6835_v43, %v1800_v58  ;;  %v7559_v14 = vpop.f32.mrb[43].mxu0  ;;  %v2087_v58 = vld [vmem:[#allocation2 + $0x26c] sm:$0xff] }
 0xb65   :  { %v1814_v55 = vadd.f32 %v1801_v10, %v1607_v46  ;;  %v2088_v10 = vld [vmem:[#allocation2 + $0x274] sm:$0xff] }
 0xb67   :  { %v1805_v9 = vpop.f32.mrb[44].mxu0  ;;  %v1819_v18 = vsel %vm356_vm5, %v1814_v55, 0.0 }
 0xb68   :  { %v1806_v19 = vadd.f32 %v6835_v43, %v1805_v9  ;;  %1820 = vadd.xlane.f32.xlu1 %v1819_v18  ;;  %v7562_v20 = vpop.f32.mrb[45].mxu0  ;;  %v2090_v18 = vld [vmem:[#allocation2 + $0x284] sm:$0xff] }
 0xb6a   :  { %v1815_v22 = vadd.f32 %v1806_v19, %v1608_v56  ;;  %v2091_v19 = vld [vmem:[#allocation2 + $0x28c] sm:$0xff] }
 0xb6b   :  { %v8080_v20 = vpack.c.bf16 %v2091_v19, %v2090_v18 }
 0xb6c   :  { %v1822_v24 = vsel %vm356_vm5, %v1815_v22, 0.0 }
 0xb6d   :  { %1823 = vadd.xlane.f32.xlu0 %v1822_v24  ;;  %v2093_v24 = vld [vmem:[#allocation2 + $0x29c] sm:$0xff] }
 0xb6e   :  { %v1810_v16 = vpop.f32.mrb[46].mxu0 }
 0xb6f   :  { %v1811_v17 = vadd.f32 %v6835_v43, %v1810_v16  ;;  %v7565_v25 = vpop.f32.mrb[47].mxu0  ;;  %v2086_v43 = vld [vmem:[#allocation2 + $0x264] sm:$0xff] }
 0xb70   :  { %v8074_v14 = vpack.c.bf16 %v2087_v58, %v2086_v43  ;;  %v2095_v25 = vld [vmem:[#allocation2 + $0x2ac] sm:$0xff] }
 0xb71   :  { %v1816_v3 = vadd.f32 %v1811_v17, %v1609_v11  ;;  %v2094_v17 = vld [vmem:[#allocation2 + $0x2a4] sm:$0xff] }
 0xb72   :  { %8075 = vmatpush3.bf16.msra.mxu0 %v8074_v14 }
 0xb73   :  { %v1825_v26 = vsel %vm356_vm5, %v1816_v3, 0.0  ;;  %8076 = vmatprep.subr.bf16.mxu0 %v8781_v0 }
 0xb74   :  { %1826 = vadd.xlane.f32.xlu1 %v1825_v26  ;;  %v2096_v26 = vld [vmem:[#allocation2 + $0x2b4] sm:$0xff] }
 0xbf5   :  { %v1821_v27 = vpop.xlane.xlu1 %1820 }
 0xbf6   :  { %v1828_v15 = vmul.f32 0.03125, %v1821_v27  ;;  %v2097_v27 = vld [vmem:[#allocation2 + $0x2bc] sm:$0xff] }
 0xbf8   :  { %v1831_v28 = vsub.f32 %v1814_v55, %v1828_v15  ;;  %v2089_v55 = vld [vmem:[#allocation2 + $0x27c] sm:$0xff]  ;;  %v8089_v15 = vpack.c.bf16 %v2097_v27, %v2096_v26 }
 0xbf9   :  { %v8077_v9 = vpack.c.bf16 %v2089_v55, %v2088_v10 }
 0xbfa   :  { %v1824_v29 = vpop.xlane.xlu0 %1823  ;;  %v1834_v30 = vmul.f32 %v1831_v28, %v1831_v28 }
 0xbfb   :  { %v1829_v13 = vmul.f32 0.03125, %v1824_v29  ;;  %8078 = vmatpush3.bf16.msra.mxu0 %v8077_v9 }
 0xbfc   :  { %v1837_v23 = vsel %vm356_vm5, %v1834_v30, 0.0  ;;  %8079 = vmatprep.subr.bf16.mxu0 %v8781_v0 }
 0xbfd   :  { %v1832_v50 = vsub.f32 %v1815_v22, %v1829_v13  ;;  %1838 = vadd.xlane.f32.xlu0 %v1837_v23  ;;  %v2092_v22 = vld [vmem:[#allocation2 + $0x294] sm:$0xff] }
 0xbfe   :  { %v8083_v16 = vpack.c.bf16 %v2093_v24, %v2092_v22 }
 0xbff   :  { %v1835_v33 = vmul.f32 %v1832_v50, %v1832_v50  ;;  %8081 = vmatpush3.bf16.msra.mxu0 %v8080_v20 }
 0xc00   :  { %8082 = vmatprep.subr.bf16.mxu0 %v8781_v0 }
 0xc01   :  { %v1827_v34 = vpop.xlane.xlu1 %1826  ;;  %v1840_v63 = vsel %vm356_vm5, %v1835_v33, 0.0 }
 0xc02   :  { %v1830_v35 = vmul.f32 0.03125, %v1827_v34  ;;  %1841 = vadd.xlane.f32.xlu1 %v1840_v63 }
 0xc03   :  { %8084 = vmatpush3.bf16.msra.mxu0 %v8083_v16 }
 0xc04   :  { %v1833_v36 = vsub.f32 %v1816_v3, %v1830_v35  ;;  %v8086_v3 = vpack.c.bf16 %v2095_v25, %v2094_v17  ;;  %8085 = vmatprep.subr.bf16.mxu0 %v8781_v0 }
 0xc06   :  { %v1836_v37 = vmul.f32 %v1833_v36, %v1833_v36 }
 0xc07   :  { %8087 = vmatpush3.bf16.msra.mxu0 %v8086_v3 }
 0xc08   :  { %v1843_v31 = vsel %vm356_vm5, %v1836_v37, 0.0  ;;  %8088 = vmatprep.subr.bf16.mxu0 %v8781_v0 }
 0xc09   :  { %1844 = vadd.xlane.f32.xlu0 %v1843_v31 }
 0xc0b   :  { %8090 = vmatpush3.bf16.msra.mxu0 %v8089_v15 }
 0xc8a   :  { %v1839_v38 = vpop.xlane.xlu0 %1838 }
 0xc8b   :  { %v1846_v39 = vmul.f32 0.03125, %v1839_v38 }
 0xc8d   :  { %v1849_v42 = vadd.f32 1e-05, %v1846_v39 }
 0xc8f   :  { %8594 = vrsqrt.f32 %v1849_v42  ;;  %v1842_v44 = vpop.xlane.xlu1 %1841 }
 0xc90   :  { %v1847_v32 = vmul.f32 0.03125, %v1842_v44 }
 0xc92   :  { %v1850_v5 = vadd.f32 1e-05, %v1847_v32 }
 0xc94   :  { %8596 = vrsqrt.f32 %v1850_v5 }
 0xc96   :  { %v1845_v46 = vpop.xlane.xlu0 %1844 }
 0xc97   :  { %v1848_v48 = vmul.f32 0.03125, %v1845_v46 }
 0xc99   :  { %v8595_v54 = vpop.eup %8594  ;;  %v1851_v56 = vadd.f32 1e-05, %v1848_v48 }
 0xc9a   :  { %v1855_v40 = vmul.f32 %v8595_v54, %v1831_v28 }
 0xc9b   :  { %8598 = vrsqrt.f32 %v1851_v56 }
 0xc9c   :  { %v1862_v11 = vmul.f32 %v6839_v57, %v1855_v40  ;;  %v2227_v40 = vld [vmem:[#allocation2 + $0xbc] sm:$0xff] }
 0xc9e   :  { %v8597_v61 = vpop.eup %8596  ;;  %v1869_v49 = vadd.f32 %v6840_v41, %v1862_v11  ;;  %v2395_v11 = vld [vmem:[#allocation2 + $0xe0] sm:$0xff] }
 0xc9f   :  { %v1856_v52 = vmul.f32 %v8597_v61, %v1832_v50  ;;  %v8794_v61 = vmov 0  }
 0xca0   :  { %2059 = vrot.lane.b32.xlu1 %v1869_v49, %s8793_s12  ;;  %8423 = vset.pattern.permute.xlu0 %v8794_v61 }
 0xca1   :  { %v1863_v45 = vmul.f32 %v6839_v57, %v1856_v52  ;;  %8424 = vset.pattern.permute.xlu1 %v8794_v61 }
 0xca3   :  { %v1870_v62 = vadd.f32 %v6840_v41, %v1863_v45  ;;  %v6851_v45 = vld [vmem:[#allocation2 + $0x2c5] ss:$0 sm:$0xff] }
 0xca5   :  { %v8599_v59 = vpop.eup %8598  ;;  %2061 = vrot.lane.b32.xlu1 %v1870_v62, %s8793_s12  ;;  %v8068_v2 = vpack.c.bf16 %v1870_v62, %v1869_v49  ;;  %v6847_v49 = vld [vmem:[#allocation2 + $0x2c4] ss:$0 sm:$0xff] }
 0xca6   :  { %v1857_v53 = vmul.f32 %v8599_v59, %v1833_v36 }
 0xca7   :  { %8069 = vmatpush3.bf16.msra.mxu1 %v8068_v2 }
 0xca8   :  { %7570 = vmatprep.subr.mxu1 %v8783_v1  ;;  %v1864_v47 = vmul.f32 %v6839_v57, %v1857_v53 }
 0xcaa   :  { %v1871_v4 = vadd.f32 %v6840_v41, %v1864_v47  ;;  %v2396_v41 = vld [vmem:[#allocation2 + $0xe8] sm:$0xf] }
 0xcac   :  { %7571 = vmatpush3.msra.mxu1 %v1871_v4 }
 0xcad   :  { %7573 = vmatmul.mubr.msk.f32.vlgmr.msra.gmra.mrb[42].mxu1 %vm41_vm1, %v1872_v60  ;;  %8070 = vmatprep.subr.bf16.mxu1 %v8781_v0 }
 0xcae   :  { %8072 = vmatpush3.bf16.msra.mxu1 %v8068_v2  ;;  %7575 = vmatprep.mubr.msk.f32.mxu1 %vm8782_vm0, %v8783_v1  ;;  %v6852_v2 = vld [vmem:[#allocation2 + $0x2c6] ss:$0 sm:$0xff] }
 0xcaf   :  { %7585 = vmatprep.subr.mxu1 %v8783_v1 }
 0xcb1   :  { %7576 = vmatmul.mubr.msk.f32.gmra.mrb[44].mxu1 %vm41_vm1, %v1873_v6 }
 0xcb2   :  { %7586 = vmatpush3.msra.mxu1 %v1871_v4  ;;  %7578 = vmatprep.mubr.msk.f32.mxu1 %vm8782_vm0, %v8783_v1 }
 0xcb5   :  { %7579 = vmatmul.mubr.msk.f32.gmra.mrb[46].mxu1 %vm41_vm1, %v1874_v8 }
 0xcb6   :  { %7587 = vmatprep.mubr.msk.f32.mxu1 %vm8782_vm0, %v8783_v1 }
 0xcb9   :  { %7588 = vmatmul.mubr.msk.f32.vlgmr.msra.gmra.mrb[48].mxu1 %vm41_vm1, %v1964_v12 }
 0xcba   :  { %7590 = vmatprep.mubr.msk.f32.mxu1 %vm8782_vm0, %v8783_v1 }
 0xcbd   :  { %7591 = vmatmul.mubr.msk.f32.gmra.mrb[50].mxu1 %vm41_vm1, %v1965_v7 }
 0xcbe   :  { %7593 = vmatprep.mubr.msk.f32.mxu1 %vm8782_vm0, %v8783_v1 }
 0xcc1   :  { %7594 = vmatmul.mubr.msk.f32.gmra.mrb[52].mxu1 %vm41_vm1, %v1966_v51 }
 0xcc2   :  { %7635 = vmatprep.mubr.msk.f32.mxu1 %vm41_vm1, %v2227_v40 }
 0xd12   :  { %v2060_v31 = vpop.permute.xlu1 %2059 }
 0xd17   :  { %v2062_v38 = vpop.permute.xlu1 %2061 }
 0xd80   :  { %v1950_v28 = vpop.f32.mrb[42].mxu1 }
 0xd81   :  { %v7574_v29 = vpop.f32.mrb[43].mxu1  ;;  %v2080_v39 = vsel %vm356_vm5, %v1950_v28, %v2060_v31 }
 0xd82   :  { %v2228_v29 = vld [vmem:[#allocation2 + $0xc4] sm:$0xf] }
 0xd84   :  { %v1955_v30 = vpop.f32.mrb[44].mxu1 }
 0xd85   :  { %v7577_v13 = vpop.f32.mrb[45].mxu1  ;;  %v2081_v32 = vsel %vm356_vm5, %v1955_v30, %v2062_v38  ;;  %v2310_v30 = vld [vmem:[#allocation2 + $0xc8] sm:$0xff] }
 0xd86   :  { %v2311_v13 = vld [vmem:[#allocation2 + $0xd0] sm:$0xf] }
 0xd88   :  { %v1960_v23 = vpop.f32.mrb[46].mxu1 }
 0xd89   :  { %v7580_v50 = vpop.f32.mrb[47].mxu1 }
 0xd8a   :  { %v2394_v50 = vld [vmem:[#allocation2 + $0xdc] sm:$0xf] }
 0xd8c   :  { %v2042_v33 = vpop.f32.mrb[48].mxu1 }
 0xd8d   :  { %2071 = vrot.lane.b32.xlu0 %v2042_v33, %s8790_s9  ;;  %v7589_v34 = vpop.f32.mrb[49].mxu1  ;;  %v2494_v33 = vld [vmem:[#allocation2 + $0x1bc] sm:$0xff] }
 0xd8e   :  { %v2495_v34 = vld [vmem:[#allocation2 + $0x1c4] sm:$0xff] }
 0xd90   :  { %v2047_v63 = vpop.f32.mrb[50].mxu1 }
 0xd91   :  { %2063 = vrot.lane.b32.xlu0 %v1871_v4, %s8793_s12  ;;  %2073 = vrot.lane.b32.xlu1 %v2047_v63, %s8790_s9  ;;  %v7592_v35 = vpop.f32.mrb[51].mxu1  ;;  %v8103_v63 = vpack.c.bf16 %v2495_v34, %v2494_v33 }
 0xd92   :  { %v2496_v35 = vld [vmem:[#allocation2 + $0x1cc] sm:$0xff] }
 0xd93   :  { %8104 = vmatprep.subr.bf16.mxu0 %v8103_v63 }
 0xd94   :  { %v2052_v36 = vpop.f32.mrb[52].mxu1 }
 0xd95   :  { %2075 = vrot.lane.b32.xlu1 %v2052_v36, %s8790_s9  ;;  %v7595_v37 = vpop.f32.mrb[53].mxu1  ;;  %2399 = vperm.xlu0 %8423, %v2395_v11   ;;  %v2497_v36 = vld [vmem:[#allocation2 + $0x1d4] sm:$0xff]  ;;  %v6862_v11 = vld [vmem:[#allocation2 + $0x1dc] ss:$0 sm:$0xff] }
 0xd96   :  { %v8107_v37 = vpack.c.bf16 %v2497_v36, %v2496_v35 }
 0xd99   :  { %2404 = vperm.xlu1 %8424, %v2396_v41  }
 0xdff   :  { %v2072_v42 = vpop.permute.xlu0 %2071 }
 0xe00   :  { %v2083_v44 = vsel %vm1724_vm8, %v2080_v39, %v2072_v42 }
 0xe01   :  { %7621 = vmatmul.mubr.msk.f32.vlgmr.msra.gmra.mrb[48].mxu0 %vm2103_vm9, %v2083_v44 }
 0xe02   :  { %7623 = vmatprep.mubr.msk.f32.mxu0 %vm8782_vm0, %v8783_v1  ;;  %8106 = vmatpush3.bf16.msra.mxu0 %v8103_v63 }
 0xe03   :  { %v2074_v5 = vpop.permute.xlu1 %2073  ;;  %v2064_v46 = vpop.permute.xlu0 %2063  ;;  %8108 = vmatprep.subr.bf16.mxu0 %v8107_v37 }
 0xe04   :  { %v2084_v48 = vsel %vm1724_vm8, %v2081_v32, %v2074_v5  ;;  %v2082_v54 = vsel %vm356_vm5, %v1960_v23, %v2064_v46  ;;  %v2393_v23 = vld [vmem:[#allocation2 + $0xd4] sm:$0xff] }
 0xe05   :  { %7624 = vmatmul.mubr.msk.f32.gmra.mrb[50].mxu0 %vm2103_vm9, %v2084_v48 }
 0xe06   :  { %7626 = vmatprep.mubr.msk.f32.mxu0 %vm8782_vm0, %v8783_v1  ;;  %8110 = vmatpush3.bf16.msra.mxu0 %v8107_v37 }
 0xe07   :  { %v2076_v56 = vpop.permute.xlu1 %2075 }
 0xe08   :  { %v2085_v57 = vsel %vm1724_vm8, %v2082_v54, %v2076_v56 }
 0xe09   :  { %7627 = vmatmul.mubr.msk.f32.gmra.mrb[52].mxu0 %vm2103_vm9, %v2085_v57  ;;  %vm9420_vm9 = vmpackc.low %vm3062_vm14, %vm8795_vm15 }
 0xe14   :  { %v2400_v46 = vpop.permute.xlu0 %2399 }
 0xe18   :  { %v2405_v5 = vpop.permute.xlu1 %2404 }
 0xed4   :  { %v2179_v52 = vpop.f32.mrb[48].mxu0 }
 0xed5   :  { %v2180_v62 = vadd.f32 %v6847_v49, %v2179_v52  ;;  %v7622_v59 = vpop.f32.mrb[49].mxu0 }
 0xed7   :  { %v2198_v53 = vmul.f32 %v6851_v45, %v2180_v62 }
 0xed8   :  { %v2184_v47 = vpop.f32.mrb[50].mxu0 }
 0xed9   :  { %v2206_v4 = vadd.f32 %v6852_v2, %v2198_v53  ;;  %v2185_v60 = vadd.f32 %v6847_v49, %v2184_v47  ;;  %v7625_v6 = vpop.f32.mrb[51].mxu0 }
 0xedb   :  { %v2212_v8 = vmin.f32 %v2206_v4, 0.0  ;;  %v2199_v12 = vmul.f32 %v6851_v45, %v2185_v60  ;;  %vm2209_vm10 = vcmp.gt.f32.partialorder %v2206_v4, 0.0 }
 0xedc   :  { %v2189_v7 = vpop.f32.mrb[52].mxu0 }
 0xedd   :  { %v2215_v51 = vmul.f32 1.442695, %v2212_v8  ;;  %v2207_v43 = vadd.f32 %v6852_v2, %v2199_v12  ;;  %v2190_v58 = vadd.f32 %v6847_v49, %v2189_v7  ;;  %v7628_v10 = vpop.f32.mrb[53].mxu0 }
 0xedf   :  { %8600 = vpow2.f32 %v2215_v51  ;;  %v2213_v14 = vmin.f32 %v2207_v43, 0.0  ;;  %v2200_v55 = vmul.f32 %v6851_v45, %v2190_v58  ;;  %vm2210_vm11 = vcmp.gt.f32.partialorder %v2207_v43, 0.0 }
 0xee1   :  { %v2217_v9 = vmul.f32 1.442695, %v2213_v14  ;;  %v2208_v18 = vadd.f32 %v6852_v2, %v2200_v55 }
 0xee3   :  { %8602 = vpow2.f32 %v2217_v9  ;;  %v2214_v19 = vmin.f32 %v2208_v18, 0.0  ;;  %vm2211_vm12 = vcmp.gt.f32.partialorder %v2208_v18, 0.0 }
 0xee5   :  { %v2219_v20 = vmul.f32 1.442695, %v2214_v19 }
 0xee7   :  { %8604 = vpow2.f32 %v2219_v20 }
 0xee9   :  { %v8601_v22 = vpop.eup %8600 }
 0xeea   :  { %v6853_v24 = vadd.f32 -1.0, %v8601_v22 }
 0xeec   :  { %v2224_v25 = vsel %vm2209_vm10, %v2206_v4, %v6853_v24  ;;  %vm3531_vm10 = vcmask 257024  }
 0xeed   :  { %v8603_v16 = vpop.eup %8602 }
 0xeee   :  { %v6854_v17 = vadd.f32 -1.0, %v8603_v16 }
 0xef0   :  { %v2225_v3 = vsel %vm2210_vm11, %v2207_v43, %v6854_v17 }
 0xef1   :  { %v8605_v26 = vpop.eup %8604  ;;  %v8091_v27 = vpack.c.bf16 %v2225_v3, %v2224_v25 }
 0xef2   :  { %v6855_v15 = vadd.f32 -1.0, %v8605_v26  ;;  %v2493_v26 = vld [vmem:[#allocation2 + $0x80] sm:$0xf] }
 0xef3   :  { %8092 = vmatprep.subr.bf16.mxu1 %v8091_v27 }
 0xef4   :  { %8094 = vmatpush3.bf16.msra.mxu1 %v8091_v27  ;;  %v2226_v28 = vsel %vm2211_vm12, %v2208_v18, %v6855_v15 }
 0xef5   :  { %7633 = vmatprep.subr.mxu1 %v2226_v28 }
 0xef8   :  { %7634 = vmatpush3.msra.mxu1 %v2226_v28 }
 0xef9   :  { %8096 = vmatprep.subr.bf16.mxu1 %v8091_v27  ;;  %7636 = vmatmul.mubr.msk.f32.vlgmr.msra.gmra.mrb[54].mxu1 %vm41_vm1, %v2228_v29 }
 0xefa   :  { %8098 = vmatpush3.bf16.msra.mxu1 %v8091_v27  ;;  %7644 = vmatprep.mubr.msk.f32.mxu1 %vm41_vm1, %v2310_v30 }
 0xefb   :  { %7642 = vmatprep.subr.mxu1 %v2226_v28 }
 0xefe   :  { %7643 = vmatpush3.msra.mxu1 %v2226_v28 }
 0xeff   :  { %7645 = vmatmul.mubr.msk.f32.vlgmr.msra.gmra.mrb[56].mxu1 %vm41_vm1, %v2311_v13  ;;  %8100 = vmatprep.subr.bf16.mxu1 %v8091_v27 }
 0xf00   :  { %8102 = vmatpush3.bf16.msra.mxu1 %v8091_v27  ;;  %7653 = vmatprep.mubr.msk.f32.mxu1 %vm41_vm1, %v2393_v23 }
 0xf01   :  { %7651 = vmatprep.subr.mxu1 %v2226_v28 }
 0xf04   :  { %7652 = vmatpush3.msra.mxu1 %v2226_v28  ;;  %v2492_v28 = vld [vmem:[#allocation2 + $0x78] sm:$0xff] }
 0xf05   :  { %7654 = vmatmul.mubr.msk.f32.vlgmr.msra.gmra.mrb[58].mxu1 %vm41_vm1, %v2394_v50 }
 0xfcc   :  { %v7637_v31 = vpop.f32.mrb[54].mxu1 }
 0xfcd   :  { %v2301_v38 = vpop.f32.mrb[55].mxu1 }
 0xfd2   :  { %v7646_v39 = vpop.f32.mrb[56].mxu1 }
 0xfd3   :  { %v2489_v42 = vmax.f32 %v7637_v31, %v7646_v39  ;;  %v2384_v44 = vpop.f32.mrb[57].mxu1 }
 0xfd4   :  { %v2488_v32 = vmax.f32 %v2301_v38, %v2384_v44 }
 0xfd8   :  { %v7655_v48 = vpop.f32.mrb[58].mxu1 }
 0xfd9   :  { %v2485_v54 = vadd.f32 %v7655_v48, %v2405_v5  ;;  %v2479_v56 = vpop.f32.mrb[59].mxu1 }
 0xfda   :  { %v2480_v57 = vadd.f32 %v2479_v56, %v2400_v46 }
 0xfdb   :  { %v9346_v40 = vmax.f32 %v2489_v42, %v2485_v54 }
 0xfdc   :  { %v9348_v41 = vmax.f32 %v2488_v32, %v2480_v57 }
 0xfde   :  { %7664 = vmatprep.mubr.msk.f32.mxu0 %vm356_vm5, %v9348_v41 }
 0xfdf   :  { %7665 = vmatmul.mubr.msk.f32.vlgmr.msra.gmra.mrb[54].mxu0 %vm356_vm5, %v9346_v40 }
0x10b2   :  { %v7666_v61 = vpop.f32.mrb[54].mxu0 }
0x10b3   :  { %v2581_v49 = vadd.f32 %v7666_v61, %v6862_v11  ;;  %v2575_v52 = vpop.f32.mrb[55].mxu0 }
0x10b4   :  { %v2576_v45 = vadd.f32 %v6862_v11, %v2575_v52 }
0x10b5   :  { %2588 = vrot.lane.b32.xlu0 %v2581_v49, %s8786_s5 }
0x10b6   :  { %2586 = vrot.lane.b32.xlu1 %v2576_v45, %s8786_s5  ;;  %7671 = vmatprep.mubr.msk.f32.mxu1 %vm473_vm6, %v2576_v45  ;;  %v9361_v62 = vpack.i.bf16 %v2581_v49, %v2576_v45 }
0x10b9   :  { %2592 = vrot.lane.b32.xlu0 %v2581_v49, %s8787_s6 }
0x10ba   :  { %2590 = vrot.lane.b32.xlu1 %v2576_v45, %s8787_s6 }
0x10bd   :  { %2596 = vrot.lane.b32.xlu0 %v2581_v49, %s8788_s7 }
0x10be   :  { %2594 = vrot.lane.b32.xlu1 %v2576_v45, %s8788_s7 }
0x10c2   :  { %8426 = vrot.lane.b32.xlu1 %v9361_v62, %s8789_s8 }
0x1127   :  { %v2589_v59 = vpop.permute.xlu0 %2588 }
0x1128   :  { %v2587_v2 = vpop.permute.xlu1 %2586 }
0x1129   :  { %7678 = vmatprep.mubr.msk.f32.mxu0 %vm473_vm6, %v2587_v2  ;;  %v9366_v53 = vpack.i.bf16 %v2589_v59, %v2587_v2 }
0x112b   :  { %v2593_v47 = vpop.permute.xlu0 %2592  ;;  %8431 = vrot.lane.b32.xlu0 %v9366_v53, %s8789_s8 }
0x112c   :  { %v2591_v4 = vpop.permute.xlu1 %2590 }
0x112d   :  { %v9370_v60 = vpack.i.bf16 %v2593_v47, %v2591_v4 }
0x112f   :  { %v2597_v6 = vpop.permute.xlu0 %2596  ;;  %8436 = vrot.lane.b32.xlu1 %v9370_v60, %s8789_s8 }
0x1130   :  { %v2595_v8 = vpop.permute.xlu1 %2594 }
0x1131   :  { %v9374_v12 = vpack.i.bf16 %v2597_v6, %v2595_v8 }
0x1133   :  { %8441 = vrot.lane.b32.xlu0 %v9374_v12, %s8789_s8 }
0x1134   :  { %v8427_v7 = vpop.permute.xlu1 %8426 }
0x1135   :  { %v8429_v51 = vunpack.i.h.bf16 %v8427_v7  ;;  %v8428_v43 = vunpack.i.l.bf16 %v8427_v7 }
0x1137   :  { %v8111_v58 = vpack.c.bf16 %v8429_v51, %v8428_v43 }
0x1139   :  { %8113 = vmatprep.subr.msk.bf16.mxu1 %vm8964_vm7, %v8111_v58 }
0x113a   :  { %8116 = vmatpush3.bf16.xpose.msk.msra.mxu1 %vm8964_vm7, %v8111_v58 }
0x1141   :  { %7672 = vmatmul.mubr.msk.f32.vlgmr.msra.gmra.mrb[60].mxu1 %vm473_vm6, %v2581_v49 }
0x1142   :  { %7685 = vmatprep.mubr.msk.f32.mxu1 %vm473_vm6, %v2591_v4 }
0x119d   :  { %v8432_v10 = vpop.permute.xlu0 %8431 }
0x119e   :  { %v8434_v14 = vunpack.i.h.bf16 %v8432_v10  ;;  %v8433_v55 = vunpack.i.l.bf16 %v8432_v10 }
0x11a0   :  { %v8117_v9 = vpack.c.bf16 %v8434_v14, %v8433_v55 }
0x11a1   :  { %v8437_v18 = vpop.permute.xlu1 %8436 }
0x11a2   :  { %v8439_v19 = vunpack.i.h.bf16 %v8437_v18  ;;  %v8438_v20 = vunpack.i.l.bf16 %v8437_v18  ;;  %8119 = vmatprep.subr.msk.bf16.mxu0 %vm8964_vm7, %v8117_v9 }
0x11a3   :  { %8122 = vmatpush3.bf16.xpose.msk.msra.mxu0 %vm8964_vm7, %v8117_v9 }
0x11a4   :  { %v8123_v22 = vpack.c.bf16 %v8439_v19, %v8438_v20 }
0x11a5   :  { %v8442_v24 = vpop.permute.xlu0 %8441 }
0x11a6   :  { %v8444_v16 = vunpack.i.h.bf16 %v8442_v24  ;;  %v8443_v17 = vunpack.i.l.bf16 %v8442_v24  ;;  %8125 = vmatprep.subr.msk.bf16.mxu1 %vm8964_vm7, %v8123_v22 }
0x11a7   :  { %8128 = vmatpush3.bf16.xpose.msk.msra.mxu1 %vm8964_vm7, %v8123_v22 }
0x11a8   :  { %v8129_v25 = vpack.c.bf16 %v8444_v16, %v8443_v17 }
0x11aa   :  { %7679 = vmatmul.mubr.msk.f32.vlgmr.msra.gmra.mrb[56].mxu0 %vm473_vm6, %v2589_v59  ;;  %8131 = vmatprep.subr.msk.bf16.mxu0 %vm8964_vm7, %v8129_v25 }
0x11ab   :  { %8134 = vmatpush3.bf16.xpose.msk.msra.mxu0 %vm8964_vm7, %v8129_v25  ;;  %7692 = vmatprep.mubr.msk.f32.mxu0 %vm473_vm6, %v2595_v8 }
0x11ae   :  { %7686 = vmatmul.mubr.msk.f32.vlgmr.msra.gmra.mrb[62].mxu1 %vm473_vm6, %v2593_v47 }
0x11b2   :  { %7693 = vmatmul.mubr.msk.f32.vlgmr.msra.gmra.mrb[58].mxu0 %vm473_vm6, %v2597_v6 }
0x1214   :  { %v7673_v3 = vpop.f32.mrb[60].mxu1 }
0x1215   :  { %v2947_v27 = vmul.f32 0.35355338, %v7673_v3  ;;  %v2676_v15 = vpop.f32.mrb[61].mxu1 }
0x1216   :  { %v2946_v29 = vmul.f32 0.35355338, %v2676_v15 }
0x1217   :  { %v2955_v30 = vadd.f32 %v2947_v27, %v2493_v26 }
0x1218   :  { %v2954_v13 = vadd.f32 %v2946_v29, %v2492_v28 }
0x1219   :  { %v2966_v23 = vsel %vm2965_vm13, %v2955_v30, -inf }
0x121a   :  { %2967 = vmax.xlane.f32.xlu0 %v2966_v23  ;;  %v2962_v50 = vsel %vm248_vm3, %v2954_v13, -inf }
0x121b   :  { %2963 = vmax.xlane.f32.xlu1 %v2962_v50 }
0x127d   :  { %v7680_v33 = vpop.f32.mrb[56].mxu0 }
0x127e   :  { %v2949_v34 = vmul.f32 0.35355338, %v7680_v33  ;;  %v2763_v63 = vpop.f32.mrb[57].mxu0 }
0x127f   :  { %v2948_v35 = vmul.f32 0.35355338, %v2763_v63 }
0x1280   :  { %v2957_v36 = vadd.f32 %v2949_v34, %v2493_v26 }
0x1281   :  { %v7687_v37 = vpop.f32.mrb[62].mxu1  ;;  %v2956_v31 = vadd.f32 %v2948_v35, %v2492_v28 }
0x1282   :  { %v2951_v38 = vmul.f32 0.35355338, %v7687_v37  ;;  %v2850_v39 = vpop.f32.mrb[63].mxu1  ;;  %v2972_v42 = vsel %vm2965_vm13, %v2957_v36, -inf }
0x1283   :  { %v2950_v44 = vmul.f32 0.35355338, %v2850_v39  ;;  %2973 = vmax.xlane.f32.xlu1 %v2972_v42  ;;  %v2969_v32 = vsel %vm248_vm3, %v2956_v31, -inf }
0x1284   :  { %v2959_v5 = vadd.f32 %v2951_v38, %v2493_v26  ;;  %2970 = vmax.xlane.f32.xlu0 %v2969_v32 }
0x1285   :  { %v2958_v46 = vadd.f32 %v2950_v44, %v2492_v28  ;;  %v7694_v48 = vpop.f32.mrb[58].mxu0 }
0x1286   :  { %v2953_v54 = vmul.f32 0.35355338, %v7694_v48  ;;  %v2937_v56 = vpop.f32.mrb[59].mxu0  ;;  %v2978_v57 = vsel %vm2965_vm13, %v2959_v5, -inf }
0x1287   :  { %v2952_v11 = vmul.f32 0.35355338, %v2937_v56  ;;  %2979 = vmax.xlane.f32.xlu1 %v2978_v57  ;;  %v2975_v61 = vsel %vm248_vm3, %v2958_v46, -inf }
0x1288   :  { %v2961_v49 = vadd.f32 %v2953_v54, %v2493_v26  ;;  %2976 = vmax.xlane.f32.xlu0 %v2975_v61 }
0x1289   :  { %v2960_v52 = vadd.f32 %v2952_v11, %v2492_v28 }
0x128a   :  { %v2984_v45 = vsel %vm2965_vm13, %v2961_v49, -inf }
0x128b   :  { %2985 = vmax.xlane.f32.xlu1 %v2984_v45  ;;  %v2981_v59 = vsel %vm248_vm3, %v2960_v52, -inf }
0x128c   :  { %2982 = vmax.xlane.f32.xlu0 %v2981_v59 }
0x129c   :  { %8451 = vrot.lane.b32.xlu1 %v9366_v53, %s8790_s9 }
0x12a2   :  { %8446 = vrot.lane.b32.xlu0 %v9361_v62, %s8790_s9 }
0x12a7   :  { %v2968_v2 = vpop.xlane.xlu0 %2967 }
0x12a8   :  { %v2964_v47 = vpop.xlane.xlu1 %2963  ;;  %v2988_v4 = vsub.f32 %v2955_v30, %v2968_v2 }
0x12a9   :  { %v2987_v6 = vsub.f32 %v2954_v13, %v2964_v47 }
0x12aa   :  { %v2997_v8 = vmul.f32 1.442695, %v2988_v4 }
0x12ab   :  { %v2995_v7 = vmul.f32 1.442695, %v2987_v6 }
0x12ac   :  { %8606 = vpow2.f32 %v2997_v8 }
0x12ad   :  { %8608 = vpow2.f32 %v2995_v7 }
0x12b6   :  { %v9412_v51 = vpop.eup %8606 }
0x12b7   :  { %v9414_v43 = vpop.eup %8608  ;;  %v3014_v58 = vsel %vm2965_vm13, %v9412_v51, 0.0 }
0x12b8   :  { %v3011_v53 = vsel %vm248_vm3, %v9414_v43, 0.0 }
0x12c0   :  { %3015 = vadd.xlane.f32.xlu1 %v3014_v58 }
0x12c1   :  { %3012 = vadd.xlane.f32.xlu0 %v3011_v53 }
0x1310   :  { %v2974_v62 = vpop.xlane.xlu1 %2973 }
0x1311   :  { %v2990_v10 = vsub.f32 %v2957_v36, %v2974_v62  ;;  %v2971_v14 = vpop.xlane.xlu0 %2970 }
0x1312   :  { %v2989_v55 = vsub.f32 %v2956_v31, %v2971_v14 }
0x1313   :  { %v3001_v9 = vmul.f32 1.442695, %v2990_v10 }
0x1314   :  { %v2999_v18 = vmul.f32 1.442695, %v2989_v55  ;;  %v2980_v19 = vpop.xlane.xlu1 %2979 }
0x1315   :  { %8610 = vpow2.f32 %v3001_v9  ;;  %v2992_v20 = vsub.f32 %v2959_v5, %v2980_v19  ;;  %v2977_v22 = vpop.xlane.xlu0 %2976 }
0x1316   :  { %8612 = vpow2.f32 %v2999_v18  ;;  %v2991_v24 = vsub.f32 %v2958_v46, %v2977_v22 }
0x1317   :  { %v3005_v16 = vmul.f32 1.442695, %v2992_v20 }
0x1318   :  { %v3003_v17 = vmul.f32 1.442695, %v2991_v24  ;;  %v2986_v25 = vpop.xlane.xlu1 %2985 }
0x1319   :  { %8614 = vpow2.f32 %v3005_v16  ;;  %v2994_v3 = vsub.f32 %v2961_v49, %v2986_v25  ;;  %v2983_v26 = vpop.xlane.xlu0 %2982 }
0x131a   :  { %8616 = vpow2.f32 %v3003_v17  ;;  %v2993_v27 = vsub.f32 %v2960_v52, %v2983_v26  ;;  %v3434_v26 = vld [vmem:[#allocation2 + $0x1dd] sm:$0xff] }
0x131b   :  { %v3009_v15 = vmul.f32 1.442695, %v2994_v3 }
0x131c   :  { %v3007_v28 = vmul.f32 1.442695, %v2993_v27  ;;  %v8452_v29 = vpop.permute.xlu1 %8451  ;;  %v3435_v27 = vld [vmem:[#allocation2 + $0x1e5] sm:$0xff] }
0x131d   :  { %8618 = vpow2.f32 %v3009_v15  ;;  %v8454_v30 = vunpack.i.h.bf16 %v8452_v29  ;;  %v8453_v13 = vunpack.i.l.bf16 %v8452_v29  ;;  %v8447_v23 = vpop.permute.xlu0 %8446  ;;  %v8159_v15 = vpack.c.bf16 %v3435_v27, %v3434_v26  ;;  %v3437_v29 = vld [vmem:[#allocation2 + $0x1f5] sm:$0xff] }
0x131e   :  { %8620 = vpow2.f32 %v3007_v28  ;;  %v8449_v50 = vunpack.i.h.bf16 %v8447_v23  ;;  %v8448_v33 = vunpack.i.l.bf16 %v8447_v23  ;;  %v3436_v28 = vld [vmem:[#allocation2 + $0x1ed] sm:$0xff] }
0x131f   :  { %v8611_v63 = vpop.eup %8610  ;;  %v8141_v35 = vpack.c.bf16 %v8454_v30, %v8453_v13  ;;  %v8163_v30 = vpack.c.bf16 %v3437_v29, %v3436_v28 }
0x1320   :  { %v8613_v36 = vpop.eup %8612  ;;  %v8135_v37 = vpack.c.bf16 %v8449_v50, %v8448_v33  ;;  %v3020_v31 = vsel %vm2965_vm13, %v8611_v63, 0.0 }
0x1321   :  { %3021 = vadd.xlane.f32.xlu1 %v3020_v31  ;;  %8143 = vmatprep.subr.msk.bf16.mxu0 %vm9420_vm9, %v8141_v35  ;;  %v3017_v38 = vsel %vm248_vm3, %v8613_v36, 0.0 }
0x1322   :  { %8146 = vmatpush3.bf16.msk.msra.mxu0 %vm9420_vm9, %v8141_v35  ;;  %3018 = vadd.xlane.f32.xlu0 %v3017_v38 }
0x1323   :  { %v8615_v39 = vpop.eup %8614  ;;  %8137 = vmatprep.subr.msk.bf16.mxu1 %vm9420_vm9, %v8135_v37 }
0x1324   :  { %v8617_v42 = vpop.eup %8616  ;;  %8140 = vmatpush3.bf16.msk.msra.mxu1 %vm9420_vm9, %v8135_v37  ;;  %v3026_v44 = vsel %vm2965_vm13, %v8615_v39, 0.0 }
0x1325   :  { %3027 = vadd.xlane.f32.xlu1 %v3026_v44  ;;  %v3023_v32 = vsel %vm248_vm3, %v8617_v42, 0.0 }
0x1326   :  { %3024 = vadd.xlane.f32.xlu0 %v3023_v32 }
0x1327   :  { %v8619_v5 = vpop.eup %8618 }
0x1328   :  { %v8621_v46 = vpop.eup %8620  ;;  %v3032_v48 = vsel %vm2965_vm13, %v8619_v5, 0.0 }
0x1329   :  { %3033 = vadd.xlane.f32.xlu1 %v3032_v48  ;;  %v3029_v54 = vsel %vm248_vm3, %v8621_v46, 0.0 }
0x132a   :  { %3030 = vadd.xlane.f32.xlu0 %v3029_v54 }
0x133a   :  { %8456 = vrot.lane.b32.xlu1 %v9370_v60, %s8790_s9 }
0x1340   :  { %8461 = vrot.lane.b32.xlu0 %v9374_v12, %s8790_s9 }
0x134d   :  { %v3016_v56 = vpop.xlane.xlu1 %3015 }
0x134e   :  { %8622 = vrcp.f32 %v3016_v56  ;;  %v3013_v57 = vpop.xlane.xlu0 %3012  ;;  %v6893_v56 = vld [vmem:[#allocation2 + $0x1fd] ss:$0 sm:$0xff] }
0x134f   :  { %8624 = vrcp.f32 %v3013_v57 }
0x1358   :  { %v8623_v11 = vpop.eup %8622 }
0x1359   :  { %v8625_v61 = vpop.eup %8624  ;;  %v3038_v52 = vmul.f32 %v8623_v11, %v9412_v51 }
0x135a   :  { %v3036_v49 = vmul.f32 %v8625_v61, %v9414_v43 }
0x135c   :  { %7699 = vmatprep.mubr.msk.f32.mxu1 %vm248_vm3, %v3036_v49 }
0x135d   :  { %7700 = vmatmul.mubr.msk.f32.vlgmr.msra.gmra.mrb[64].mxu1 %vm248_vm3, %v3038_v52 }
0x13ae   :  { %v3022_v45 = vpop.xlane.xlu1 %3021 }
0x13af   :  { %8626 = vrcp.f32 %v3022_v45  ;;  %v3019_v60 = vpop.xlane.xlu0 %3018 }
0x13b0   :  { %8628 = vrcp.f32 %v3019_v60 }
0x13b2   :  { %v3028_v59 = vpop.xlane.xlu1 %3027 }
0x13b3   :  { %8630 = vrcp.f32 %v3028_v59  ;;  %v3025_v12 = vpop.xlane.xlu0 %3024 }
0x13b4   :  { %8632 = vrcp.f32 %v3025_v12 }
0x13b6   :  { %v3034_v2 = vpop.xlane.xlu1 %3033 }
0x13b7   :  { %8634 = vrcp.f32 %v3034_v2  ;;  %v3031_v47 = vpop.xlane.xlu0 %3030 }
0x13b8   :  { %8636 = vrcp.f32 %v3031_v47 }
0x13b9   :  { %v8627_v4 = vpop.eup %8626 }
0x13ba   :  { %v8629_v6 = vpop.eup %8628  ;;  %v8457_v8 = vpop.permute.xlu1 %8456  ;;  %v3042_v10 = vmul.f32 %v8627_v4, %v8611_v63 }
0x13bb   :  { %v8459_v7 = vunpack.i.h.bf16 %v8457_v8  ;;  %v8458_v51 = vunpack.i.l.bf16 %v8457_v8  ;;  %v8462_v43 = vpop.permute.xlu0 %8461  ;;  %v3040_v58 = vmul.f32 %v8629_v6, %v8613_v36 }
0x13bc   :  { %v8464_v53 = vunpack.i.h.bf16 %v8462_v43  ;;  %v8463_v62 = vunpack.i.l.bf16 %v8462_v43 }
0x13bd   :  { %v8631_v14 = vpop.eup %8630  ;;  %v8147_v55 = vpack.c.bf16 %v8459_v7, %v8458_v51  ;;  %7706 = vmatprep.mubr.msk.f32.mxu0 %vm248_vm3, %v3040_v58  ;;  %v3568_v58 = vld [vmem:[#allocation2 + $0x206] sm:$0xff] }
0x13be   :  { %v8633_v9 = vpop.eup %8632  ;;  %v8153_v18 = vpack.c.bf16 %v8464_v53, %v8463_v62  ;;  %7707 = vmatmul.mubr.msk.f32.vlgmr.msra.gmra.mrb[60].mxu0 %vm248_vm3, %v3042_v10  ;;  %v3046_v22 = vmul.f32 %v8631_v14, %v8615_v39  ;;  %v3569_v53 = vld [vmem:[#allocation2 + $0x20e] sm:$0xff]  ;;  %v3570_v10 = vld [vmem:[#allocation2 + $0x216] sm:$0xff] }
0x13bf   :  { %8149 = vmatprep.subr.msk.bf16.mxu1 %vm9420_vm9, %v8147_v55  ;;  %v3044_v19 = vmul.f32 %v8633_v9, %v8617_v42  ;;  %v8171_v14 = vpack.c.bf16 %v3570_v10, %v3569_v53  ;;  %v3836_v9 = vld [vmem:[%s9819_s1 + $0x8] sm:$0xff] }
0x13c0   :  { %8152 = vmatpush3.bf16.msk.msra.mxu1 %vm9420_vm9, %v8147_v55  ;;  %8155 = vmatprep.subr.msk.bf16.mxu0 %vm9420_vm9, %v8153_v18  ;;  %v3835_v55 = vld [vmem:[%s9819_s1] sm:$0xff]  ;;  %s8796_s1 = smov [#allocation5]  }
0x13c1   :  { %v8635_v20 = vpop.eup %8634  ;;  %7713 = vmatprep.mubr.msk.f32.mxu1 %vm248_vm3, %v3044_v19  ;;  %8158 = vmatpush3.bf16.msk.msra.mxu0 %vm9420_vm9, %v8153_v18  ;;  %v8191_v18 = vpack.c.bf16 %v3836_v9, %v3835_v55  ;;  %v3659_v19 = vld [vmem:[#allocation2 + $0x21f] sm:$0xff]  ;;  %s6767_s17 = sshll.u32 %s8796_s1, 4  ;;  %s6768_s17 = int_to_ptr.vmem [resolvable:$true] %s6767_s17 }
0x13c2   :  { %v8637_v24 = vpop.eup %8636  ;;  %v3050_v17 = vmul.f32 %v8635_v20, %v8619_v5  ;;  %8160 = vmatprep.subr.bf16.mxu1 %v8159_v15  ;;  %v3660_v20 = vld [vmem:[#allocation2 + $0x227] sm:$0xff]  ;;  %s8752_s18 = scalar_lea.vmem %s6768_s17, 128  ;;  %p8757_p9 = scmp.lt.s32.totalorder %s6768_s17, %s6768_s17 }
0x13c3   :  { %7714 = vmatmul.mubr.msk.f32.vlgmr.msra.gmra.mrb[66].mxu1 %vm248_vm3, %v3046_v22  ;;  %v3048_v16 = vmul.f32 %v8637_v24, %v8621_v46  ;;  %v3661_v22 = vld [vmem:[#allocation2 + $0x22f] sm:$0xff]  ;;  %v8175_v24 = vpack.c.bf16 %v3660_v20, %v3659_v19  ;;  %p8753_p8 = scmp.ne.s32.totalorder %s6768_s17, %s8752_s18  ;;  %p8758_p10 = scmp.lt.s32.totalorder %s8752_s18, %s8752_s18 }
0x13c4   :  { %8162 = vmatpush3.bf16.msra.mxu1 %v8159_v15 }
0x13c5   :  { %7720 = vmatprep.mubr.msk.f32.mxu0 %vm248_vm3, %v3048_v16  ;;  %8164 = vmatprep.subr.bf16.mxu1 %v8163_v30  ;;  %v3662_v16 = vld [vmem:[#allocation2 + $0x237] sm:$0xff]  ;;  %p8759_p11 = por %p8758_p10, %p8757_p9 }
0x13c6   :  { %7721 = vmatmul.mubr.msk.f32.vlgmr.msra.gmra.mrb[62].mxu0 %vm248_vm3, %v3050_v17  ;;  %v8179_v17 = vpack.c.bf16 %v3662_v16, %v3661_v22  ;;  %v3841_v22 = vld [vmem:[#allocation2 + $0x18] sm:$0xff] }
0x13c7   :  { %p8760_p12 = pnand %p8759_p11, %p8753_p8 }
0x13c8   :  { %8166 = vmatpush3.bf16.msra.mxu1 %v8163_v30 }
0x13c9   :  { %8176 = vmatprep.subr.bf16.mxu1 %v8175_v24 }
0x1430   :  { %v7701_v25 = vpop.f32.mrb[64].mxu1 }
0x1431   :  { %v3131_v3 = vpop.f32.mrb[65].mxu1 }
0x1491   :  { %v7708_v13 = vpop.f32.mrb[60].mxu0 }
0x1492   :  { %3408 = vrot.lane.b32.xlu0 %v7708_v13, %s8780_s23  ;;  %v3219_v23 = vpop.f32.mrb[61].mxu0 }
0x1493   :  { %3406 = vrot.lane.b32.xlu1 %v3219_v23, %s8780_s23 }
0x1496   :  { %v7715_v50 = vpop.f32.mrb[66].mxu1 }
0x1497   :  { %3416 = vrot.lane.b32.xlu0 %v7715_v50, %s8791_s10  ;;  %v3307_v33 = vpop.f32.mrb[67].mxu1  ;;  %v6896_v50 = vld [vmem:[#allocation2 + $0x260] ss:$0 sm:$0xff] }
0x1498   :  { %3414 = vrot.lane.b32.xlu1 %v3307_v33, %s8791_s10 }
0x1499   :  { %v7722_v63 = vpop.f32.mrb[62].mxu0 }
0x149a   :  { %v3395_v35 = vpop.f32.mrb[63].mxu0 }
0x149b   :  { %3424 = vrot.lane.b32.xlu0 %v7722_v63, %s8792_s11 }
0x149c   :  { %3422 = vrot.lane.b32.xlu1 %v3395_v35, %s8792_s11 }
0x1504   :  { %v3409_v36 = vpop.permute.xlu0 %3408 }
0x1505   :  { %v3407_v37 = vpop.permute.xlu1 %3406  ;;  %v3429_v44 = vsel %vm473_vm6, %v7701_v25, %v3409_v36  ;;  %v3663_v25 = vld [vmem:[#allocation2 + $0x23f] sm:$0xff] }
0x1506   :  { %v3428_v39 = vsel %vm473_vm6, %v3131_v3, %v3407_v37  ;;  %v3664_v3 = vld [vmem:[#allocation2 + $0x247] sm:$0xff]  ;;  %v6897_v36 = vld [vmem:[#allocation2 + $0x261] ss:$0 sm:$0xff] }
0x1507   :  { %v8183_v26 = vpack.c.bf16 %v3664_v3, %v3663_v25 }
0x1509   :  { %v3417_v31 = vpop.permute.xlu0 %3416 }
0x150a   :  { %v3415_v38 = vpop.permute.xlu1 %3414  ;;  %v3431_v46 = vsel %vm254_vm4, %v3429_v44, %v3417_v31  ;;  %v3838_v44 = vld [vmem:[#allocation2 + $0x30] sm:$0xff] }
0x150b   :  { %v3430_v32 = vsel %vm254_vm4, %v3428_v39, %v3415_v38 }
0x150d   :  { %v3425_v42 = vpop.permute.xlu0 %3424 }
0x150e   :  { %v3423_v5 = vpop.permute.xlu1 %3422  ;;  %v3433_v54 = vsel %vm41_vm1, %v3431_v46, %v3425_v42  ;;  %v3837_v42 = vld [vmem:[#allocation2 + $0x28] sm:$0xff] }
0x150f   :  { %v3432_v48 = vsel %vm41_vm1, %v3430_v32, %v3423_v5  ;;  %v3839_v32 = vld [vmem:[#allocation2 + $0x38] sm:$0xff]  ;;  %v3840_v5 = vld [vmem:[#allocation2 + $0x40] sm:$0xff]  ;;  %v3665_v46 = vld [vmem:[#allocation2 + $0x24f] sm:$0xff] }
0x1510   :  { %7731 = vmatprep.mubr.msk.f32.mxu1 %vm356_vm5, %v3432_v48  ;;  %v3666_v48 = vld [vmem:[#allocation2 + $0x257] sm:$0xff] }
0x1511   :  { %7732 = vmatmul.mubr.msk.f32.vlgmr.msra.gmra.mrb[68].mxu1 %vm356_vm5, %v3433_v54  ;;  %v8187_v54 = vpack.c.bf16 %v3666_v48, %v3665_v46 }
0x1512   :  { %8178 = vmatpush3.bf16.msra.mxu1 %v8175_v24  ;;  %v3842_v24 = vld [vmem:[#allocation2 + $0x20] sm:$0xff] }
0x1513   :  { %8180 = vmatprep.subr.bf16.mxu1 %v8179_v17 }
0x1516   :  { %8182 = vmatpush3.bf16.msra.mxu1 %v8179_v17 }
0x1517   :  { %8184 = vmatprep.subr.bf16.mxu1 %v8183_v26 }
0x151a   :  { %8186 = vmatpush3.bf16.msra.mxu1 %v8183_v26  ;;  %v6914_v26 = vld [vmem:[#allocation2 + $0x2e9] ss:$0 sm:$0xff] }
0x151b   :  { %8188 = vmatprep.subr.bf16.mxu1 %v8187_v54 }
0x151e   :  { %8190 = vmatpush3.bf16.msra.mxu1 %v8187_v54 }
0x15e4   :  { %v7733_v57 = vpop.f32.mrb[68].mxu1 }
0x15e5   :  { %v3521_v11 = vadd.f32 %v7733_v57, %v6893_v56  ;;  %v3515_v61 = vpop.f32.mrb[69].mxu1  ;;  %v4026_v57 = vld [vmem:[#allocation2 + $0x10c] sm:$0xff] }
0x15e6   :  { %v3516_v49 = vadd.f32 %v6893_v56, %v3515_v61  ;;  %v4025_v56 = vld [vmem:[#allocation2 + $0x104] sm:$0xff]  ;;  %v6898_v61 = vld [vmem:[#allocation2 + $0x21e] ss:$0 sm:$0xff] }
0x15e7   :  { %v3525_v52 = vadd.f32 %v3521_v11, %v9346_v40  ;;  %v8199_v11 = vpack.c.bf16 %v4026_v57, %v4025_v56 }
0x15e8   :  { %v3524_v45 = vadd.f32 %v3516_v49, %v9348_v41  ;;  %v3567_v41 = vld [vmem:[#allocation2 + $0x1fe] sm:$0xff] }
0x15e9   :  { %v3532_v60 = vsel %vm3531_vm10, %v3525_v52, 0.0  ;;  %v8167_v62 = vpack.c.bf16 %v3568_v58, %v3567_v41 }
0x15ea   :  { %3533 = vadd.xlane.f32.xlu0 %v3532_v60  ;;  %v3528_v59 = vsel %vm356_vm5, %v3524_v45, 0.0 }
0x15eb   :  { %3529 = vadd.xlane.f32.xlu1 %v3528_v59  ;;  %8168 = vmatprep.subr.bf16.mxu0 %v8167_v62 }
0x15ec   :  { %8170 = vmatpush3.bf16.msra.mxu0 %v8167_v62 }
0x15ed   :  { %8172 = vmatprep.subr.bf16.mxu0 %v8171_v14 }
0x15f0   :  { %8174 = vmatpush3.bf16.msra.mxu0 %v8171_v14 }
0x15f1   :  { %8192 = vmatprep.subr.bf16.mxu0 %v8191_v18 }
0x1677   :  { %v3534_v12 = vpop.xlane.xlu0 %3533 }
0x1678   :  { %v3536_v2 = vmul.f32 0.03125, %v3534_v12  ;;  %v3530_v47 = vpop.xlane.xlu1 %3529 }
0x1679   :  { %v3535_v4 = vmul.f32 0.03125, %v3530_v47 }
0x167a   :  { %v3538_v6 = vsub.f32 %v3525_v52, %v3536_v2 }
0x167b   :  { %v3537_v8 = vsub.f32 %v3524_v45, %v3535_v4 }
0x167c   :  { %v3540_v7 = vmul.f32 %v3538_v6, %v3538_v6 }
0x167d   :  { %v3539_v51 = vmul.f32 %v3537_v8, %v3537_v8 }
0x167e   :  { %v3544_v43 = vsel %vm3531_vm10, %v3540_v7, 0.0  ;;  %v4111_v7 = vld [vmem:[#allocation2 + $0x2d1] sm:$0xff] }
0x167f   :  { %3545 = vadd.xlane.f32.xlu1 %v3544_v43  ;;  %v3541_v40 = vsel %vm356_vm5, %v3539_v51, 0.0 }
0x1680   :  { %3542 = vadd.xlane.f32.xlu0 %v3541_v40 }
0x1690   :  { %4009 = vrot.lane.b32.xlu1 %v3836_v9, %s8784_s29  ;;  %v4113_v9 = vld [vmem:[#allocation2 + $0x2e1] sm:$0xff] }
0x1696   :  { %4007 = vrot.lane.b32.xlu0 %v3835_v55, %s8784_s29  ;;  %v4112_v55 = vld [vmem:[#allocation2 + $0x2d9] sm:$0xff] }
0x170c   :  { %v3546_v27 = vpop.xlane.xlu1 %3545 }
0x170d   :  { %v3548_v15 = vmul.f32 0.03125, %v3546_v27  ;;  %v3543_v28 = vpop.xlane.xlu0 %3542 }
0x170e   :  { %v3547_v29 = vmul.f32 0.03125, %v3543_v28 }
0x170f   :  { %v3550_v30 = vadd.f32 1e-05, %v3548_v15 }
0x1710   :  { %v3549_v13 = vadd.f32 1e-05, %v3547_v29  ;;  %v4010_v40 = vpop.permute.xlu1 %4009 }
0x1711   :  { %8638 = vrsqrt.f32 %v3550_v30  ;;  %v4008_v43 = vpop.permute.xlu0 %4007 }
0x1712   :  { %8640 = vrsqrt.f32 %v3549_v13 }
0x171b   :  { %v8639_v23 = vpop.eup %8638 }
0x171c   :  { %v8641_v33 = vpop.eup %8640  ;;  %v3554_v63 = vmul.f32 %v8639_v23, %v3538_v6 }
0x171d   :  { %v3553_v35 = vmul.f32 %v8641_v33, %v3537_v8  ;;  %v4110_v8 = vld [vmem:[#allocation2 + $0x2c9] sm:$0xff] }
0x171e   :  { %v3560_v37 = vmul.f32 %v6896_v50, %v3554_v63  ;;  %v8203_v51 = vpack.c.bf16 %v4111_v7, %v4110_v8 }
0x171f   :  { %v3559_v31 = vmul.f32 %v6896_v50, %v3553_v35 }
0x1720   :  { %v9490_v39 = vadd.f32 %v6897_v36, %v3560_v37 }
0x1721   :  { %v9488_v38 = vadd.f32 %v6897_v36, %v3559_v31 }
0x1723   :  { %7742 = vmatprep.mubr.msk.f32.mxu0 %vm356_vm5, %v9488_v38 }
0x1724   :  { %7743 = vmatmul.mubr.msk.f32.vlgmr.msra.gmra.mrb[64].mxu0 %vm356_vm5, %v9490_v39 }
0x1725   :  { %8194 = vmatpush3.bf16.msra.mxu0 %v8191_v18  ;;  %7768 = vmatprep.mubr.msk.f32.mxu0 %vm254_vm4, %v3837_v42 }
0x1726   :  { %8196 = vmatprep.subr.bf16.mxu0 %v8191_v18 }
0x1728   :  { %7769 = vmatmul.mubr.msk.f32.vlgmr.msra.gmra.mrb[66].mxu0 %vm254_vm4, %v3838_v44 }
0x1729   :  { %8198 = vmatpush3.bf16.msra.mxu0 %v8191_v18  ;;  %7775 = vmatprep.mubr.msk.f32.mxu0 %vm254_vm4, %v3839_v32  ;;  %v8207_v18 = vpack.c.bf16 %v4113_v9, %v4112_v55 }
0x172a   :  { %8200 = vmatprep.subr.bf16.mxu0 %v8199_v11 }
0x172c   :  { %7776 = vmatmul.mubr.msk.f32.vlgmr.msra.gmra.mrb[68].mxu0 %vm254_vm4, %v3840_v5 }
0x172d   :  { %8202 = vmatpush3.bf16.msra.mxu0 %v8199_v11 }
0x172e   :  { %8204 = vmatprep.subr.bf16.mxu0 %v8203_v51 }
0x17f7   :  { %v7744_v49 = vpop.f32.mrb[64].mxu0 }
0x17f8   :  { %v3654_v52 = vadd.f32 %v7744_v49, %v6898_v61  ;;  %v3648_v45 = vpop.f32.mrb[65].mxu0 }
0x17f9   :  { %v3649_v60 = vadd.f32 %v6898_v61, %v3648_v45 }
0x17fa   :  { %v3658_v2 = vmax.f32 %v3654_v52, 0.0 }
0x17fb   :  { %v3657_v59 = vmax.f32 %v3649_v60, 0.0  ;;  %v7770_v12 = vpop.f32.mrb[66].mxu0 }
0x17fc   :  { %v3915_v47 = vpop.f32.mrb[67].mxu0  ;;  %v4022_v62 = vsel %vm244_vm2, %v7770_v12, %v4010_v40  ;;  %v4109_v12 = vld [vmem:[#allocation2 + $0xa4] sm:$0xff] }
0x17fd   :  { %7761 = vmatprep.mubr.msk.f32.mxu1 %vm1724_vm8, %v3657_v59  ;;  %v4021_v58 = vsel %vm244_vm2, %v3915_v47, %v4008_v43 }
0x17fe   :  { %7762 = vmatmul.mubr.msk.f32.vlgmr.msra.gmra.mrb[70].mxu1 %vm1724_vm8, %v3658_v2 }
0x17ff   :  { %v7777_v4 = vpop.f32.mrb[68].mxu0 }
0x1800   :  { %4017 = vrot.lane.b32.xlu0 %v7777_v4, %s8785_s0  ;;  %v3996_v6 = vpop.f32.mrb[69].mxu0  ;;  %v4108_v4 = vld [vmem:[#allocation2 + $0x9c] sm:$0xff] }
0x1801   :  { %4015 = vrot.lane.b32.xlu1 %v3996_v6, %s8785_s0 }
0x1872   :  { %v4018_v41 = vpop.permute.xlu0 %4017 }
0x1873   :  { %v4016_v53 = vpop.permute.xlu1 %4015  ;;  %v4024_v14 = vsel %vm248_vm3, %v4022_v62, %v4018_v41 }
0x1874   :  { %v4023_v10 = vsel %vm248_vm3, %v4021_v58, %v4016_v53 }
0x1875   :  { %7782 = vmatprep.mubr.msk.f32.mxu0 %vm254_vm4, %v4023_v10 }
0x1876   :  { %7783 = vmatmul.mubr.msk.f32.vlgmr.msra.gmra.mrb[70].mxu0 %vm254_vm4, %v4024_v14 }
0x1877   :  { %8206 = vmatpush3.bf16.msra.mxu0 %v8203_v51 }
0x1878   :  { %8208 = vmatprep.subr.bf16.mxu0 %v8207_v18 }
0x187b   :  { %8210 = vmatpush3.bf16.msra.mxu0 %v8207_v18 }
0x18d1   :  { %v9510_v19 = vpop.f32.mrb[70].mxu1 }
0x18d2   :  { %v9512_v20 = vpop.f32.mrb[71].mxu1 }
0x1949   :  { %v7784_v16 = vpop.f32.mrb[70].mxu0 }
0x194a   :  { %v4099_v17 = vpop.f32.mrb[71].mxu0  ;;  %v9516_v3 = vadd.f32 %v7784_v16, %v3842_v24 }
0x194b   :  { %v9514_v25 = vadd.f32 %v4099_v17, %v3841_v22 }
0x194d   :  { %7793 = vmatprep.mubr.msk.f32.mxu0 %vm356_vm5, %v9514_v25 }
0x194e   :  { %7794 = vmatmul.mubr.msk.f32.vlgmr.msra.gmra.mrb[72].mxu0 %vm356_vm5, %v9516_v3 }
0x1a21   :  { %v7795_v27 = vpop.f32.mrb[72].mxu0 }
0x1a22   :  { %v4197_v15 = vadd.f32 %v7795_v27, %v6914_v26  ;;  %v4191_v28 = vpop.f32.mrb[73].mxu0 }
0x1a23   :  { %v4192_v29 = vadd.f32 %v6914_v26, %v4191_v28 }
0x1a24   :  { %4204 = vrot.lane.b32.xlu0 %v4197_v15, %s8786_s5 }
0x1a25   :  { %4202 = vrot.lane.b32.xlu1 %v4192_v29, %s8786_s5  ;;  %7800 = vmatprep.mubr.msk.f32.mxu1 %vm473_vm6, %v4192_v29  ;;  %v9529_v30 = vpack.i.bf16 %v4197_v15, %v4192_v29 }
0x1a28   :  { %4208 = vrot.lane.b32.xlu0 %v4197_v15, %s8787_s6 }
0x1a29   :  { %4206 = vrot.lane.b32.xlu1 %v4192_v29, %s8787_s6 }
0x1a2c   :  { %4212 = vrot.lane.b32.xlu0 %v4197_v15, %s8788_s7 }
0x1a2d   :  { %4210 = vrot.lane.b32.xlu1 %v4192_v29, %s8788_s7 }
0x1a31   :  { %8466 = vrot.lane.b32.xlu1 %v9529_v30, %s8789_s8 }
0x1a96   :  { %v4205_v13 = vpop.permute.xlu0 %4204 }
0x1a97   :  { %v4203_v23 = vpop.permute.xlu1 %4202 }
0x1a98   :  { %v9533_v50 = vpack.i.bf16 %v4205_v13, %v4203_v23  ;;  %7807 = vmatprep.mubr.msk.f32.mxu0 %vm473_vm6, %v4203_v23 }
0x1a9a   :  { %v4209_v33 = vpop.permute.xlu0 %4208  ;;  %8471 = vrot.lane.b32.xlu0 %v9533_v50, %s8789_s8 }
0x1a9b   :  { %v4207_v63 = vpop.permute.xlu1 %4206 }
0x1a9c   :  { %v9538_v35 = vpack.i.bf16 %v4209_v33, %v4207_v63 }
0x1a9e   :  { %v4213_v36 = vpop.permute.xlu0 %4212  ;;  %8476 = vrot.lane.b32.xlu1 %v9538_v35, %s8789_s8 }
0x1a9f   :  { %v4211_v37 = vpop.permute.xlu1 %4210 }
0x1aa0   :  { %v9542_v31 = vpack.i.bf16 %v4213_v36, %v4211_v37 }
0x1aa2   :  { %8481 = vrot.lane.b32.xlu0 %v9542_v31, %s8789_s8 }
0x1aa3   :  { %v8467_v42 = vpop.permute.xlu1 %8466 }
0x1aa4   :  { %v8469_v44 = vunpack.i.h.bf16 %v8467_v42  ;;  %v8468_v32 = vunpack.i.l.bf16 %v8467_v42 }
0x1aa6   :  { %v8211_v5 = vpack.c.bf16 %v8469_v44, %v8468_v32 }
0x1aa8   :  { %8213 = vmatprep.subr.msk.bf16.mxu1 %vm8964_vm7, %v8211_v5 }
0x1aa9   :  { %8216 = vmatpush3.bf16.xpose.msk.msra.mxu1 %vm8964_vm7, %v8211_v5 }
0x1ab0   :  { %7801 = vmatmul.mubr.msk.f32.vlgmr.msra.gmra.mrb[72].mxu1 %vm473_vm6, %v4197_v15 }
0x1ab1   :  { %7814 = vmatprep.mubr.msk.f32.mxu1 %vm473_vm6, %v4207_v63 }
0x1b0c   :  { %v8472_v46 = vpop.permute.xlu0 %8471 }
0x1b0d   :  { %v8474_v48 = vunpack.i.h.bf16 %v8472_v46  ;;  %v8473_v54 = vunpack.i.l.bf16 %v8472_v46 }
0x1b0f   :  { %v8217_v56 = vpack.c.bf16 %v8474_v48, %v8473_v54 }
0x1b10   :  { %v8477_v57 = vpop.permute.xlu1 %8476 }
0x1b11   :  { %v8479_v11 = vunpack.i.h.bf16 %v8477_v57  ;;  %v8478_v61 = vunpack.i.l.bf16 %v8477_v57  ;;  %8219 = vmatprep.subr.msk.bf16.mxu0 %vm8964_vm7, %v8217_v56 }
0x1b12   :  { %8222 = vmatpush3.bf16.xpose.msk.msra.mxu0 %vm8964_vm7, %v8217_v56 }
0x1b13   :  { %v8223_v49 = vpack.c.bf16 %v8479_v11, %v8478_v61 }
0x1b14   :  { %v8482_v52 = vpop.permute.xlu0 %8481 }
0x1b15   :  { %v8484_v45 = vunpack.i.h.bf16 %v8482_v52  ;;  %v8483_v60 = vunpack.i.l.bf16 %v8482_v52  ;;  %8225 = vmatprep.subr.msk.bf16.mxu1 %vm8964_vm7, %v8223_v49 }
0x1b16   :  { %8228 = vmatpush3.bf16.xpose.msk.msra.mxu1 %vm8964_vm7, %v8223_v49 }
0x1b17   :  { %v8229_v59 = vpack.c.bf16 %v8484_v45, %v8483_v60 }
0x1b19   :  { %7808 = vmatmul.mubr.msk.f32.vlgmr.msra.gmra.mrb[74].mxu0 %vm473_vm6, %v4205_v13  ;;  %8231 = vmatprep.subr.msk.bf16.mxu0 %vm8964_vm7, %v8229_v59 }
0x1b1a   :  { %8234 = vmatpush3.bf16.xpose.msk.msra.mxu0 %vm8964_vm7, %v8229_v59  ;;  %7821 = vmatprep.mubr.msk.f32.mxu0 %vm473_vm6, %v4211_v37 }
0x1b1d   :  { %7815 = vmatmul.mubr.msk.f32.vlgmr.msra.gmra.mrb[74].mxu1 %vm473_vm6, %v4209_v33 }
0x1b21   :  { %7822 = vmatmul.mubr.msk.f32.vlgmr.msra.gmra.mrb[76].mxu0 %vm473_vm6, %v4213_v36 }
0x1b83   :  { %v7802_v2 = vpop.f32.mrb[72].mxu1 }
0x1b84   :  { %v4563_v47 = vmul.f32 0.35355338, %v7802_v2  ;;  %v4292_v6 = vpop.f32.mrb[73].mxu1 }
0x1b85   :  { %v4562_v8 = vmul.f32 0.35355338, %v4292_v6 }
0x1b86   :  { %v4571_v7 = vadd.f32 %v4563_v47, %v4109_v12 }
0x1b87   :  { %v4570_v51 = vadd.f32 %v4562_v8, %v4108_v4 }
0x1b88   :  { %v4581_v43 = vsel %vm254_vm4, %v4571_v7, -inf }
0x1b89   :  { %4582 = vmax.xlane.f32.xlu0 %v4581_v43  ;;  %v4578_v40 = vsel %vm254_vm4, %v4570_v51, -inf }
0x1b8a   :  { %4579 = vmax.xlane.f32.xlu1 %v4578_v40 }
0x1bec   :  { %v7809_v41 = vpop.f32.mrb[74].mxu0 }
0x1bed   :  { %v4565_v58 = vmul.f32 0.35355338, %v7809_v41  ;;  %v4379_v53 = vpop.f32.mrb[75].mxu0 }
0x1bee   :  { %v4564_v62 = vmul.f32 0.35355338, %v4379_v53 }
0x1bef   :  { %v4573_v10 = vadd.f32 %v4565_v58, %v4109_v12 }
0x1bf0   :  { %v4572_v14 = vadd.f32 %v4564_v62, %v4108_v4  ;;  %v7816_v55 = vpop.f32.mrb[74].mxu1 }
0x1bf1   :  { %v4567_v9 = vmul.f32 0.35355338, %v7816_v55  ;;  %v4466_v18 = vpop.f32.mrb[75].mxu1  ;;  %v4587_v22 = vsel %vm254_vm4, %v4573_v10, -inf }
0x1bf2   :  { %v4566_v24 = vmul.f32 0.35355338, %v4466_v18  ;;  %4588 = vmax.xlane.f32.xlu1 %v4587_v22  ;;  %v4584_v16 = vsel %vm254_vm4, %v4572_v14, -inf }
0x1bf3   :  { %v4575_v17 = vadd.f32 %v4567_v9, %v4109_v12  ;;  %4585 = vmax.xlane.f32.xlu0 %v4584_v16 }
0x1bf4   :  { %v4574_v26 = vadd.f32 %v4566_v24, %v4108_v4  ;;  %v7823_v27 = vpop.f32.mrb[76].mxu0 }
0x1bf5   :  { %v4569_v15 = vmul.f32 0.35355338, %v7823_v27  ;;  %v4553_v28 = vpop.f32.mrb[77].mxu0  ;;  %v4593_v29 = vsel %vm254_vm4, %v4575_v17, -inf }
0x1bf6   :  { %v4568_v13 = vmul.f32 0.35355338, %v4553_v28  ;;  %4594 = vmax.xlane.f32.xlu1 %v4593_v29  ;;  %v4590_v23 = vsel %vm254_vm4, %v4574_v26, -inf }
0x1bf7   :  { %v4577_v33 = vadd.f32 %v4569_v15, %v4109_v12  ;;  %4591 = vmax.xlane.f32.xlu0 %v4590_v23 }
0x1bf8   :  { %v4576_v63 = vadd.f32 %v4568_v13, %v4108_v4 }
0x1bf9   :  { %v4599_v36 = vsel %vm254_vm4, %v4577_v33, -inf }
0x1bfa   :  { %4600 = vmax.xlane.f32.xlu1 %v4599_v36  ;;  %v4596_v37 = vsel %vm254_vm4, %v4576_v63, -inf }
0x1bfb   :  { %4597 = vmax.xlane.f32.xlu0 %v4596_v37 }
0x1c0b   :  { %8491 = vrot.lane.b32.xlu1 %v9533_v50, %s8790_s9 }
0x1c11   :  { %8486 = vrot.lane.b32.xlu0 %v9529_v30, %s8790_s9 }
0x1c16   :  { %v4583_v42 = vpop.xlane.xlu0 %4582 }
0x1c17   :  { %v4580_v44 = vpop.xlane.xlu1 %4579  ;;  %v4603_v32 = vsub.f32 %v4571_v7, %v4583_v42 }
0x1c18   :  { %v4602_v5 = vsub.f32 %v4570_v51, %v4580_v44 }
0x1c19   :  { %v4612_v46 = vmul.f32 1.442695, %v4603_v32 }
0x1c1a   :  { %v4610_v48 = vmul.f32 1.442695, %v4602_v5 }
0x1c1b   :  { %8642 = vpow2.f32 %v4612_v46 }
0x1c1c   :  { %8644 = vpow2.f32 %v4610_v48 }
0x1c25   :  { %v9580_v54 = vpop.eup %8642 }
0x1c26   :  { %v9582_v56 = vpop.eup %8644  ;;  %v4629_v57 = vsel %vm254_vm4, %v9580_v54, 0.0 }
0x1c27   :  { %v4626_v50 = vsel %vm254_vm4, %v9582_v56, 0.0 }
0x1c2f   :  { %4630 = vadd.xlane.f32.xlu1 %v4629_v57 }
0x1c30   :  { %4627 = vadd.xlane.f32.xlu0 %v4626_v50 }
0x1c7f   :  { %v4589_v30 = vpop.xlane.xlu1 %4588 }
0x1c80   :  { %v4605_v11 = vsub.f32 %v4573_v10, %v4589_v30  ;;  %v4586_v61 = vpop.xlane.xlu0 %4585 }
0x1c81   :  { %v4604_v49 = vsub.f32 %v4572_v14, %v4586_v61 }
0x1c82   :  { %v4616_v52 = vmul.f32 1.442695, %v4605_v11 }
0x1c83   :  { %v4614_v45 = vmul.f32 1.442695, %v4604_v49  ;;  %v4595_v60 = vpop.xlane.xlu1 %4594 }
0x1c84   :  { %8646 = vpow2.f32 %v4616_v52  ;;  %v4607_v59 = vsub.f32 %v4575_v17, %v4595_v60  ;;  %v4592_v12 = vpop.xlane.xlu0 %4591 }
0x1c85   :  { %8648 = vpow2.f32 %v4614_v45  ;;  %v4606_v2 = vsub.f32 %v4574_v26, %v4592_v12 }
0x1c86   :  { %v4620_v47 = vmul.f32 1.442695, %v4607_v59 }
0x1c87   :  { %v4618_v4 = vmul.f32 1.442695, %v4606_v2  ;;  %v4601_v6 = vpop.xlane.xlu1 %4600 }
0x1c88   :  { %8650 = vpow2.f32 %v4620_v47  ;;  %v4609_v8 = vsub.f32 %v4577_v33, %v4601_v6  ;;  %v4598_v7 = vpop.xlane.xlu0 %4597 }
0x1c89   :  { %8652 = vpow2.f32 %v4618_v4  ;;  %v4608_v51 = vsub.f32 %v4576_v63, %v4598_v7 }
0x1c8a   :  { %v4624_v43 = vmul.f32 1.442695, %v4609_v8 }
0x1c8b   :  { %v4622_v40 = vmul.f32 1.442695, %v4608_v51  ;;  %v8492_v41 = vpop.permute.xlu1 %8491 }
0x1c8c   :  { %8654 = vpow2.f32 %v4624_v43  ;;  %v8494_v58 = vunpack.i.h.bf16 %v8492_v41  ;;  %v8487_v53 = vpop.permute.xlu0 %8486  ;;  %v8493_v62 = vunpack.i.l.bf16 %v8492_v41  ;;  %v5044_v41 = vld [vmem:[#allocation2 + $0x2ea] sm:$0xff] }
0x1c8d   :  { %8656 = vpow2.f32 %v4622_v40  ;;  %v8489_v10 = vunpack.i.h.bf16 %v8487_v53  ;;  %v8488_v14 = vunpack.i.l.bf16 %v8487_v53 }
0x1c8e   :  { %v8647_v55 = vpop.eup %8646  ;;  %v8239_v16 = vpack.c.bf16 %v8494_v58, %v8493_v62  ;;  %v5045_v58 = vld [vmem:[#allocation2 + $0x2f2] sm:$0xff]  ;;  %v5046_v62 = vld [vmem:[#allocation2 + $0x2fa] sm:$0xff] }
0x1c8f   :  { %v8649_v9 = vpop.eup %8648  ;;  %v8235_v18 = vpack.c.bf16 %v8489_v10, %v8488_v14  ;;  %v4635_v22 = vsel %vm254_vm4, %v8647_v55, 0.0  ;;  %v8251_v53 = vpack.c.bf16 %v5045_v58, %v5044_v41  ;;  %v5047_v10 = vld [vmem:[#allocation2 + $0x302] sm:$0xff] }
0x1c90   :  { %4636 = vadd.xlane.f32.xlu1 %v4635_v22  ;;  %v4632_v24 = vsel %vm254_vm4, %v8649_v9, 0.0  ;;  %v8255_v14 = vpack.c.bf16 %v5047_v10, %v5046_v62 }
0x1c91   :  { %4633 = vadd.xlane.f32.xlu0 %v4632_v24  ;;  %8236 = vmatprep.subr.bf16.mxu1 %v8235_v18 }
0x1c92   :  { %v8651_v17 = vpop.eup %8650  ;;  %8238 = vmatpush3.bf16.msra.mxu1 %v8235_v18 }
0x1c93   :  { %v8653_v26 = vpop.eup %8652  ;;  %8240 = vmatprep.subr.bf16.mxu1 %v8239_v16  ;;  %v4641_v27 = vsel %vm254_vm4, %v8651_v17, 0.0 }
0x1c94   :  { %4642 = vadd.xlane.f32.xlu1 %v4641_v27  ;;  %v4638_v15 = vsel %vm254_vm4, %v8653_v26, 0.0 }
0x1c95   :  { %4639 = vadd.xlane.f32.xlu0 %v4638_v15 }
0x1c96   :  { %v8655_v28 = vpop.eup %8654 }
0x1c97   :  { %v8657_v29 = vpop.eup %8656  ;;  %v4647_v13 = vsel %vm254_vm4, %v8655_v28, 0.0 }
0x1c98   :  { %4648 = vadd.xlane.f32.xlu1 %v4647_v13  ;;  %v4644_v23 = vsel %vm254_vm4, %v8657_v29, 0.0 }
0x1c99   :  { %4645 = vadd.xlane.f32.xlu0 %v4644_v23 }
0x1ca9   :  { %8496 = vrot.lane.b32.xlu1 %v9538_v35, %s8790_s9 }
0x1caf   :  { %8501 = vrot.lane.b32.xlu0 %v9542_v31, %s8790_s9 }
0x1cbc   :  { %v4631_v33 = vpop.xlane.xlu1 %4630 }
0x1cbd   :  { %8658 = vrcp.f32 %v4631_v33  ;;  %v4628_v63 = vpop.xlane.xlu0 %4627 }
0x1cbe   :  { %8660 = vrcp.f32 %v4628_v63 }
0x1cc7   :  { %v8659_v36 = vpop.eup %8658 }
0x1cc8   :  { %v8661_v37 = vpop.eup %8660  ;;  %v4653_v44 = vmul.f32 %v8659_v36, %v9580_v54 }
0x1cc9   :  { %v4651_v42 = vmul.f32 %v8661_v37, %v9582_v56 }
0x1ccb   :  { %7828 = vmatprep.mubr.msk.f32.mxu1 %vm254_vm4, %v4651_v42 }
0x1ccc   :  { %7829 = vmatmul.mubr.msk.f32.vlgmr.msra.gmra.mrb[76].mxu1 %vm254_vm4, %v4653_v44 }
0x1ccd   :  { %8242 = vmatpush3.bf16.msra.mxu1 %v8239_v16 }
0x1d1d   :  { %v4637_v32 = vpop.xlane.xlu1 %4636 }
0x1d1e   :  { %8662 = vrcp.f32 %v4637_v32  ;;  %v4634_v35 = vpop.xlane.xlu0 %4633 }
0x1d1f   :  { %8664 = vrcp.f32 %v4634_v35 }
0x1d21   :  { %v4643_v31 = vpop.xlane.xlu1 %4642 }
0x1d22   :  { %8666 = vrcp.f32 %v4643_v31  ;;  %v4640_v5 = vpop.xlane.xlu0 %4639 }
0x1d23   :  { %8668 = vrcp.f32 %v4640_v5 }
0x1d25   :  { %v4649_v46 = vpop.xlane.xlu1 %4648 }
0x1d26   :  { %8670 = vrcp.f32 %v4649_v46  ;;  %v4646_v48 = vpop.xlane.xlu0 %4645 }
0x1d27   :  { %8672 = vrcp.f32 %v4646_v48 }
0x1d28   :  { %v8663_v56 = vpop.eup %8662 }
0x1d29   :  { %v8665_v57 = vpop.eup %8664  ;;  %v8497_v54 = vpop.permute.xlu1 %8496  ;;  %v4657_v49 = vmul.f32 %v8663_v56, %v8647_v55 }
0x1d2a   :  { %v8499_v50 = vunpack.i.h.bf16 %v8497_v54  ;;  %v8498_v30 = vunpack.i.l.bf16 %v8497_v54  ;;  %v8502_v11 = vpop.permute.xlu0 %8501  ;;  %v4655_v61 = vmul.f32 %v8665_v57, %v8649_v9 }
0x1d2b   :  { %v8504_v52 = vunpack.i.h.bf16 %v8502_v11  ;;  %v8503_v45 = vunpack.i.l.bf16 %v8502_v11 }
0x1d2c   :  { %v8667_v60 = vpop.eup %8666  ;;  %v8243_v59 = vpack.c.bf16 %v8499_v50, %v8498_v30  ;;  %7835 = vmatprep.mubr.msk.f32.mxu1 %vm254_vm4, %v4655_v61 }
0x1d2d   :  { %v8669_v12 = vpop.eup %8668  ;;  %v8247_v2 = vpack.c.bf16 %v8504_v52, %v8503_v45  ;;  %7836 = vmatmul.mubr.msk.f32.vlgmr.msra.gmra.mrb[78].mxu1 %vm254_vm4, %v4657_v49  ;;  %v4661_v6 = vmul.f32 %v8667_v60, %v8651_v17  ;;  %v6901_v17 = vld [vmem:[#allocation2 + $0x25f] ss:$0 sm:$0xff] }
0x1d2e   :  { %8244 = vmatprep.subr.bf16.mxu0 %v8243_v59  ;;  %v4659_v47 = vmul.f32 %v8669_v12, %v8653_v26  ;;  %v3750_v26 = vadd.f32 %v9510_v19, %v6901_v17  ;;  %v3745_v15 = vadd.f32 %v6901_v17, %v9512_v20 }
0x1d2f   :  { %8246 = vmatpush3.bf16.msra.mxu0 %v8243_v59  ;;  %8248 = vmatprep.subr.bf16.mxu1 %v8247_v2 }
0x1d30   :  { %v8671_v4 = vpop.eup %8670  ;;  %7842 = vmatprep.mubr.msk.f32.mxu0 %vm254_vm4, %v4659_v47  ;;  %8250 = vmatpush3.bf16.msra.mxu1 %v8247_v2  ;;  %v3754_v27 = vadd.f32 %v3750_v26, %v9490_v39  ;;  %v6941_v47 = vld [vmem:[#allocation2 + $0x30a] ss:$0 sm:$0xff] }
0x1d31   :  { %v8673_v8 = vpop.eup %8672  ;;  %v4665_v51 = vmul.f32 %v8671_v4, %v8655_v28  ;;  %8252 = vmatprep.subr.bf16.mxu0 %v8251_v53  ;;  %v6904_v4 = vld [vmem:[#allocation2 + $0x262] ss:$0 sm:$0xff] }
0x1d32   :  { %7843 = vmatmul.mubr.msk.f32.vlgmr.msra.gmra.mrb[78].mxu0 %vm254_vm4, %v4661_v6  ;;  %v4663_v7 = vmul.f32 %v8673_v8, %v8657_v29  ;;  %v3760_v28 = vsel %vm3531_vm10, %v3754_v27, 0.0  ;;  %v3753_v29 = vadd.f32 %v3745_v15, %v9488_v38  ;;  %v6905_v8 = vld [vmem:[#allocation2 + $0x263] ss:$0 sm:$0xff] }
0x1d33   :  { %8254 = vmatpush3.bf16.msra.mxu0 %v8251_v53 }
0x1d34   :  { %7849 = vmatprep.mubr.msk.f32.mxu1 %vm254_vm4, %v4663_v7  ;;  %8256 = vmatprep.subr.bf16.mxu0 %v8255_v14  ;;  %v3757_v13 = vsel %vm356_vm5, %v3753_v29, 0.0 }
0x1d35   :  { %7850 = vmatmul.mubr.msk.f32.vlgmr.msra.gmra.mrb[80].mxu1 %vm254_vm4, %v4665_v51 }
0x1d37   :  { %8258 = vmatpush3.bf16.msra.mxu0 %v8255_v14 }
0x1d9f   :  { %v7830_v43 = vpop.f32.mrb[76].mxu1 }
0x1da0   :  { %v4744_v40 = vpop.f32.mrb[77].mxu1 }
0x1e00   :  { %v7837_v55 = vpop.f32.mrb[78].mxu1 }
0x1e01   :  { %5018 = vrot.lane.b32.xlu0 %v7837_v55, %s8780_s23  ;;  %v4831_v9 = vpop.f32.mrb[79].mxu1 }
0x1e02   :  { %5016 = vrot.lane.b32.xlu1 %v4831_v9, %s8780_s23 }
0x1e05   :  { %v7844_v18 = vpop.f32.mrb[78].mxu0 }
0x1e06   :  { %v4918_v22 = vpop.f32.mrb[79].mxu0  ;;  %5026 = vrot.lane.b32.xlu0 %v7844_v18, %s8791_s10 }
0x1e07   :  { %5024 = vrot.lane.b32.xlu1 %v4918_v22, %s8791_s10 }
0x1e08   :  { %v7851_v24 = vpop.f32.mrb[80].mxu1 }
0x1e09   :  { %v5005_v16 = vpop.f32.mrb[81].mxu1 }
0x1e0a   :  { %5034 = vrot.lane.b32.xlu0 %v7851_v24, %s8792_s11 }
0x1e0b   :  { %5032 = vrot.lane.b32.xlu1 %v5005_v16, %s8792_s11 }
0x1e29   :  { %3761 = vadd.xlane.f32.xlu0 %v3760_v28 }
0x1e2f   :  { %3758 = vadd.xlane.f32.xlu1 %v3757_v13 }
0x1e73   :  { %v5019_v23 = vpop.permute.xlu0 %5018 }
0x1e74   :  { %v5017_v33 = vpop.permute.xlu1 %5016  ;;  %v5039_v19 = vsel %vm473_vm6, %v7830_v43, %v5019_v23 }
0x1e75   :  { %v5038_v37 = vsel %vm473_vm6, %v4744_v40, %v5017_v33 }
0x1e78   :  { %v5027_v63 = vpop.permute.xlu0 %5026 }
0x1e79   :  { %v5025_v36 = vpop.permute.xlu1 %5024  ;;  %v5041_v44 = vsel %vm254_vm4, %v5039_v19, %v5027_v63 }
0x1e7a   :  { %v5040_v39 = vsel %vm254_vm4, %v5038_v37, %v5025_v36 }
0x1e7c   :  { %v5035_v42 = vpop.permute.xlu0 %5034 }
0x1e7d   :  { %v5033_v20 = vpop.permute.xlu1 %5032  ;;  %v5043_v38 = vsel %vm41_vm1, %v5041_v44, %v5035_v42  ;;  %v5268_v44 = vld [vmem:[#allocation2 + $0x32c] sm:$0xff] }
0x1e7e   :  { %v5042_v32 = vsel %vm41_vm1, %v5040_v39, %v5033_v20 }
0x1e7f   :  { %7860 = vmatprep.mubr.msk.f32.mxu0 %vm356_vm5, %v5042_v32  ;;  %v5269_v32 = vld [vmem:[#allocation2 + $0x334] sm:$0xff] }
0x1e80   :  { %7861 = vmatmul.mubr.msk.f32.vlgmr.msra.gmra.mrb[80].mxu0 %vm356_vm5, %v5043_v38  ;;  %v8267_v38 = vpack.c.bf16 %v5269_v32, %v5268_v44 }
0x1e82   :  { %8268 = vmatprep.subr.bf16.mxu0 %v8267_v38 }
0x1e83   :  { %8270 = vmatpush3.bf16.msra.mxu0 %v8267_v38 }
0x1eb6   :  { %v3762_v35 = vpop.xlane.xlu0 %3761 }
0x1eb7   :  { %v3764_v31 = vmul.f32 0.03125, %v3762_v35  ;;  %v5178_v35 = vld [vmem:[#allocation2 + $0x30b] sm:$0xff] }
0x1eb9   :  { %v3766_v5 = vsub.f32 %v3754_v27, %v3764_v31  ;;  %v5179_v31 = vld [vmem:[#allocation2 + $0x313] sm:$0xff] }
0x1ebb   :  { %v3768_v46 = vmul.f32 %v3766_v5, %v3766_v5 }
0x1ebc   :  { %v3759_v48 = vpop.xlane.xlu1 %3758 }
0x1ebd   :  { %v3763_v56 = vmul.f32 0.03125, %v3759_v48  ;;  %v3772_v57 = vsel %vm3531_vm10, %v3768_v46, 0.0  ;;  %v8259_v46 = vpack.c.bf16 %v5179_v31, %v5178_v35  ;;  %v5271_v48 = vld [vmem:[#allocation2 + $0x344] sm:$0xff] }
0x1ebe   :  { %3773 = vadd.xlane.f32.xlu1 %v3772_v57  ;;  %v5180_v57 = vld [vmem:[#allocation2 + $0x31b] sm:$0xff] }
0x1ebf   :  { %v3765_v54 = vsub.f32 %v3753_v29, %v3763_v56  ;;  %8260 = vmatprep.subr.bf16.mxu1 %v8259_v46 }
0x1ec0   :  { %8262 = vmatpush3.bf16.msra.mxu1 %v8259_v46 }
0x1ec1   :  { %v3767_v50 = vmul.f32 %v3765_v54, %v3765_v54 }
0x1ec3   :  { %v3769_v30 = vsel %vm356_vm5, %v3767_v50, 0.0 }
0x1ec4   :  { %3770 = vadd.xlane.f32.xlu0 %v3769_v30 }
0x1f4b   :  { %v3774_v11 = vpop.xlane.xlu1 %3773 }
0x1f4c   :  { %v3776_v61 = vmul.f32 0.03125, %v3774_v11 }
0x1f4e   :  { %v3778_v49 = vadd.f32 1e-05, %v3776_v61 }
0x1f50   :  { %8674 = vrsqrt.f32 %v3778_v49 }
0x1f51   :  { %v3771_v52 = vpop.xlane.xlu0 %3770 }
0x1f52   :  { %v3775_v45 = vmul.f32 0.03125, %v3771_v52 }
0x1f53   :  { %v7862_v60 = vpop.f32.mrb[80].mxu0 }
0x1f54   :  { %v3777_v59 = vadd.f32 1e-05, %v3775_v45  ;;  %v5125_v12 = vpop.f32.mrb[81].mxu0  ;;  %v5131_v7 = vadd.f32 %v7862_v60, %v6941_v47 }
0x1f55   :  { %v5126_v62 = vadd.f32 %v6941_v47, %v5125_v12 }
0x1f56   :  { %8676 = vrsqrt.f32 %v3777_v59  ;;  %v5135_v41 = vadd.f32 %v5131_v7, %v9516_v3 }
0x1f57   :  { %v5134_v9 = vadd.f32 %v5126_v62, %v9514_v25 }
0x1f58   :  { %v5141_v14 = vsel %vm356_vm5, %v5135_v41, 0.0 }
0x1f59   :  { %v5138_v22 = vsel %vm356_vm5, %v5134_v9, 0.0 }
0x1f5a   :  { %v8675_v2 = vpop.eup %8674 }
0x1f5b   :  { %v3782_v6 = vmul.f32 %v8675_v2, %v3766_v5  ;;  %v5270_v5 = vld [vmem:[#allocation2 + $0x33c] sm:$0xff] }
0x1f5c   :  { %v8271_v56 = vpack.c.bf16 %v5271_v48, %v5270_v5 }
0x1f5d   :  { %v3788_v51 = vmul.f32 %v6904_v4, %v3782_v6 }
0x1f5e   :  { %8272 = vmatprep.subr.bf16.mxu0 %v8271_v56 }
0x1f5f   :  { %v3794_v43 = vadd.f32 %v6905_v8, %v3788_v51  ;;  %8274 = vmatpush3.bf16.msra.mxu0 %v8271_v56  ;;  %v6906_v51 = vld [vmem:[#allocation2 + $0x2c7] ss:$0 sm:$0xff] }
0x1f60   :  { %v8677_v40 = vpop.eup %8676 }
0x1f61   :  { %v3800_v58 = vsel %vm3531_vm10, %v3794_v43, 0.0  ;;  %v3781_v53 = vmul.f32 %v8677_v40, %v3765_v54  ;;  %v5181_v54 = vld [vmem:[#allocation2 + $0x323] sm:$0xff] }
0x1f62   :  { %3801 = vadd.xlane.f32.xlu1 %v3800_v58  ;;  %v8263_v50 = vpack.c.bf16 %v5181_v54, %v5180_v57 }
0x1f63   :  { %v3787_v10 = vmul.f32 %v6904_v4, %v3781_v53  ;;  %v6907_v53 = vld [vmem:[#allocation2 + $0x2c8] ss:$0 sm:$0xff] }
0x1f64   :  { %8264 = vmatprep.subr.bf16.mxu1 %v8263_v50 }
0x1f65   :  { %v3793_v55 = vadd.f32 %v6905_v8, %v3787_v10  ;;  %8266 = vmatpush3.bf16.msra.mxu1 %v8263_v50  ;;  %v6944_v10 = vld [vmem:[#allocation2 + $0x3d0] ss:$0 sm:$0xff] }
0x1f66   :  { %5142 = vadd.xlane.f32.xlu1 %v5141_v14 }
0x1f67   :  { %v3797_v18 = vsel %vm356_vm5, %v3793_v55, 0.0 }
0x1f68   :  { %3798 = vadd.xlane.f32.xlu0 %v3797_v18 }
0x1f6c   :  { %5139 = vadd.xlane.f32.xlu0 %v5138_v22 }
0x1fef   :  { %v3802_v24 = vpop.xlane.xlu1 %3801 }
0x1ff0   :  { %v3804_v3 = vmul.f32 0.03125, %v3802_v24  ;;  %v6945_v24 = vld [vmem:[#allocation2 + $0x3d1] ss:$0 sm:$0xff] }
0x1ff2   :  { %v3806_v16 = vsub.f32 %v3794_v43, %v3804_v3 }
0x1ff3   :  { %v5143_v17 = vpop.xlane.xlu1 %5142 }
0x1ff4   :  { %v5145_v26 = vmul.f32 0.03125, %v5143_v17  ;;  %v3808_v27 = vmul.f32 %v3806_v16, %v3806_v16 }
0x1ff5   :  { %v3799_v15 = vpop.xlane.xlu0 %3798 }
0x1ff6   :  { %v5147_v28 = vsub.f32 %v5135_v41, %v5145_v26  ;;  %v3803_v29 = vmul.f32 0.03125, %v3799_v15  ;;  %v3812_v13 = vsel %vm3531_vm10, %v3808_v27, 0.0  ;;  %v6949_v26 = vld [vmem:[#allocation2 + $0x34c] ss:$0 sm:$0xff] }
0x1ff7   :  { %3813 = vadd.xlane.f32.xlu1 %v3812_v13  ;;  %v6946_v13 = vld [vmem:[#allocation2 + $0x32b] ss:$0 sm:$0xff] }
0x1ff8   :  { %v3805_v23 = vsub.f32 %v3793_v55, %v3803_v29  ;;  %v5149_v25 = vmul.f32 %v5147_v28, %v5147_v28 }
0x1ff9   :  { %v5140_v33 = vpop.xlane.xlu0 %5139 }
0x1ffa   :  { %v5144_v63 = vmul.f32 0.03125, %v5140_v33  ;;  %v5153_v36 = vsel %vm356_vm5, %v5149_v25, 0.0  ;;  %v3807_v37 = vmul.f32 %v3805_v23, %v3805_v23 }
0x1ffb   :  { %5154 = vadd.xlane.f32.xlu1 %v5153_v36 }
0x1ffc   :  { %v5146_v42 = vsub.f32 %v5134_v9, %v5144_v63  ;;  %v3809_v19 = vsel %vm356_vm5, %v3807_v37, 0.0 }
0x1ffd   :  { %3810 = vadd.xlane.f32.xlu0 %v3809_v19 }
0x1ffe   :  { %v5148_v39 = vmul.f32 %v5146_v42, %v5146_v42 }
0x2000   :  { %v5150_v20 = vsel %vm356_vm5, %v5148_v39, 0.0 }
0x2001   :  { %5151 = vadd.xlane.f32.xlu0 %v5150_v20 }
0x2084   :  { %v3814_v30 = vpop.xlane.xlu1 %3813 }
0x2085   :  { %v3816_v11 = vmul.f32 0.03125, %v3814_v30 }
0x2087   :  { %v3818_v61 = vadd.f32 1e-05, %v3816_v11 }
0x2088   :  { %v5155_v49 = vpop.xlane.xlu1 %5154 }
0x2089   :  { %v5157_v52 = vmul.f32 0.03125, %v5155_v49  ;;  %8678 = vrsqrt.f32 %v3818_v61  ;;  %v5177_v61 = vld [vmem:[#allocation2 + $0xb4] sm:$0xff] }
0x208a   :  { %v3811_v45 = vpop.xlane.xlu0 %3810 }
0x208b   :  { %v5159_v60 = vadd.f32 1e-05, %v5157_v52  ;;  %v3815_v59 = vmul.f32 0.03125, %v3811_v45  ;;  %v5176_v45 = vld [vmem:[#allocation2 + $0xac] sm:$0xff] }
0x208d   :  { %v3817_v12 = vadd.f32 1e-05, %v3815_v59  ;;  %8680 = vrsqrt.f32 %v5159_v60 }
0x208e   :  { %v5152_v2 = vpop.xlane.xlu0 %5151 }
0x208f   :  { %8682 = vrsqrt.f32 %v3817_v12  ;;  %v5156_v47 = vmul.f32 0.03125, %v5152_v2 }
0x2091   :  { %v5158_v4 = vadd.f32 1e-05, %v5156_v47 }
0x2093   :  { %8684 = vrsqrt.f32 %v5158_v4  ;;  %v8679_v6 = vpop.eup %8678 }
0x2094   :  { %v3822_v8 = vmul.f32 %v8679_v6, %v3806_v16 }
0x2096   :  { %v3828_v58 = vmul.f32 %v6906_v51, %v3822_v8 }
0x2097   :  { %v8681_v7 = vpop.eup %8680 }
0x2098   :  { %v5163_v41 = vmul.f32 %v8681_v7, %v5147_v28  ;;  %v3834_v18 = vadd.f32 %v6907_v53, %v3828_v58 }
0x2099   :  { %v8683_v43 = vpop.eup %8682 }
0x209a   :  { %v3821_v40 = vmul.f32 %v8683_v43, %v3805_v23  ;;  %v5169_v22 = vmul.f32 %v6944_v10, %v5163_v41 }
0x209c   :  { %v3827_v62 = vmul.f32 %v6906_v51, %v3821_v40  ;;  %v9644_v17 = vadd.f32 %v6945_v24, %v5169_v22 }
0x209d   :  { %v8685_v14 = vpop.eup %8684 }
0x209e   :  { %v3833_v55 = vadd.f32 %v6907_v53, %v3827_v62  ;;  %v5162_v9 = vmul.f32 %v8685_v14, %v5146_v42 }
0x20a0   :  { %7882 = vmatprep.mubr.msk.f32.mxu0 %vm356_vm5, %v3833_v55  ;;  %v5168_v3 = vmul.f32 %v6944_v10, %v5162_v9 }
0x20a1   :  { %7883 = vmatmul.mubr.msk.f32.vlgmr.msra.gmra.mrb[82].mxu0 %vm356_vm5, %v3834_v18 }
0x20a2   :  { %v9642_v16 = vadd.f32 %v6945_v24, %v5168_v3 }
0x20a4   :  { %7871 = vmatprep.mubr.msk.f32.mxu1 %vm356_vm5, %v9642_v16 }
0x20a5   :  { %7872 = vmatmul.mubr.msk.f32.vlgmr.msra.gmra.mrb[82].mxu1 %vm356_vm5, %v9644_v17 }
0x2174   :  { %v7884_v27 = vpop.f32.mrb[82].mxu0 }
0x2175   :  { %v5355_v15 = vadd.f32 %v7884_v27, %v6949_v26  ;;  %v5349_v28 = vpop.f32.mrb[83].mxu0 }
0x2176   :  { %v5350_v29 = vadd.f32 %v6949_v26, %v5349_v28 }
0x2178   :  { %v7873_v23 = vpop.f32.mrb[82].mxu1  ;;  %v9650_v25 = vpack.i.bf16 %v5355_v15, %v5350_v29  ;;  %v8275_v33 = vpack.c.bf16 %v5355_v15, %v5350_v29 }
0x2179   :  { %v5259_v63 = vpop.f32.mrb[83].mxu1  ;;  %v5265_v37 = vadd.f32 %v7873_v23, %v6946_v13 }
0x217a   :  { %v5260_v36 = vadd.f32 %v6946_v13, %v5259_v63  ;;  %8511 = vrot.lane.b32.xlu1 %v9650_v25, %s8787_s6  ;;  %8506 = vrot.lane.b32.xlu0 %v9650_v25, %s8786_s5 }
0x217b   :  { %8277 = vmatprep.subr.msk.bf16.mxu1 %vm8964_vm7, %v8275_v33 }
0x217c   :  { %8280 = vmatpush3.bf16.xpose.msk.msra.mxu1 %vm8964_vm7, %v8275_v33  ;;  %7889 = vmatprep.mubr.msk.f32.mxu1 %vm473_vm6, %v5260_v36 }
0x217e   :  { %8516 = vrot.lane.b32.xlu1 %v9650_v25, %s8788_s7  ;;  %5360 = vrot.lane.b32.xlu0 %v5260_v36, %s8786_s5 }
0x2182   :  { %5362 = vrot.lane.b32.xlu1 %v5265_v37, %s8786_s5  ;;  %5364 = vrot.lane.b32.xlu0 %v5260_v36, %s8787_s6 }
0x2183   :  { %7890 = vmatmul.mubr.msk.f32.vlgmr.msra.gmra.mrb[84].mxu1 %vm473_vm6, %v5265_v37 }
0x2186   :  { %5366 = vrot.lane.b32.xlu1 %v5265_v37, %s8787_s6  ;;  %5368 = vrot.lane.b32.xlu0 %v5260_v36, %s8788_s7 }
0x218a   :  { %5370 = vrot.lane.b32.xlu1 %v5265_v37, %s8788_s7 }
0x21ec   :  { %v9670_v42 = vpop.permute.xlu0 %8506  ;;  %v9672_v19 = vpop.permute.xlu1 %8511 }
0x21ed   :  { %v8509_v39 = vunpack.i.h.bf16 %v9670_v42  ;;  %v8508_v20 = vunpack.i.l.bf16 %v9670_v42  ;;  %v8514_v44 = vunpack.i.h.bf16 %v9672_v19  ;;  %v8513_v32 = vunpack.i.l.bf16 %v9672_v19 }
0x21ef   :  { %v8281_v38 = vpack.c.bf16 %v8509_v39, %v8508_v20  ;;  %v8287_v35 = vpack.c.bf16 %v8514_v44, %v8513_v32 }
0x21f0   :  { %v5361_v31 = vpop.permute.xlu0 %5360  ;;  %v9678_v5 = vpop.permute.xlu1 %8516 }
0x21f1   :  { %v8519_v46 = vunpack.i.h.bf16 %v9678_v5  ;;  %v8518_v48 = vunpack.i.l.bf16 %v9678_v5  ;;  %8283 = vmatprep.subr.msk.bf16.mxu0 %vm8964_vm7, %v8281_v38  ;;  %7896 = vmatprep.mubr.msk.f32.mxu0 %vm473_vm6, %v5361_v31 }
0x21f2   :  { %8289 = vmatprep.subr.msk.bf16.mxu1 %vm8964_vm7, %v8287_v35  ;;  %8286 = vmatpush3.bf16.xpose.msk.msra.mxu0 %vm8964_vm7, %v8281_v38 }
0x21f3   :  { %v8293_v56 = vpack.c.bf16 %v8519_v46, %v8518_v48  ;;  %8292 = vmatpush3.bf16.xpose.msk.msra.mxu1 %vm8964_vm7, %v8287_v35 }
0x21f4   :  { %v5365_v57 = vpop.permute.xlu0 %5364  ;;  %v5363_v54 = vpop.permute.xlu1 %5362 }
0x21f5   :  { %7903 = vmatprep.mubr.msk.f32.mxu1 %vm473_vm6, %v5365_v57  ;;  %8295 = vmatprep.subr.msk.bf16.mxu0 %vm8964_vm7, %v8293_v56 }
0x21f8   :  { %v5369_v50 = vpop.permute.xlu0 %5368  ;;  %v5367_v30 = vpop.permute.xlu1 %5366 }
0x21f9   :  { %7897 = vmatmul.mubr.msk.f32.vlgmr.msra.gmra.mrb[84].mxu0 %vm473_vm6, %v5363_v54 }
0x21fa   :  { %7904 = vmatmul.mubr.msk.f32.vlgmr.msra.gmra.mrb[86].mxu1 %vm473_vm6, %v5367_v30  ;;  %8298 = vmatpush3.bf16.xpose.msk.msra.mxu0 %vm8964_vm7, %v8293_v56 }
0x21fb   :  { %7910 = vmatprep.mubr.msk.f32.mxu0 %vm473_vm6, %v5369_v50 }
0x21fc   :  { %v5371_v11 = vpop.permute.xlu1 %5370 }
0x2201   :  { %7911 = vmatmul.mubr.msk.f32.vlgmr.msra.gmra.mrb[86].mxu0 %vm473_vm6, %v5371_v11 }
0x2256   :  { %v7891_v49 = vpop.f32.mrb[84].mxu1 }
0x2257   :  { %v5719_v52 = vmul.f32 0.35355338, %v7891_v49  ;;  %v5460_v60 = vpop.f32.mrb[85].mxu1 }
0x2258   :  { %v5718_v59 = vmul.f32 0.35355338, %v5460_v60 }
0x2259   :  { %v5727_v12 = vadd.f32 %v5719_v52, %v5177_v61 }
0x225a   :  { %v5726_v2 = vadd.f32 %v5718_v59, %v5176_v45 }
0x225b   :  { %v5737_v47 = vsel %vm248_vm3, %v5727_v12, -inf }
0x225c   :  { %5738 = vmax.xlane.f32.xlu1 %v5737_v47  ;;  %v5734_v4 = vsel %vm248_vm3, %v5726_v2, -inf }
0x225d   :  { %5735 = vmax.xlane.f32.xlu0 %v5734_v4 }
0x22cc   :  { %v7898_v21 = vpop.f32.mrb[84].mxu0 }
0x22cd   :  { %v5721_v6 = vmul.f32 0.35355338, %v7898_v21  ;;  %v7905_v8 = vpop.f32.mrb[86].mxu1  ;;  %v5543_v7 = vpop.f32.mrb[85].mxu0 }
0x22ce   :  { %v5720_v51 = vmul.f32 0.35355338, %v5543_v7  ;;  %v5626_v43 = vpop.f32.mrb[87].mxu1  ;;  %v5723_v58 = vmul.f32 0.35355338, %v7905_v8 }
0x22cf   :  { %v5729_v40 = vadd.f32 %v5721_v6, %v5177_v61  ;;  %v5722_v41 = vmul.f32 0.35355338, %v5626_v43 }
0x22d0   :  { %v5728_v53 = vadd.f32 %v5720_v51, %v5176_v45  ;;  %v5731_v9 = vadd.f32 %v5723_v58, %v5177_v61 }
0x22d1   :  { %v5730_v62 = vadd.f32 %v5722_v41, %v5176_v45  ;;  %v5743_v10 = vsel %vm248_vm3, %v5729_v40, -inf }
0x22d2   :  { %5744 = vmax.xlane.f32.xlu0 %v5743_v10  ;;  %v5740_v24 = vsel %vm248_vm3, %v5728_v53, -inf  ;;  %v5749_v15 = vsel %vm248_vm3, %v5731_v9, -inf }
0x22d3   :  { %v5746_v14 = vsel %vm248_vm3, %v5730_v62, -inf }
0x22d4   :  { %5747 = vmax.xlane.f32.xlu1 %v5746_v14  ;;  %v7912_v55 = vpop.f32.mrb[86].mxu0 }
0x22d5   :  { %v5725_v18 = vmul.f32 0.35355338, %v7912_v55  ;;  %v5709_v22 = vpop.f32.mrb[87].mxu0 }
0x22d6   :  { %v5724_v3 = vmul.f32 0.35355338, %v5709_v22  ;;  %5741 = vmax.xlane.f32.xlu0 %v5740_v24 }
0x22d7   :  { %v5733_v27 = vadd.f32 %v5725_v18, %v5177_v61 }
0x22d8   :  { %v9705_v26 = vadd.f32 %v5724_v3, %v5176_v45 }
0x22d9   :  { %v5755_v29 = vsel %vm248_vm3, %v5733_v27, -inf }
0x22da   :  { %5750 = vmax.xlane.f32.xlu0 %v5749_v15  ;;  %v5752_v28 = vsel %vm248_vm3, %v9705_v26, -inf }
0x22db   :  { %5753 = vmax.xlane.f32.xlu1 %v5752_v28 }
0x22de   :  { %5756 = vmax.xlane.f32.xlu0 %v5755_v29 }
0x22e9   :  { %v5739_v13 = vpop.xlane.xlu1 %5738 }
0x22ea   :  { %v5759_v23 = vsub.f32 %v5727_v12, %v5739_v13  ;;  %v5736_v63 = vpop.xlane.xlu0 %5735 }
0x22eb   :  { %v5758_v39 = vsub.f32 %v5726_v2, %v5736_v63 }
0x22ec   :  { %v5768_v33 = vmul.f32 1.442695, %v5759_v23  ;;  %8521 = vrot.lane.b32.xlu1 %v9650_v25, %s8789_s8 }
0x22ed   :  { %v5766_v20 = vmul.f32 1.442695, %v5758_v39 }
0x22ee   :  { %8686 = vpow2.f32 %v5768_v33 }
0x22ef   :  { %8688 = vpow2.f32 %v5766_v20 }
0x22f8   :  { %v9713_v36 = vpop.eup %8686 }
0x22f9   :  { %v5785_v37 = vsel %vm248_vm3, %v9713_v36, 0.0  ;;  %v8689_v44 = vpop.eup %8688 }
0x22fa   :  { %5786 = vadd.xlane.f32.xlu0 %v5785_v37  ;;  %v5782_v32 = vsel %vm248_vm3, %v8689_v44, 0.0 }
0x2310   :  { %5783 = vadd.xlane.f32.xlu1 %v5782_v32 }
0x235f   :  { %v5745_v38 = vpop.xlane.xlu0 %5744 }
0x2360   :  { %v5761_v35 = vsub.f32 %v5729_v40, %v5745_v38 }
0x2361   :  { %v5748_v31 = vpop.xlane.xlu1 %5747 }
0x2362   :  { %v5772_v46 = vmul.f32 1.442695, %v5761_v35  ;;  %v5762_v25 = vsub.f32 %v5730_v62, %v5748_v31 }
0x2363   :  { %v5742_v48 = vpop.xlane.xlu0 %5741 }
0x2364   :  { %8690 = vpow2.f32 %v5772_v46  ;;  %v5760_v56 = vsub.f32 %v5728_v53, %v5742_v48  ;;  %v5774_v57 = vmul.f32 1.442695, %v5762_v25 }
0x2366   :  { %v5770_v54 = vmul.f32 1.442695, %v5760_v56 }
0x2367   :  { %v5751_v50 = vpop.xlane.xlu0 %5750 }
0x2368   :  { %8692 = vpow2.f32 %v5770_v54  ;;  %v5763_v30 = vsub.f32 %v5731_v9, %v5751_v50  ;;  %v5754_v11 = vpop.xlane.xlu1 %5753 }
0x2369   :  { %8694 = vpow2.f32 %v5774_v57  ;;  %v5764_v58 = vsub.f32 %v9705_v26, %v5754_v11 }
0x236a   :  { %v5776_v61 = vmul.f32 1.442695, %v5763_v30 }
0x236b   :  { %v5757_v49 = vpop.xlane.xlu0 %5756  ;;  %v5778_v62 = vmul.f32 1.442695, %v5764_v58 }
0x236c   :  { %8696 = vpow2.f32 %v5776_v61  ;;  %v5765_v52 = vsub.f32 %v5733_v27, %v5757_v49  ;;  %v8522_v45 = vpop.permute.xlu1 %8521  ;;  %v6204_v49 = vld [vmem:[#allocation2 + $0x34d] sm:$0xff] }
0x236d   :  { %v8524_v60 = vunpack.i.h.bf16 %v8522_v45  ;;  %v8523_v59 = vunpack.i.l.bf16 %v8522_v45  ;;  %v6206_v45 = vld [vmem:[#allocation2 + $0x35d] sm:$0xff] }
0x236e   :  { %v9718_v12 = vpop.eup %8690  ;;  %v5780_v2 = vmul.f32 1.442695, %v5765_v52  ;;  %v6205_v52 = vld [vmem:[#allocation2 + $0x355] sm:$0xff] }
0x236f   :  { %v8299_v47 = vpack.c.bf16 %v8524_v60, %v8523_v59  ;;  %v5791_v4 = vsel %vm248_vm3, %v9718_v12, 0.0  ;;  %v8323_v60 = vpack.c.bf16 %v6205_v52, %v6204_v49  ;;  %v6207_v59 = vld [vmem:[#allocation2 + $0x365] sm:$0xff] }
0x2370   :  { %8698 = vpow2.f32 %v5780_v2  ;;  %5792 = vadd.xlane.f32.xlu0 %v5791_v4 }
0x2371   :  { %8301 = vmatprep.subr.msk.bf16.mxu1 %vm9420_vm9, %v8299_v47 }
0x2372   :  { %v8693_v21 = vpop.eup %8692  ;;  %8304 = vmatpush3.bf16.msk.msra.mxu1 %vm9420_vm9, %v8299_v47 }
0x2373   :  { %v5788_v6 = vsel %vm248_vm3, %v8693_v21, 0.0  ;;  %v8695_v8 = vpop.eup %8694 }
0x2374   :  { %5789 = vadd.xlane.f32.xlu1 %v5788_v6  ;;  %v5794_v43 = vsel %vm248_vm3, %v8695_v8, 0.0 }
0x2376   :  { %v8697_v7 = vpop.eup %8696 }
0x2377   :  { %v5797_v51 = vsel %vm248_vm3, %v8697_v7, 0.0 }
0x2378   :  { %5798 = vadd.xlane.f32.xlu0 %v5797_v51  ;;  %5795 = vadd.xlane.f32.xlu1 %v5794_v43 }
0x237a   :  { %v9729_v40 = vpop.eup %8698 }
0x237b   :  { %v5803_v41 = vsel %vm248_vm3, %v9729_v40, 0.0 }
0x237c   :  { %5804 = vadd.xlane.f32.xlu0 %v5803_v41 }
0x2387   :  { %v5787_v53 = vpop.xlane.xlu0 %5786 }
0x2388   :  { %8700 = vrcp.f32 %v5787_v53 }
0x2389   :  { %8531 = vrot.lane.b32.xlu1 %v9672_v19, %s8789_s8 }
0x2392   :  { %8526 = vrot.lane.b32.xlu0 %v9670_v42, %s8789_s8  ;;  %v8701_v14 = vpop.eup %8700 }
0x2393   :  { %v5809_v22 = vmul.f32 %v8701_v14, %v9713_v36 }
0x239d   :  { %v5784_v10 = vpop.xlane.xlu1 %5783 }
0x239e   :  { %8702 = vrcp.f32 %v5784_v10 }
0x239f   :  { %8704 = vpow2.f32 %v5778_v62 }
0x23a8   :  { %v8703_v55 = vpop.eup %8702 }
0x23a9   :  { %v8705_v9 = vpop.eup %8704  ;;  %v5807_v18 = vmul.f32 %v8703_v55, %v8689_v44 }
0x23aa   :  { %v5800_v42 = vsel %vm248_vm3, %v8705_v9, 0.0 }
0x23ab   :  { %7917 = vmatprep.mubr.msk.f32.mxu1 %vm248_vm3, %v5807_v18 }
0x23ac   :  { %7918 = vmatmul.mubr.msk.f32.vlgmr.msra.gmra.mrb[88].mxu1 %vm248_vm3, %v5809_v22 }
0x23ad   :  { %5801 = vadd.xlane.f32.xlu1 %v5800_v42 }
0x23be   :  { %8536 = vrot.lane.b32.xlu1 %v9678_v5, %s8789_s8 }
0x23fd   :  { %v5793_v19 = vpop.xlane.xlu0 %5792 }
0x2401   :  { %v5790_v24 = vpop.xlane.xlu1 %5789 }
0x2402   :  { %8706 = vrcp.f32 %v5790_v24 }
0x2403   :  { %8708 = vrcp.f32 %v5793_v19 }
0x2405   :  { %v5799_v3 = vpop.xlane.xlu0 %5798  ;;  %v5796_v26 = vpop.xlane.xlu1 %5795 }
0x2406   :  { %8710 = vrcp.f32 %v5799_v3 }
0x2407   :  { %8712 = vrcp.f32 %v5796_v26 }
0x2409   :  { %v5805_v27 = vpop.xlane.xlu0 %5804  ;;  %v8532_v15 = vpop.permute.xlu1 %8531 }
0x240a   :  { %v8534_v28 = vunpack.i.h.bf16 %v8532_v15  ;;  %v8533_v29 = vunpack.i.l.bf16 %v8532_v15  ;;  %8714 = vrcp.f32 %v5805_v27 }
0x240c   :  { %v8707_v13 = vpop.eup %8706  ;;  %v8311_v23 = vpack.c.bf16 %v8534_v28, %v8533_v29 }
0x240d   :  { %v8527_v33 = vpop.permute.xlu0 %8526  ;;  %v5811_v63 = vmul.f32 %v8707_v13, %v8693_v21  ;;  %v8709_v5 = vpop.eup %8708 }
0x240e   :  { %v8529_v36 = vunpack.i.h.bf16 %v8527_v33  ;;  %v8528_v37 = vunpack.i.l.bf16 %v8527_v33  ;;  %8313 = vmatprep.subr.msk.bf16.mxu0 %vm9420_vm9, %v8311_v23  ;;  %v5813_v35 = vmul.f32 %v8709_v5, %v9718_v12  ;;  %v8327_v12 = vpack.c.bf16 %v6207_v59, %v6206_v45  ;;  %v6337_v5 = vld [vmem:[#allocation2 + $0x376] sm:$0xff] }
0x240f   :  { %7924 = vmatprep.mubr.msk.f32.mxu1 %vm248_vm3, %v5811_v63  ;;  %8316 = vmatpush3.bf16.msk.msra.mxu0 %vm9420_vm9, %v8311_v23 }
0x2410   :  { %v8711_v39 = vpop.eup %8710  ;;  %v8305_v20 = vpack.c.bf16 %v8529_v36, %v8528_v37  ;;  %8324 = vmatprep.subr.bf16.mxu0 %v8323_v60 }
0x2411   :  { %v8713_v44 = vpop.eup %8712  ;;  %v5817_v32 = vmul.f32 %v8711_v39, %v8697_v7 }
0x2412   :  { %8307 = vmatprep.subr.msk.bf16.mxu1 %vm9420_vm9, %v8305_v20  ;;  %v5815_v38 = vmul.f32 %v8713_v44, %v8695_v8  ;;  %v6339_v44 = vld [vmem:[#allocation2 + $0x386] sm:$0xff] }
0x2413   :  { %8310 = vmatpush3.bf16.msk.msra.mxu1 %vm9420_vm9, %v8305_v20  ;;  %v6338_v20 = vld [vmem:[#allocation2 + $0x37e] sm:$0xff] }
0x2414   :  { %7931 = vmatprep.mubr.msk.f32.mxu0 %vm248_vm3, %v5815_v38  ;;  %v8715_v57 = vpop.eup %8714  ;;  %v6428_v38 = vld [vmem:[#allocation2 + $0x38f] sm:$0xff] }
0x2415   :  { %7932 = vmatmul.mubr.msk.f32.vlgmr.msra.gmra.mrb[88].mxu0 %vm248_vm3, %v5817_v32  ;;  %v5821_v30 = vmul.f32 %v8715_v57, %v9729_v40  ;;  %v8335_v32 = vpack.c.bf16 %v6339_v44, %v6338_v20  ;;  %v6433_v57 = vld [vmem:[#allocation2 + $0x3b7] sm:$0xff] }
0x2416   :  { %7925 = vmatmul.mubr.msk.f32.vlgmr.msra.gmra.mrb[90].mxu1 %vm248_vm3, %v5813_v35  ;;  %8326 = vmatpush3.bf16.msra.mxu0 %v8323_v60  ;;  %v6429_v35 = vld [vmem:[#allocation2 + $0x397] sm:$0xff]  ;;  %v6983_v60 = vld [vmem:[#allocation2 + $0x3d2] ss:$0 sm:$0xff] }
0x2417   :  { %8328 = vmatprep.subr.bf16.mxu0 %v8327_v12 }
0x241a   :  { %8330 = vmatpush3.bf16.msra.mxu0 %v8327_v12  ;;  %v6984_v12 = vld [vmem:[#allocation2 + $0x3d3] ss:$0 sm:$0xff] }
0x243a   :  { %v5802_v31 = vpop.xlane.xlu1 %5801 }
0x243b   :  { %8716 = vrcp.f32 %v5802_v31  ;;  %v6430_v31 = vld [vmem:[#allocation2 + $0x39f] sm:$0xff] }
0x243e   :  { %v8537_v46 = vpop.permute.xlu1 %8536 }
0x243f   :  { %v8539_v25 = vunpack.i.h.bf16 %v8537_v46  ;;  %v8538_v48 = vunpack.i.l.bf16 %v8537_v46  ;;  %v8339_v46 = vpack.c.bf16 %v6429_v35, %v6428_v38 }
0x2441   :  { %v8317_v56 = vpack.c.bf16 %v8539_v25, %v8538_v48  ;;  %v6431_v25 = vld [vmem:[#allocation2 + $0x3a7] sm:$0xff]  ;;  %8340 = vmatprep.subr.bf16.mxu0 %v8339_v46 }
0x2442   :  { %v8343_v48 = vpack.c.bf16 %v6431_v25, %v6430_v31  ;;  %v6992_v31 = vld [vmem:[#allocation2 + $0x3d5] ss:$0 sm:$0xff] }
0x2443   :  { %8319 = vmatprep.subr.msk.bf16.mxu1 %vm9420_vm9, %v8317_v56 }
0x2444   :  { %8322 = vmatpush3.bf16.msk.msra.mxu1 %vm9420_vm9, %v8317_v56  ;;  %v6432_v56 = vld [vmem:[#allocation2 + $0x3af] sm:$0xff] }
0x2445   :  { %v8717_v54 = vpop.eup %8716 }
0x2446   :  { %v5819_v50 = vmul.f32 %v8717_v54, %v8705_v9  ;;  %v6980_v9 = vld [vmem:[#allocation2 + $0x36d] ss:$0 sm:$0xff]  ;;  %v8347_v54 = vpack.c.bf16 %v6433_v57, %v6432_v56 }
0x2448   :  { %7938 = vmatprep.mubr.msk.f32.mxu1 %vm248_vm3, %v5819_v50 }
0x2449   :  { %7939 = vmatmul.mubr.msk.f32.vlgmr.msra.gmra.mrb[92].mxu1 %vm248_vm3, %v5821_v30 }
0x247f   :  { %v7919_v11 = vpop.f32.mrb[88].mxu1 }
0x2480   :  { %v5901_v61 = vpop.f32.mrb[89].mxu1 }
0x24e8   :  { %v7933_v34 = vpop.f32.mrb[88].mxu0 }
0x24e9   :  { %v6077_v2 = vpop.f32.mrb[89].mxu0  ;;  %v7926_v47 = vpop.f32.mrb[90].mxu1 }
0x24ea   :  { %v5989_v4 = vpop.f32.mrb[91].mxu1  ;;  %6178 = vrot.lane.b32.xlu1 %v7926_v47, %s8780_s23 }
0x24eb   :  { %6176 = vrot.lane.b32.xlu0 %v5989_v4, %s8780_s23 }
0x24ee   :  { %6186 = vrot.lane.b32.xlu1 %v7933_v34, %s8791_s10 }
0x24ef   :  { %6184 = vrot.lane.b32.xlu0 %v6077_v2, %s8791_s10 }
0x251c   :  { %v7940_v21 = vpop.f32.mrb[92].mxu1 }
0x251d   :  { %v6165_v6 = vpop.f32.mrb[93].mxu1  ;;  %6194 = vrot.lane.b32.xlu1 %v7940_v21, %s8792_s11 }
0x251e   :  { %6192 = vrot.lane.b32.xlu0 %v6165_v6, %s8792_s11 }
0x255c   :  { %v6179_v8 = vpop.permute.xlu1 %6178 }
0x255d   :  { %v6177_v7 = vpop.permute.xlu0 %6176  ;;  %v6199_v58 = vsel %vm473_vm6, %v7919_v11, %v6179_v8  ;;  %v6434_v8 = vld [vmem:[#allocation2 + $0x3bf] sm:$0xff] }
0x255e   :  { %v6198_v40 = vsel %vm473_vm6, %v5901_v61, %v6177_v7  ;;  %v6435_v7 = vld [vmem:[#allocation2 + $0x3c7] sm:$0xff] }
0x2560   :  { %v6187_v51 = vpop.permute.xlu1 %6186 }
0x2561   :  { %v6185_v43 = vpop.permute.xlu0 %6184  ;;  %v6201_v10 = vsel %vm254_vm4, %v6199_v58, %v6187_v51  ;;  %v8351_v51 = vpack.c.bf16 %v6435_v7, %v6434_v8 }
0x2562   :  { %v6200_v53 = vsel %vm254_vm4, %v6198_v40, %v6185_v43  ;;  %v6985_v43 = vld [vmem:[#allocation2 + $0x38e] ss:$0 sm:$0xff] }
0x258f   :  { %v6195_v41 = vpop.permute.xlu1 %6194 }
0x2590   :  { %v6193_v62 = vpop.permute.xlu0 %6192  ;;  %v6203_v55 = vsel %vm41_vm1, %v6201_v10, %v6195_v41 }
0x2591   :  { %v6202_v14 = vsel %vm41_vm1, %v6200_v53, %v6193_v62 }
0x2592   :  { %7949 = vmatprep.mubr.msk.f32.mxu0 %vm356_vm5, %v6202_v14  ;;  %v6988_v14 = vld [vmem:[#allocation2 + $0x3cf] ss:$0 sm:$0xff] }
0x2593   :  { %7950 = vmatmul.mubr.msk.f32.vlgmr.msra.gmra.mrb[90].mxu0 %vm356_vm5, %v6203_v55 }
0x2594   :  { %8342 = vmatpush3.bf16.msra.mxu0 %v8339_v46 }
0x2595   :  { %8344 = vmatprep.subr.bf16.mxu0 %v8343_v48 }
0x2598   :  { %8346 = vmatpush3.bf16.msra.mxu0 %v8343_v48 }
0x2599   :  { %8348 = vmatprep.subr.bf16.mxu0 %v8347_v54 }
0x259c   :  { %8350 = vmatpush3.bf16.msra.mxu0 %v8347_v54 }
0x259d   :  { %8352 = vmatprep.subr.bf16.mxu0 %v8351_v51 }
0x25a0   :  { %8354 = vmatpush3.bf16.msra.mxu0 %v8351_v51  ;;  %v6993_v51 = vld [vmem:[#allocation2 + $0x3d6] ss:$0 sm:$0xff] }
0x2666   :  { %v7951_v18 = vpop.f32.mrb[90].mxu0 }
0x2667   :  { %v6291_v22 = vadd.f32 %v7951_v18, %v6980_v9  ;;  %v6285_v42 = vpop.f32.mrb[91].mxu0 }
0x2668   :  { %v6286_v19 = vadd.f32 %v6980_v9, %v6285_v42 }
0x2669   :  { %v6295_v24 = vadd.f32 %v6291_v22, %v9644_v17 }
0x266a   :  { %v6294_v3 = vadd.f32 %v6286_v19, %v9642_v16  ;;  %v6336_v16 = vld [vmem:[#allocation2 + $0x36e] sm:$0xff] }
0x266b   :  { %v6301_v26 = vsel %vm356_vm5, %v6295_v24, 0.0  ;;  %v8331_v39 = vpack.c.bf16 %v6337_v5, %v6336_v16 }
0x266c   :  { %6302 = vadd.xlane.f32.xlu1 %v6301_v26  ;;  %v6298_v27 = vsel %vm356_vm5, %v6294_v3, 0.0 }
0x266d   :  { %6299 = vadd.xlane.f32.xlu0 %v6298_v27  ;;  %8332 = vmatprep.subr.bf16.mxu1 %v8331_v39 }
0x266e   :  { %8334 = vmatpush3.bf16.msra.mxu1 %v8331_v39 }
0x266f   :  { %8336 = vmatprep.subr.bf16.mxu1 %v8335_v32 }
0x2672   :  { %8338 = vmatpush3.bf16.msra.mxu1 %v8335_v32  ;;  %v6991_v32 = vld [vmem:[#allocation2 + $0x3d4] ss:$0 sm:$0xff] }
0x2673   :  { %8355 = vmatprep.subr.bf16.mxu1 %v8781_v0 }
0x26f9   :  { %v6303_v15 = vpop.xlane.xlu1 %6302 }
0x26fa   :  { %v6305_v28 = vmul.f32 0.03125, %v6303_v15  ;;  %v6300_v29 = vpop.xlane.xlu0 %6299 }
0x26fb   :  { %v6304_v13 = vmul.f32 0.03125, %v6300_v29 }
0x26fc   :  { %v6307_v23 = vsub.f32 %v6295_v24, %v6305_v28 }
0x26fd   :  { %v6306_v33 = vsub.f32 %v6294_v3, %v6304_v13 }
0x26fe   :  { %v6309_v37 = vmul.f32 %v6307_v23, %v6307_v23 }
0x26ff   :  { %v6308_v63 = vmul.f32 %v6306_v33, %v6306_v33 }
0x2700   :  { %v6313_v17 = vsel %vm356_vm5, %v6309_v37, 0.0 }
0x2701   :  { %v6310_v36 = vsel %vm356_vm5, %v6308_v63, 0.0 }
0x2702   :  { %6311 = vadd.xlane.f32.xlu0 %v6310_v36 }
0x2706   :  { %6314 = vadd.xlane.f32.xlu0 %v6313_v17 }
0x278f   :  { %v6312_v50 = vpop.xlane.xlu0 %6311 }
0x2790   :  { %v6316_v30 = vmul.f32 0.03125, %v6312_v50 }
0x2792   :  { %v6318_v11 = vadd.f32 1e-05, %v6316_v30 }
0x2793   :  { %v6315_v61 = vpop.xlane.xlu0 %6314 }
0x2794   :  { %8718 = vrsqrt.f32 %v6318_v11  ;;  %v6317_v49 = vmul.f32 0.03125, %v6315_v61 }
0x2796   :  { %v6319_v52 = vadd.f32 1e-05, %v6317_v49 }
0x2798   :  { %8720 = vrsqrt.f32 %v6319_v52 }
0x279e   :  { %v8719_v45 = vpop.eup %8718 }
0x279f   :  { %v6322_v59 = vmul.f32 %v8719_v45, %v6306_v33 }
0x27a1   :  { %v6328_v34 = vmul.f32 %v6983_v60, %v6322_v59 }
0x27a2   :  { %v8721_v2 = vpop.eup %8720 }
0x27a3   :  { %v6323_v47 = vmul.f32 %v8721_v2, %v6307_v23  ;;  %v6334_v4 = vadd.f32 %v6984_v12, %v6328_v34 }
0x27a5   :  { %v6329_v21 = vmul.f32 %v6983_v60, %v6323_v47  ;;  %7960 = vmatprep.mubr.msk.f32.mxu1 %vm356_vm5, %v6334_v4 }
0x27a7   :  { %v6335_v6 = vadd.f32 %v6984_v12, %v6329_v21 }
0x27a9   :  { %7961 = vmatmul.mubr.msk.f32.vlgmr.msra.gmra.mrb[94].mxu1 %vm356_vm5, %v6335_v6 }
0x27aa   :  { %7986 = vmatprep.mubr.msk.f32.mxu1 %vm8782_vm0, %v8783_v1 }
0x287c   :  { %v7962_v40 = vpop.f32.mrb[94].mxu1 }
0x287d   :  { %v6423_v41 = vadd.f32 %v7962_v40, %v6985_v43  ;;  %v6417_v58 = vpop.f32.mrb[95].mxu1 }
0x287e   :  { %v6418_v53 = vadd.f32 %v6985_v43, %v6417_v58  ;;  %v6994_v58 = vld [vmem:[#allocation2 + $0x3d7] ss:$0 sm:$0xff] }
0x287f   :  { %v6427_v10 = vmax.f32 %v6423_v41, 0.0 }
0x2880   :  { %v6426_v62 = vmax.f32 %v6418_v53, 0.0 }
0x2882   :  { %7979 = vmatprep.mubr.msk.f32.mxu0 %vm1724_vm8, %v6426_v62 }
0x2883   :  { %7980 = vmatmul.mubr.msk.f32.vlgmr.msra.gmra.mrb[92].mxu0 %vm1724_vm8, %v6427_v10 }
0x2956   :  { %v7981_v55 = vpop.f32.mrb[92].mxu0 }
0x2957   :  { %v6519_v9 = vadd.f32 %v7981_v55, %v6988_v14  ;;  %v6513_v18 = vpop.f32.mrb[93].mxu0  ;;  %v6678_v55 = vld [vmem:[#allocation2 + $0x3d8] sm:$0xff] }
0x2958   :  { %v6514_v22 = vadd.f32 %v6988_v14, %v6513_v18 }
0x2959   :  { %v6523_v42 = vadd.f32 %v6519_v9, %v6335_v6  ;;  %v6679_v9 = vld [vmem:[#allocation2 + $0x3e0] sm:$0xff] }
0x295a   :  { %v6522_v19 = vadd.f32 %v6514_v22, %v6334_v4  ;;  %v6604_v22 = vld [vmem:[#allocation2 + $0xec] sm:$0xff] }
0x295b   :  { %v6529_v24 = vsel %vm356_vm5, %v6523_v42, 0.0 }
0x295c   :  { %6530 = vadd.xlane.f32.xlu0 %v6529_v24  ;;  %v6526_v3 = vsel %vm356_vm5, %v6522_v19, 0.0  ;;  %v6681_v24 = vld [vmem:[#allocation2 + $0x3f0] sm:$0xff] }
0x295d   :  { %6527 = vadd.xlane.f32.xlu1 %v6526_v3 }
0x29e9   :  { %v6531_v26 = vpop.xlane.xlu0 %6530 }
0x29ea   :  { %v6533_v27 = vmul.f32 0.03125, %v6531_v26  ;;  %v6528_v15 = vpop.xlane.xlu1 %6527 }
0x29eb   :  { %v6532_v28 = vmul.f32 0.03125, %v6528_v15  ;;  %v6996_v15 = vld [vmem:[#allocation2 + $0x3f8] ss:$0 sm:$0xff] }
0x29ec   :  { %v6535_v29 = vsub.f32 %v6523_v42, %v6533_v27  ;;  %v8359_v42 = vpack.c.bf16 %v6679_v9, %v6678_v55 }
0x29ed   :  { %v6534_v13 = vsub.f32 %v6522_v19, %v6532_v28  ;;  %v6680_v19 = vld [vmem:[#allocation2 + $0x3e8] sm:$0xff] }
0x29ee   :  { %v6537_v23 = vmul.f32 %v6535_v29, %v6535_v29  ;;  %v8362_v3 = vpack.c.bf16 %v6681_v24, %v6680_v19 }
0x29ef   :  { %v6536_v33 = vmul.f32 %v6534_v13, %v6534_v13 }
0x29f0   :  { %v6541_v63 = vsel %vm356_vm5, %v6537_v23, 0.0 }
0x29f1   :  { %6542 = vadd.xlane.f32.xlu0 %v6541_v63  ;;  %v6538_v36 = vsel %vm356_vm5, %v6536_v33, 0.0 }
0x29f2   :  { %6539 = vadd.xlane.f32.xlu1 %v6538_v36 }
0x2a7e   :  { %v6543_v37 = vpop.xlane.xlu0 %6542 }
0x2a7f   :  { %v6545_v17 = vmul.f32 0.03125, %v6543_v37  ;;  %v6540_v16 = vpop.xlane.xlu1 %6539 }
0x2a80   :  { %v6544_v5 = vmul.f32 0.03125, %v6540_v16 }
0x2a81   :  { %v6547_v39 = vadd.f32 1e-05, %v6545_v17 }
0x2a82   :  { %v6546_v20 = vadd.f32 1e-05, %v6544_v5 }
0x2a83   :  { %8722 = vrsqrt.f32 %v6547_v39 }
0x2a84   :  { %8724 = vrsqrt.f32 %v6546_v20 }
0x2a8d   :  { %v8723_v44 = vpop.eup %8722 }
0x2a8e   :  { %v8725_v38 = vpop.eup %8724  ;;  %v6551_v35 = vmul.f32 %v8723_v44, %v6535_v29 }
0x2a8f   :  { %v6550_v46 = vmul.f32 %v8725_v38, %v6534_v13 }
0x2a90   :  { %v6557_v25 = vmul.f32 %v6991_v32, %v6551_v35 }
0x2a91   :  { %v6556_v48 = vmul.f32 %v6991_v32, %v6550_v46 }
0x2a92   :  { %v6563_v56 = vadd.f32 %v6992_v31, %v6557_v25 }
0x2a93   :  { %v6562_v57 = vadd.f32 %v6992_v31, %v6556_v48 }
0x2a94   :  { %v6569_v54 = vsel %vm356_vm5, %v6563_v56, 0.0 }
0x2a95   :  { %6570 = vadd.xlane.f32.xlu0 %v6569_v54  ;;  %v6566_v50 = vsel %vm356_vm5, %v6562_v57, 0.0 }
0x2a96   :  { %6567 = vadd.xlane.f32.xlu1 %v6566_v50 }
0x2b22   :  { %v6571_v30 = vpop.xlane.xlu0 %6570 }
0x2b23   :  { %v6573_v11 = vmul.f32 0.03125, %v6571_v30  ;;  %v6568_v61 = vpop.xlane.xlu1 %6567 }
0x2b24   :  { %v6572_v49 = vmul.f32 0.03125, %v6568_v61 }
0x2b25   :  { %v6575_v52 = vsub.f32 %v6563_v56, %v6573_v11 }
0x2b26   :  { %v6574_v45 = vsub.f32 %v6562_v57, %v6572_v49 }
0x2b27   :  { %v6577_v60 = vmul.f32 %v6575_v52, %v6575_v52 }
0x2b28   :  { %v6576_v59 = vmul.f32 %v6574_v45, %v6574_v45 }
0x2b29   :  { %v6581_v12 = vsel %vm356_vm5, %v6577_v60, 0.0 }
0x2b2a   :  { %6582 = vadd.xlane.f32.xlu0 %v6581_v12  ;;  %v6578_v34 = vsel %vm356_vm5, %v6576_v59, 0.0 }
0x2b2b   :  { %6579 = vadd.xlane.f32.xlu1 %v6578_v34 }
0x2bb7   :  { %v6583_v2 = vpop.xlane.xlu0 %6582 }
0x2bb8   :  { %v6585_v47 = vmul.f32 0.03125, %v6583_v2  ;;  %v6580_v4 = vpop.xlane.xlu1 %6579 }
0x2bb9   :  { %v6584_v21 = vmul.f32 0.03125, %v6580_v4 }
0x2bba   :  { %v6587_v6 = vadd.f32 1e-05, %v6585_v47 }
0x2bbb   :  { %v6586_v8 = vadd.f32 1e-05, %v6584_v21 }
0x2bbc   :  { %8726 = vrsqrt.f32 %v6587_v6 }
0x2bbd   :  { %8728 = vrsqrt.f32 %v6586_v8 }
0x2bc6   :  { %v8727_v7 = vpop.eup %8726 }
0x2bc7   :  { %v8729_v43 = vpop.eup %8728  ;;  %v6591_v40 = vmul.f32 %v8727_v7, %v6575_v52 }
0x2bc8   :  { %v6590_v41 = vmul.f32 %v8729_v43, %v6574_v45 }
0x2bc9   :  { %v6597_v53 = vmul.f32 %v6993_v51, %v6591_v40 }
0x2bca   :  { %v6596_v62 = vmul.f32 %v6993_v51, %v6590_v41 }
0x2bcb   :  { %v6603_v10 = vadd.f32 %v6994_v58, %v6597_v53 }
0x2bcc   :  { %v6602_v14 = vadd.f32 %v6994_v58, %v6596_v62 }
0x2bce   :  { %v8356_v18 = vpack.c.bf16 %v6603_v10, %v6602_v14 }
0x2bd0   :  { %8357 = vmatpush3.bf16.msra.mxu1 %v8356_v18 }
0x2bd1   :  { %8358 = vmatprep.subr.bf16.mxu1 %v8781_v0 }
0x2bd3   :  { %7987 = vmatmul.mubr.msk.f32.vlgmr.msra.gmra.mrb[96].mxu1 %vm254_vm4, %v6604_v22 }
0x2bd4   :  { %8360 = vmatpush3.bf16.msra.mxu1 %v8359_v42  ;;  %7997 = vmatprep.mubr.msk.f32.mxu1 %vm8782_vm0, %v8783_v1 }
0x2bd5   :  { %8361 = vmatprep.subr.bf16.mxu1 %v8781_v0 }
0x2bd8   :  { %8363 = vmatpush3.bf16.msra.mxu1 %v8362_v3 }
0x2ca6   :  { %v6674_v26 = vpop.f32.mrb[96].mxu1 }
0x2ca7   :  { %v7988_v27 = vpop.f32.mrb[97].mxu1  ;;  %7998 = vmatmul.mubr.msk.f32.vlgmr.msra.gmra.mrb[98].mxu1 %vm356_vm5, %v6674_v26 }
0x2d7a   :  { %v6756_v28 = vpop.f32.mrb[98].mxu1 }
0x2d7b   :  { %v6757_v29 = vadd.f32 %v6996_v15, %v6756_v28  ;;  %v7999_v13 = vpop.f32.mrb[99].mxu1 }
0x2d7d   :  { %6760 = vst.msk [vmem:[#allocation5] sm:$0xff] %vm244_vm2, %v6757_v29 }
0x2d7e   :  { %8763 = shalt.err (!%p8760_p12)
}
0x2d7f   :  { %s8764_s21 = scalar_lea.hbm %s9821_s3, 128 }
0x2d80   :  { %p8765_p13 = scmp.ne.s32.totalorder %s9821_s3, %s8764_s21  ;;  %p8768_p0 = scmp.lt.u32.totalorder %s8764_s21, %s9821_s3 }
0x2d82   :  { %p8770_p1 = pnand %p8768_p0, %p8765_p13 }
0x2d84   :  { %8773 = shalt.err (!%p8770_p1)
}
0x2d85   :  { %6770 = dma.vmem_to_hbm [thread:$0]  %s6768_s17, 128, %s9821_s3, [#allocation4]  }
0x2d86   :  { %8776 = dma.done.wait [#allocation4], 128  }
0x2d87   :  { %8777 = vsyncadd [#allocation4], 4294967168 }
0x2d88   :  { %6774 = vsyncpa [#allocation3], 1 }
0x2d89   :  { %6775 = vsyncpa [#allocation4], 1 }

</bundles_post_ra>
